<compile_context>
chip_gen: v6e
topology: v6e:2x2x1
jax: 0.10.0
libtpu: 0.0.40
codegen_flags: <defaults>
</compile_context>

<pallas_src>
import functools
import math

import numpy as np
import jax
import jax.numpy as jnp
from jax.experimental import pallas as pl
from jax.experimental.pallas import tpu as pltpu

# ----------------------------- small config ---------------------------------
D_MODEL = 32
N_HEADS = 4
N_LAYERS = 2
D_FF = 64
STATE_DIM = 12
ACTION_DIM = 24
RESOURCE_TYPES = 4
TASK_EMB_DIM = 16
TEMPORAL_SCALES = (1, 2, 4, 8)       # all <= SEQ, so the avg_pool fallback is unused
ADAPTER_DIM = 8
BATCH = 2
SEQ = 8

N_TASK_TYPES = 20
N_PRIORITIES = 10
OUT_CH = D_MODEL // len(TEMPORAL_SCALES)
N_TAPS = sum(TEMPORAL_SCALES)        # 15
BS = BATCH * SEQ                     # 16 rows: batch folded into sublanes
DK = D_MODEL // N_HEADS
LN_EPS = 1e-5
OUT_PAD = 128                        # lane-dense output slab (sliced to ACTION_DIM outside)

# packed runtime-input column layout (lane axis of the [B*S, IN_W] input blob)
_C_STATE = 0
_C_RES = _C_STATE + STATE_DIM        # 12
_C_SIZE = _C_RES + RESOURCE_TYPES    # 16
_C_TYPE = _C_SIZE + 1                # 17
_C_PRIO = _C_TYPE + N_TASK_TYPES     # 37
IN_W_RAW = _C_PRIO + N_PRIORITIES    # 47
IN_W = ((IN_W_RAW + 7) // 8) * 8     # 48


# --------------------------- host-side constants ------------------------------
def _positional_encoding(seq_len, d_model):
    pos = np.arange(seq_len, dtype=np.float32)[:, None]
    div = np.exp(np.arange(0, d_model, 2, dtype=np.float32) * (-math.log(10000.0) / d_model))
    pe = np.zeros((seq_len, d_model), np.float32)
    pe[:, 0::2] = np.sin(pos * div)
    pe[:, 1::2] = np.cos(pos * div)
    return pe


def _interp_matrix(lin, lout):
    """F.interpolate(mode='linear', align_corners=False) as a [lout, lin] operator."""
    m = np.zeros((lout, lin), np.float32)
    scale = lin / lout
    for i in range(lout):
        src = max((i + 0.5) * scale - 0.5, 0.0)
        i0 = min(int(np.floor(src)), lin - 1)
        i1 = min(i0 + 1, lin - 1)
        w1 = src - i0
        m[i, i0] += 1.0 - w1
        m[i, i1] += w1
    return m


def _select_matrix(stride, tap, seq_len):
    """Row-selection operator picking rows tap, tap+stride, ...: [seq//stride, seq]."""
    ls = seq_len // stride
    m = np.zeros((ls, seq_len), np.float32)
    for t in range(ls):
        m[t, t * stride + tap] = 1.0
    return m


class _Packer:
    """One [R, 128] f32 blob: matrices 8-row aligned, 1-row vectors packed densely."""
    WIDTH = 128

    def __init__(self):
        self._mat_blocks = []
        self._mat_off = {}
        self._mat_rows = 0
        self._vecs = []

    def add_matrix(self, name, arr):
        a = np.asarray(arr, np.float32)
        assert a.ndim == 2 and a.shape[1] <= self.WIDTH, (name, a.shape)
        rows, cols = a.shape
        rpad = ((rows + 7) // 8) * 8
        blk = np.zeros((rpad, self.WIDTH), np.float32)
        blk[:rows, :cols] = a
        self._mat_off[name] = (self._mat_rows, rows, cols)
        self._mat_blocks.append(blk)
        self._mat_rows += rpad

    def add_vector(self, name, arr):
        a = np.asarray(arr, np.float32).reshape(-1)
        assert a.shape[0] <= self.WIDTH, (name, a.shape)
        self._vecs.append((name, a))

    def finish(self):
        off = dict(self._mat_off)
        vpad = ((len(self._vecs) + 7) // 8) * 8
        vblk = np.zeros((max(vpad, 8), self.WIDTH), np.float32)
        for i, (name, a) in enumerate(self._vecs):
            vblk[i, :a.shape[0]] = a
            off[name] = (self._mat_rows + i, 1, a.shape[0])
        blob = np.concatenate(self._mat_blocks + [vblk], axis=0)
        return jnp.asarray(blob), off


# ------------------------------ parameters ------------------------------------
def init_params(key):
    state = {"key": key}

    def nrm(shape, std=0.02):
        state["key"], sub = jax.random.split(state["key"])
        return std * jax.random.normal(sub, shape, jnp.float32)

    def zeros(shape):
        return jnp.zeros(shape, jnp.float32)

    p = {}
    p["state_w"] = nrm((STATE_DIM, D_MODEL))
    p["state_b"] = zeros((D_MODEL,))
    p["task_type_emb"] = nrm((N_TASK_TYPES, TASK_EMB_DIM))
    p["res_w"] = nrm((RESOURCE_TYPES, TASK_EMB_DIM))
    p["res_b"] = zeros((TASK_EMB_DIM,))
    p["prio_emb"] = nrm((N_PRIORITIES, TASK_EMB_DIM))
    p["size_w"] = nrm((1, TASK_EMB_DIM))
    p["size_b"] = zeros((TASK_EMB_DIM,))
    p["fusion1_w"] = nrm((4 * TASK_EMB_DIM, D_MODEL))
    p["fusion1_b"] = zeros((D_MODEL,))
    p["fusion2_w"] = nrm((D_MODEL, D_MODEL))
    p["fusion2_b"] = zeros((D_MODEL,))

    layers = []
    for _ in range(N_LAYERS):
        lp = {}
        for name in ["wq", "wk", "wv", "wo"]:
            lp[name] = nrm((D_MODEL, D_MODEL))
            lp[name + "_b"] = zeros((D_MODEL,))
        # Conv1d(D, D//n_scales, kernel=s, stride=s) stored directly as matmul
        # matrices [s*D, out_ch]  (== W.transpose(2,1,0).reshape(s*D, out_ch)).
        lp["conv_w"] = [nrm((s * D_MODEL, OUT_CH)) for s in TEMPORAL_SCALES]
        lp["conv_b"] = [zeros((OUT_CH,)) for _ in TEMPORAL_SCALES]
        lp["te_fusion_w"] = nrm((D_MODEL, D_MODEL))
        lp["te_fusion_b"] = zeros((D_MODEL,))
        lp["te_ln_g"] = jnp.ones((D_MODEL,), jnp.float32)
        lp["te_ln_b"] = zeros((D_MODEL,))
        lp["ff1_w"] = nrm((D_MODEL, D_FF))
        lp["ff1_b"] = zeros((D_FF,))
        lp["ff2_w"] = nrm((D_FF, D_MODEL))
        lp["ff2_b"] = zeros((D_MODEL,))
        for n in ["norm1", "norm2", "norm3"]:
            lp[n + "_g"] = jnp.ones((D_MODEL,), jnp.float32)
            lp[n + "_b"] = zeros((D_MODEL,))
        lp["ad_down_w"] = nrm((D_MODEL, ADAPTER_DIM))
        lp["ad_down_b"] = zeros((ADAPTER_DIM,))
        lp["ad_up_w"] = nrm((ADAPTER_DIM, D_MODEL))
        lp["ad_up_b"] = zeros((D_MODEL,))
        layers.append(lp)
    p["layers"] = layers
    p["head_w"] = nrm((D_MODEL, ACTION_DIM))
    p["head_b"] = zeros((ACTION_DIM,))
    return p


def pack_params(params):
    """Pack weights into one dense [R,128] blob + two wide temporal operators."""
    pk = _Packer()
    npf = lambda a: np.asarray(a, np.float32)

    # --- fused embedding: one [IN_W, 32+64] matmul (state_emb | type,res,prio,size) ---
    emb_w = np.zeros((IN_W, D_MODEL + 4 * TASK_EMB_DIM), np.float32)
    emb_w[_C_STATE:_C_STATE + STATE_DIM, 0:D_MODEL] = npf(params["state_w"])
    c0 = D_MODEL
    emb_w[_C_TYPE:_C_TYPE + N_TASK_TYPES, c0:c0 + TASK_EMB_DIM] = npf(params["task_type_emb"])
    emb_w[_C_RES:_C_RES + RESOURCE_TYPES, c0 + TASK_EMB_DIM:c0 + 2 * TASK_EMB_DIM] = npf(params["res_w"])
    emb_w[_C_PRIO:_C_PRIO + N_PRIORITIES, c0 + 2 * TASK_EMB_DIM:c0 + 3 * TASK_EMB_DIM] = npf(params["prio_emb"])
    emb_w[_C_SIZE:_C_SIZE + 1, c0 + 3 * TASK_EMB_DIM:c0 + 4 * TASK_EMB_DIM] = npf(params["size_w"])
    emb_b = np.concatenate([npf(params["state_b"]),
                            np.zeros(TASK_EMB_DIM, np.float32), npf(params["res_b"]),
                            np.zeros(TASK_EMB_DIM, np.float32), npf(params["size_b"])])
    pk.add_matrix("emb_w", emb_w)
    pk.add_vector("emb_b", emb_b)
    pk.add_matrix("fusion1_w", npf(params["fusion1_w"]))
    pk.add_vector("fusion1_b", npf(params["fusion1_b"]))
    pk.add_matrix("fusion2_w", npf(params["fusion2_w"]))
    pk.add_vector("fusion2_b", npf(params["fusion2_b"]))
    pk.add_matrix("pe", np.tile(_positional_encoding(SEQ, D_MODEL), (BATCH, 1)))   # [BS, D]

    # block-diagonal additive attention mask (batch folded into rows)
    mask = np.full((BS, BS), -1e9, np.float32)
    for b in range(BATCH):
        mask[b * SEQ:(b + 1) * SEQ, b * SEQ:(b + 1) * SEQ] = 0.0
    pk.add_matrix("attn_mask", mask)

    wcat_rows = []
    for l, lp in enumerate(params["layers"]):
        p = "L%d_" % l
        pk.add_matrix(p + "qkv_w", np.concatenate([npf(lp["wq"]), npf(lp["wk"]), npf(lp["wv"])], axis=1))
        pk.add_vector(p + "qkv_b", np.concatenate([npf(lp["wq_b"]), npf(lp["wk_b"]), npf(lp["wv_b"])]))
        pk.add_matrix(p + "wo_w", npf(lp["wo"]))
        pk.add_vector(p + "wo_b", npf(lp["wo_b"]))

        # temporal encoder: fold every conv tap and te_fusion into one [D, N_TAPS*D] operand
        tf_w = npf(lp["te_fusion_w"])
        cols, conv_b_cat = [], []
        for si, sc in enumerate(TEMPORAL_SCALES):
            wflat = npf(lp["conv_w"][si])                         # [sc*D, out_ch], tap-major rows
            tfs = tf_w[si * OUT_CH:(si + 1) * OUT_CH, :]          # [out_ch, D]
            for k in range(sc):
                cols.append(wflat[k * D_MODEL:(k + 1) * D_MODEL, :] @ tfs)   # [D, D]
            conv_b_cat.append(npf(lp["conv_b"][si]))
        wcat_rows.append(np.concatenate(cols, axis=1))            # [D, N_TAPS*D]
        # conv bias commutes with interpolation (interp rows sum to 1) -> fold with te_fusion bias
        te_bias = np.concatenate(conv_b_cat) @ tf_w + npf(lp["te_fusion_b"])
        pk.add_vector(p + "te_bias", te_bias)
        pk.add_vector(p + "te_g", npf(lp["te_ln_g"]))
        pk.add_vector(p + "te_b", npf(lp["te_ln_b"]))

        pk.add_matrix(p + "ff1_w", npf(lp["ff1_w"]))
        pk.add_vector(p + "ff1_b", npf(lp["ff1_b"]))
        pk.add_matrix(p + "ff2_w", npf(lp["ff2_w"]))
        pk.add_vector(p + "ff2_b", npf(lp["ff2_b"]))
        for n in ["norm1", "norm2", "norm3"]:
            pk.add_vector(p + "n%s_g" % n[-1], npf(lp[n + "_g"]))
            pk.add_vector(p + "n%s_b" % n[-1], npf(lp[n + "_b"]))
        pk.add_matrix(p + "ad_dw", npf(lp["ad_down_w"]))
        pk.add_vector(p + "ad_db", npf(lp["ad_down_b"]))
        pk.add_matrix(p + "ad_uw", npf(lp["ad_up_w"]))
        pk.add_vector(p + "ad_ub", npf(lp["ad_up_b"]))

    # lane-dense padded output head
    head_w = np.zeros((D_MODEL, OUT_PAD), np.float32)
    head_w[:, :ACTION_DIM] = npf(params["head_w"])
    head_b = np.zeros((OUT_PAD,), np.float32)
    head_b[:ACTION_DIM] = npf(params["head_b"])
    pk.add_matrix("head_w", head_w)
    pk.add_vector("head_b", head_b)

    wpack, off = pk.finish()

    # precomposed (interpolate o tap-select) operators, block-diag over the folded batch
    l_blocks = []
    for sc in TEMPORAL_SCALES:
        ai = _interp_matrix(SEQ // sc, SEQ)                       # [S, S/sc]
        assert np.allclose(ai.sum(axis=1), 1.0, atol=1e-6), "interp rows must sum to 1"
        for k in range(sc):
            lsk = ai @ _select_matrix(sc, k, SEQ)                 # [S, S]
            l_blocks.append(np.kron(np.eye(BATCH, dtype=np.float32), lsk))   # [BS, BS]
    l_all = jnp.asarray(np.concatenate(l_blocks, axis=1))         # [BS, N_TAPS*BS]
    wcat = jnp.asarray(np.concatenate(wcat_rows, axis=0))         # [N_LAYERS*D, N_TAPS*D]
    return wpack, off, wcat, l_all


# ------------------------------ the fused kernel -------------------------------
def _fused_forward_kernel(inp_ref, w_ref, wcat_ref, lall_ref, out_ref, *, off):
    """Single invocation (no grid); whole [B*S, D] activation stays in VMEM/vregs."""
    f32 = jnp.float32

    def W(name, row0=0, nrows=None):                  # static ref slice into the blob
        r, k, n = off[name]
        if nrows is None:
            nrows = k
        return w_ref[pl.ds(r + row0, nrows), pl.ds(0, n)]

    def layernorm(y, g, b):                           # nn.LayerNorm, eps=1e-5
        mu = jnp.mean(y, axis=-1, keepdims=True)
        var = jnp.mean(jnp.square(y - mu), axis=-1, keepdims=True)
        return (y - mu) * jax.lax.rsqrt(var + LN_EPS) * g + b

    def softmax_rows(s):
        s = s - jnp.max(s, axis=-1, keepdims=True)
        p = jnp.exp(s)
        return p * pl.reciprocal(jnp.sum(p, axis=-1, keepdims=True), approx=True)

    inp = inp_ref[...].astype(f32)                    # [BS, IN_W]

    # ---- embeddings: state + hierarchical TaskEmbedding in one fused matmul ----
    emb = jnp.dot(inp, W("emb_w"), preferred_element_type=f32) + W("emb_b")   # [BS, 96]
    state_emb = emb[:, :D_MODEL]
    combined = emb[:, D_MODEL:D_MODEL + 4 * TASK_EMB_DIM]
    fused = jnp.maximum(
        jnp.dot(combined, W("fusion1_w"), preferred_element_type=f32) + W("fusion1_b"), 0.0)
    task_emb = jnp.dot(fused, W("fusion2_w"), preferred_element_type=f32) + W("fusion2_b")

    # TODO(synk): prompt-tuning branch (task_id is not None) not implemented.
    x = state_emb + task_emb + W("pe")                # [BS, D]; dropout == identity (inference)

    mask = W("attn_mask")                             # [BS, BS] block-diag additive mask
    att_scale = 1.0 / math.sqrt(DK)

    for l in range(N_LAYERS):
        p = "L%d_" % l

        # ---------- ResourceAwareAttention (resource_mask / attention_mask None) ----------
        # TODO(synk): resource_bias path unused (resource_mask defaults to None).
        qkv = jnp.dot(x, W(p + "qkv_w"), preferred_element_type=f32) + W(p + "qkv_b")   # [BS, 3D]
        attn_out = None
        for h in range(N_HEADS):                      # W_O distributed over heads (no concat)
            q = qkv[:, h * DK:(h + 1) * DK]
            k = qkv[:, D_MODEL + h * DK:D_MODEL + (h + 1) * DK]
            v = qkv[:, 2 * D_MODEL + h * DK:2 * D_MODEL + (h + 1) * DK]
            s = jax.lax.dot_general(q, k, (((1,), (1,)), ((), ())),
                                    preferred_element_type=f32) * att_scale + mask
            pw = softmax_rows(s)                      # attention dropout == identity
            hv = jnp.dot(pw, v, preferred_element_type=f32)                       # [BS, DK]
            contrib = jnp.dot(hv, W(p + "wo_w", h * DK, DK), preferred_element_type=f32)
            attn_out = contrib if attn_out is None else attn_out + contrib
        attn_out = attn_out + W(p + "wo_b")
        x = layernorm(x + attn_out, W(p + "n1_g"), W(p + "n1_b"))

        # ---------- MultiScaleTemporalEncoder (fully precomposed: 2 matmuls) ----------
        # TODO(synk): avg_pool1d fallback (scale > seq_len) unused; all scales <= seq_len.
        y = jnp.dot(x, wcat_ref[pl.ds(l * D_MODEL, D_MODEL), :],
                    preferred_element_type=f32)                                   # [BS, N_TAPS*D]
        z = jnp.concatenate(
            [y[:, j * D_MODEL:(j + 1) * D_MODEL] for j in range(N_TAPS)], axis=0)  # [N_TAPS*BS, D]
        te_fused = jnp.dot(lall_ref[...], z, preferred_element_type=f32) + W(p + "te_bias")
        temporal_out = layernorm(x + te_fused, W(p + "te_g"), W(p + "te_b"))
        x = layernorm(x + temporal_out, W(p + "n2_g"), W(p + "n2_b"))

        # ---------- feed forward ----------
        h1 = jnp.maximum(
            jnp.dot(x, W(p + "ff1_w"), preferred_element_type=f32) + W(p + "ff1_b"), 0.0)
        ff = jnp.dot(h1, W(p + "ff2_w"), preferred_element_type=f32) + W(p + "ff2_b")
        x = layernorm(x + ff, W(p + "n3_g"), W(p + "n3_b"))

        # ---------- adapter ----------
        ad = jnp.maximum(
            jnp.dot(x, W(p + "ad_dw"), preferred_element_type=f32) + W(p + "ad_db"), 0.0)
        x = x + jnp.dot(ad, W(p + "ad_uw"), preferred_element_type=f32) + W(p + "ad_ub")

    # ---------- output head: 'action_prediction' (lane-dense 128-wide slab) ----------
    # TODO(synk): other output heads / self-supervised heads not wired (default head only).
    out = jnp.dot(x, W("head_w"), preferred_element_type=f32) + W("head_b")       # [BS, 128]
    out_ref[...] = out.astype(out_ref.dtype)


# ------------------------------ wrapper ---------------------------------------
def build_forward(off):
    kernel = functools.partial(_fused_forward_kernel, off=off)

    @jax.jit
    def forward(wpack, wcat, l_all, state_sequence, task_type, resource_req, priority, size):
        B, S, _ = state_sequence.shape
        # Embedding lookups expressed as exact one-hot matmuls inside the kernel.
        # TODO(synk): could move one-hot construction in-kernel via scalar prefetch.
        oh_type = jax.nn.one_hot(task_type, N_TASK_TYPES, dtype=jnp.float32)
        oh_prio = jax.nn.one_hot(priority, N_PRIORITIES, dtype=jnp.float32)
        inp = jnp.concatenate(
            [state_sequence.astype(jnp.float32), resource_req.astype(jnp.float32),
             size.astype(jnp.float32), oh_type, oh_prio], axis=-1)
        inp = jnp.pad(inp, ((0, 0), (0, 0), (0, IN_W - IN_W_RAW)))
        inp = inp.reshape(B * S, IN_W)                 # fold batch into the row (sublane) axis

        vmem = lambda: pl.BlockSpec(memory_space=pltpu.MemorySpace.VMEM)
        out = pl.pallas_call(
            kernel,
            out_shape=jax.ShapeDtypeStruct((B * S, OUT_PAD), jnp.float32),
            in_specs=[vmem(), vmem(), vmem(), vmem()],
            out_specs=vmem(),
        )(inp, wpack, wcat, l_all)
        return out[:, :ACTION_DIM].reshape(B, S, ACTION_DIM)

    return forward


if __name__ == "__main__":
    key = jax.random.PRNGKey(0)
    k1, k2, k3, k4, k5, kp = jax.random.split(key, 6)
    state_sequence = jax.random.normal(k1, (BATCH, SEQ, STATE_DIM), jnp.float32)
    task_type = jax.random.randint(k2, (BATCH, SEQ), 0, N_TASK_TYPES)
    resource_req = jax.random.uniform(k3, (BATCH, SEQ, RESOURCE_TYPES), jnp.float32)
    priority = jax.random.randint(k4, (BATCH, SEQ), 0, N_PRIORITIES)
    size = jax.random.uniform(k5, (BATCH, SEQ, 1), jnp.float32)

    params = init_params(kp)
    wpack, off, wcat, l_all = pack_params(params)
    forward = build_forward(off)

    out = forward(wpack, wcat, l_all, state_sequence, task_type, resource_req, priority, size)
    out = jax.block_until_ready(out)
    assert out.shape == (BATCH, SEQ, ACTION_DIM)
    assert bool(jnp.all(jnp.isfinite(out)))
    print("KERNEL_OK")
</pallas_src>

<mosaic_0001>
module attributes {stable_mosaic.version = 11 : i64} {
  func.func @_fused_forward_kernel(%arg0: memref<16x48xf32, #tpu.memory_space<vmem>>, %arg1: memref<648x128xf32, #tpu.memory_space<vmem>>, %arg2: memref<64x480xf32, #tpu.memory_space<vmem>>, %arg3: memref<16x240xf32, #tpu.memory_space<vmem>>, %arg4: memref<16x128xf32, #tpu.memory_space<vmem>>) attributes {dimension_semantics = [], scalar_prefetch = 0 : i64, scratch_operands = 0 : i64, tpu.core_type = #tpu.core_type<tc>} {
    %c0 = arith.constant 0 : index
    %c0_0 = arith.constant 0 : index
    %0 = vector.load %arg0[%c0, %c0_0] : memref<16x48xf32, #tpu.memory_space<vmem>>, vector<16x48xf32>
    %c0_1 = arith.constant 0 : index
    %c0_2 = arith.constant 0 : index
    %1 = vector.load %arg1[%c0_1, %c0_2] : memref<648x128xf32, #tpu.memory_space<vmem>>, vector<48x96xf32>
    %cst = arith.constant dense<0.000000e+00> : vector<16x96xf32>
    %2 = tpu.matmul %0, %1, %cst {dimension_numbers = #tpu.dot_dimension_numbers<[1], [0], [0], [1], [0, 0, 1, 1], [], []>} : vector<16x48xf32>, vector<48x96xf32>, vector<16x96xf32> -> vector<16x96xf32>
    %c608 = arith.constant 608 : index
    %c0_3 = arith.constant 0 : index
    %3 = vector.load %arg1[%c608, %c0_3] : memref<648x128xf32, #tpu.memory_space<vmem>>, vector<1x96xf32>
    %4 = vector.broadcast %3 : vector<1x96xf32> to vector<16x96xf32>
    %5 = arith.addf %2, %4 : vector<16x96xf32>
    %6 = vector.extract_strided_slice %5 {offsets = [0, 0], sizes = [16, 32], strides = [1, 1]} : vector<16x96xf32> to vector<16x32xf32>
    %7 = vector.extract_strided_slice %5 {offsets = [0, 32], sizes = [16, 64], strides = [1, 1]} : vector<16x96xf32> to vector<16x64xf32>
    %c48 = arith.constant 48 : index
    %c0_4 = arith.constant 0 : index
    %8 = vector.load %arg1[%c48, %c0_4] : memref<648x128xf32, #tpu.memory_space<vmem>>, vector<64x32xf32>
    %cst_5 = arith.constant dense<0.000000e+00> : vector<16x32xf32>
    %9 = tpu.matmul %7, %8, %cst_5 {dimension_numbers = #tpu.dot_dimension_numbers<[1], [0], [0], [1], [0, 0, 1, 1], [], []>} : vector<16x64xf32>, vector<64x32xf32>, vector<16x32xf32> -> vector<16x32xf32>
    %c609 = arith.constant 609 : index
    %c0_6 = arith.constant 0 : index
    %10 = vector.load %arg1[%c609, %c0_6] : memref<648x128xf32, #tpu.memory_space<vmem>>, vector<1x32xf32>
    %11 = vector.broadcast %10 : vector<1x32xf32> to vector<16x32xf32>
    %12 = arith.addf %9, %11 : vector<16x32xf32>
    %cst_7 = arith.constant 0.000000e+00 : f32
    %13 = vector.broadcast %cst_7 : f32 to vector<16x32xf32>
    %14 = arith.maximumf %12, %13 : vector<16x32xf32>
    %c112 = arith.constant 112 : index
    %c0_8 = arith.constant 0 : index
    %15 = vector.load %arg1[%c112, %c0_8] : memref<648x128xf32, #tpu.memory_space<vmem>>, vector<32x32xf32>
    %cst_9 = arith.constant dense<0.000000e+00> : vector<16x32xf32>
    %16 = tpu.matmul %14, %15, %cst_9 {dimension_numbers = #tpu.dot_dimension_numbers<[1], [0], [0], [1], [0, 0, 1, 1], [], []>} : vector<16x32xf32>, vector<32x32xf32>, vector<16x32xf32> -> vector<16x32xf32>
    %c610 = arith.constant 610 : index
    %c0_10 = arith.constant 0 : index
    %17 = vector.load %arg1[%c610, %c0_10] : memref<648x128xf32, #tpu.memory_space<vmem>>, vector<1x32xf32>
    %18 = vector.broadcast %17 : vector<1x32xf32> to vector<16x32xf32>
    %19 = arith.addf %16, %18 : vector<16x32xf32>
    %20 = arith.addf %6, %19 : vector<16x32xf32>
    %c144 = arith.constant 144 : index
    %c0_11 = arith.constant 0 : index
    %21 = vector.load %arg1[%c144, %c0_11] : memref<648x128xf32, #tpu.memory_space<vmem>>, vector<16x32xf32>
    %22 = arith.addf %20, %21 : vector<16x32xf32>
    %c160 = arith.constant 160 : index
    %c0_12 = arith.constant 0 : index
    %23 = vector.load %arg1[%c160, %c0_12] : memref<648x128xf32, #tpu.memory_space<vmem>>, vector<16x16xf32>
    %c176 = arith.constant 176 : index
    %c0_13 = arith.constant 0 : index
    %24 = vector.load %arg1[%c176, %c0_13] : memref<648x128xf32, #tpu.memory_space<vmem>>, vector<32x96xf32>
    %cst_14 = arith.constant dense<0.000000e+00> : vector<16x96xf32>
    %25 = tpu.matmul %22, %24, %cst_14 {dimension_numbers = #tpu.dot_dimension_numbers<[1], [0], [0], [1], [0, 0, 1, 1], [], []>} : vector<16x32xf32>, vector<32x96xf32>, vector<16x96xf32> -> vector<16x96xf32>
    %c611 = arith.constant 611 : index
    %c0_15 = arith.constant 0 : index
    %26 = vector.load %arg1[%c611, %c0_15] : memref<648x128xf32, #tpu.memory_space<vmem>>, vector<1x96xf32>
    %27 = vector.broadcast %26 : vector<1x96xf32> to vector<16x96xf32>
    %28 = arith.addf %25, %27 : vector<16x96xf32>
    %29 = vector.extract_strided_slice %28 {offsets = [0, 0], sizes = [16, 8], strides = [1, 1]} : vector<16x96xf32> to vector<16x8xf32>
    %30 = vector.extract_strided_slice %28 {offsets = [0, 32], sizes = [16, 8], strides = [1, 1]} : vector<16x96xf32> to vector<16x8xf32>
    %31 = vector.extract_strided_slice %28 {offsets = [0, 64], sizes = [16, 8], strides = [1, 1]} : vector<16x96xf32> to vector<16x8xf32>
    %cst_16 = arith.constant dense<0.000000e+00> : vector<16x16xf32>
    %32 = tpu.matmul %29, %30, %cst_16 {dimension_numbers = #tpu.dot_dimension_numbers<[1], [1], [0], [0], [0, 0, 1, 0], [], []>} : vector<16x8xf32>, vector<16x8xf32>, vector<16x16xf32> -> vector<16x16xf32>
    %cst_17 = arith.constant 0.353553385 : f32
    %33 = vector.broadcast %cst_17 : f32 to vector<16x16xf32>
    %34 = arith.mulf %32, %33 : vector<16x16xf32>
    %35 = arith.addf %34, %23 : vector<16x16xf32>
    %cst_18 = arith.constant dense<0xFF800000> : vector<16xf32>
    %36 = vector.multi_reduction <maximumf>, %35, %cst_18 [1] : vector<16x16xf32> to vector<16xf32>
    %37 = vector.shape_cast %36 : vector<16xf32> to vector<16x1xf32>
    %38 = vector.broadcast %37 : vector<16x1xf32> to vector<16x16xf32>
    %39 = arith.subf %35, %38 : vector<16x16xf32>
    %40 = math.exp %39 : vector<16x16xf32>
    %cst_19 = arith.constant dense<0.000000e+00> : vector<16xf32>
    %41 = vector.multi_reduction <add>, %40, %cst_19 [1] : vector<16x16xf32> to vector<16xf32>
    %42 = vector.shape_cast %41 : vector<16xf32> to vector<16x1xf32>
    %43 = tpu.reciprocal %42 {approx = true} : vector<16x1xf32> -> vector<16x1xf32>
    %44 = vector.broadcast %43 : vector<16x1xf32> to vector<16x16xf32>
    %45 = arith.mulf %40, %44 : vector<16x16xf32>
    %cst_20 = arith.constant dense<0.000000e+00> : vector<16x8xf32>
    %46 = tpu.matmul %45, %31, %cst_20 {dimension_numbers = #tpu.dot_dimension_numbers<[1], [0], [0], [1], [0, 0, 1, 1], [], []>} : vector<16x16xf32>, vector<16x8xf32>, vector<16x8xf32> -> vector<16x8xf32>
    %c208 = arith.constant 208 : index
    %c0_21 = arith.constant 0 : index
    %47 = vector.load %arg1[%c208, %c0_21] : memref<648x128xf32, #tpu.memory_space<vmem>>, vector<8x32xf32>
    %cst_22 = arith.constant dense<0.000000e+00> : vector<16x32xf32>
    %48 = tpu.matmul %46, %47, %cst_22 {dimension_numbers = #tpu.dot_dimension_numbers<[1], [0], [0], [1], [0, 0, 1, 1], [], []>} : vector<16x8xf32>, vector<8x32xf32>, vector<16x32xf32> -> vector<16x32xf32>
    %49 = vector.extract_strided_slice %28 {offsets = [0, 8], sizes = [16, 8], strides = [1, 1]} : vector<16x96xf32> to vector<16x8xf32>
    %50 = vector.extract_strided_slice %28 {offsets = [0, 40], sizes = [16, 8], strides = [1, 1]} : vector<16x96xf32> to vector<16x8xf32>
    %51 = vector.extract_strided_slice %28 {offsets = [0, 72], sizes = [16, 8], strides = [1, 1]} : vector<16x96xf32> to vector<16x8xf32>
    %cst_23 = arith.constant dense<0.000000e+00> : vector<16x16xf32>
    %52 = tpu.matmul %49, %50, %cst_23 {dimension_numbers = #tpu.dot_dimension_numbers<[1], [1], [0], [0], [0, 0, 1, 0], [], []>} : vector<16x8xf32>, vector<16x8xf32>, vector<16x16xf32> -> vector<16x16xf32>
    %cst_24 = arith.constant 0.353553385 : f32
    %53 = vector.broadcast %cst_24 : f32 to vector<16x16xf32>
    %54 = arith.mulf %52, %53 : vector<16x16xf32>
    %55 = arith.addf %54, %23 : vector<16x16xf32>
    %cst_25 = arith.constant dense<0xFF800000> : vector<16xf32>
    %56 = vector.multi_reduction <maximumf>, %55, %cst_25 [1] : vector<16x16xf32> to vector<16xf32>
    %57 = vector.shape_cast %56 : vector<16xf32> to vector<16x1xf32>
    %58 = vector.broadcast %57 : vector<16x1xf32> to vector<16x16xf32>
    %59 = arith.subf %55, %58 : vector<16x16xf32>
    %60 = math.exp %59 : vector<16x16xf32>
    %cst_26 = arith.constant dense<0.000000e+00> : vector<16xf32>
    %61 = vector.multi_reduction <add>, %60, %cst_26 [1] : vector<16x16xf32> to vector<16xf32>
    %62 = vector.shape_cast %61 : vector<16xf32> to vector<16x1xf32>
    %63 = tpu.reciprocal %62 {approx = true} : vector<16x1xf32> -> vector<16x1xf32>
    %64 = vector.broadcast %63 : vector<16x1xf32> to vector<16x16xf32>
    %65 = arith.mulf %60, %64 : vector<16x16xf32>
    %cst_27 = arith.constant dense<0.000000e+00> : vector<16x8xf32>
    %66 = tpu.matmul %65, %51, %cst_27 {dimension_numbers = #tpu.dot_dimension_numbers<[1], [0], [0], [1], [0, 0, 1, 1], [], []>} : vector<16x16xf32>, vector<16x8xf32>, vector<16x8xf32> -> vector<16x8xf32>
    %c216 = arith.constant 216 : index
    %c0_28 = arith.constant 0 : index
    %67 = vector.load %arg1[%c216, %c0_28] : memref<648x128xf32, #tpu.memory_space<vmem>>, vector<8x32xf32>
    %cst_29 = arith.constant dense<0.000000e+00> : vector<16x32xf32>
    %68 = tpu.matmul %66, %67, %cst_29 {dimension_numbers = #tpu.dot_dimension_numbers<[1], [0], [0], [1], [0, 0, 1, 1], [], []>} : vector<16x8xf32>, vector<8x32xf32>, vector<16x32xf32> -> vector<16x32xf32>
    %69 = arith.addf %48, %68 : vector<16x32xf32>
    %70 = vector.extract_strided_slice %28 {offsets = [0, 16], sizes = [16, 8], strides = [1, 1]} : vector<16x96xf32> to vector<16x8xf32>
    %71 = vector.extract_strided_slice %28 {offsets = [0, 48], sizes = [16, 8], strides = [1, 1]} : vector<16x96xf32> to vector<16x8xf32>
    %72 = vector.extract_strided_slice %28 {offsets = [0, 80], sizes = [16, 8], strides = [1, 1]} : vector<16x96xf32> to vector<16x8xf32>
    %cst_30 = arith.constant dense<0.000000e+00> : vector<16x16xf32>
    %73 = tpu.matmul %70, %71, %cst_30 {dimension_numbers = #tpu.dot_dimension_numbers<[1], [1], [0], [0], [0, 0, 1, 0], [], []>} : vector<16x8xf32>, vector<16x8xf32>, vector<16x16xf32> -> vector<16x16xf32>
    %cst_31 = arith.constant 0.353553385 : f32
    %74 = vector.broadcast %cst_31 : f32 to vector<16x16xf32>
    %75 = arith.mulf %73, %74 : vector<16x16xf32>
    %76 = arith.addf %75, %23 : vector<16x16xf32>
    %cst_32 = arith.constant dense<0xFF800000> : vector<16xf32>
    %77 = vector.multi_reduction <maximumf>, %76, %cst_32 [1] : vector<16x16xf32> to vector<16xf32>
    %78 = vector.shape_cast %77 : vector<16xf32> to vector<16x1xf32>
    %79 = vector.broadcast %78 : vector<16x1xf32> to vector<16x16xf32>
    %80 = arith.subf %76, %79 : vector<16x16xf32>
    %81 = math.exp %80 : vector<16x16xf32>
    %cst_33 = arith.constant dense<0.000000e+00> : vector<16xf32>
    %82 = vector.multi_reduction <add>, %81, %cst_33 [1] : vector<16x16xf32> to vector<16xf32>
    %83 = vector.shape_cast %82 : vector<16xf32> to vector<16x1xf32>
    %84 = tpu.reciprocal %83 {approx = true} : vector<16x1xf32> -> vector<16x1xf32>
    %85 = vector.broadcast %84 : vector<16x1xf32> to vector<16x16xf32>
    %86 = arith.mulf %81, %85 : vector<16x16xf32>
    %cst_34 = arith.constant dense<0.000000e+00> : vector<16x8xf32>
    %87 = tpu.matmul %86, %72, %cst_34 {dimension_numbers = #tpu.dot_dimension_numbers<[1], [0], [0], [1], [0, 0, 1, 1], [], []>} : vector<16x16xf32>, vector<16x8xf32>, vector<16x8xf32> -> vector<16x8xf32>
    %c224 = arith.constant 224 : index
    %c0_35 = arith.constant 0 : index
    %88 = vector.load %arg1[%c224, %c0_35] : memref<648x128xf32, #tpu.memory_space<vmem>>, vector<8x32xf32>
    %cst_36 = arith.constant dense<0.000000e+00> : vector<16x32xf32>
    %89 = tpu.matmul %87, %88, %cst_36 {dimension_numbers = #tpu.dot_dimension_numbers<[1], [0], [0], [1], [0, 0, 1, 1], [], []>} : vector<16x8xf32>, vector<8x32xf32>, vector<16x32xf32> -> vector<16x32xf32>
    %90 = arith.addf %69, %89 : vector<16x32xf32>
    %91 = vector.extract_strided_slice %28 {offsets = [0, 24], sizes = [16, 8], strides = [1, 1]} : vector<16x96xf32> to vector<16x8xf32>
    %92 = vector.extract_strided_slice %28 {offsets = [0, 56], sizes = [16, 8], strides = [1, 1]} : vector<16x96xf32> to vector<16x8xf32>
    %93 = vector.extract_strided_slice %28 {offsets = [0, 88], sizes = [16, 8], strides = [1, 1]} : vector<16x96xf32> to vector<16x8xf32>
    %cst_37 = arith.constant dense<0.000000e+00> : vector<16x16xf32>
    %94 = tpu.matmul %91, %92, %cst_37 {dimension_numbers = #tpu.dot_dimension_numbers<[1], [1], [0], [0], [0, 0, 1, 0], [], []>} : vector<16x8xf32>, vector<16x8xf32>, vector<16x16xf32> -> vector<16x16xf32>
    %cst_38 = arith.constant 0.353553385 : f32
    %95 = vector.broadcast %cst_38 : f32 to vector<16x16xf32>
    %96 = arith.mulf %94, %95 : vector<16x16xf32>
    %97 = arith.addf %96, %23 : vector<16x16xf32>
    %cst_39 = arith.constant dense<0xFF800000> : vector<16xf32>
    %98 = vector.multi_reduction <maximumf>, %97, %cst_39 [1] : vector<16x16xf32> to vector<16xf32>
    %99 = vector.shape_cast %98 : vector<16xf32> to vector<16x1xf32>
    %100 = vector.broadcast %99 : vector<16x1xf32> to vector<16x16xf32>
    %101 = arith.subf %97, %100 : vector<16x16xf32>
    %102 = math.exp %101 : vector<16x16xf32>
    %cst_40 = arith.constant dense<0.000000e+00> : vector<16xf32>
    %103 = vector.multi_reduction <add>, %102, %cst_40 [1] : vector<16x16xf32> to vector<16xf32>
    %104 = vector.shape_cast %103 : vector<16xf32> to vector<16x1xf32>
    %105 = tpu.reciprocal %104 {approx = true} : vector<16x1xf32> -> vector<16x1xf32>
    %106 = vector.broadcast %105 : vector<16x1xf32> to vector<16x16xf32>
    %107 = arith.mulf %102, %106 : vector<16x16xf32>
    %cst_41 = arith.constant dense<0.000000e+00> : vector<16x8xf32>
    %108 = tpu.matmul %107, %93, %cst_41 {dimension_numbers = #tpu.dot_dimension_numbers<[1], [0], [0], [1], [0, 0, 1, 1], [], []>} : vector<16x16xf32>, vector<16x8xf32>, vector<16x8xf32> -> vector<16x8xf32>
    %c232 = arith.constant 232 : index
    %c0_42 = arith.constant 0 : index
    %109 = vector.load %arg1[%c232, %c0_42] : memref<648x128xf32, #tpu.memory_space<vmem>>, vector<8x32xf32>
    %cst_43 = arith.constant dense<0.000000e+00> : vector<16x32xf32>
    %110 = tpu.matmul %108, %109, %cst_43 {dimension_numbers = #tpu.dot_dimension_numbers<[1], [0], [0], [1], [0, 0, 1, 1], [], []>} : vector<16x8xf32>, vector<8x32xf32>, vector<16x32xf32> -> vector<16x32xf32>
    %111 = arith.addf %90, %110 : vector<16x32xf32>
    %c612 = arith.constant 612 : index
    %c0_44 = arith.constant 0 : index
    %112 = vector.load %arg1[%c612, %c0_44] : memref<648x128xf32, #tpu.memory_space<vmem>>, vector<1x32xf32>
    %113 = vector.broadcast %112 : vector<1x32xf32> to vector<16x32xf32>
    %114 = arith.addf %111, %113 : vector<16x32xf32>
    %115 = arith.addf %22, %114 : vector<16x32xf32>
    %c618 = arith.constant 618 : index
    %c0_45 = arith.constant 0 : index
    %116 = vector.load %arg1[%c618, %c0_45] : memref<648x128xf32, #tpu.memory_space<vmem>>, vector<1x32xf32>
    %c619 = arith.constant 619 : index
    %c0_46 = arith.constant 0 : index
    %117 = vector.load %arg1[%c619, %c0_46] : memref<648x128xf32, #tpu.memory_space<vmem>>, vector<1x32xf32>
    %cst_47 = arith.constant dense<0.000000e+00> : vector<16xf32>
    %118 = vector.multi_reduction <add>, %115, %cst_47 [1] : vector<16x32xf32> to vector<16xf32>
    %119 = vector.shape_cast %118 : vector<16xf32> to vector<16x1xf32>
    %cst_48 = arith.constant 3.200000e+01 : f32
    %120 = vector.broadcast %cst_48 : f32 to vector<16x1xf32>
    %121 = arith.divf %119, %120 : vector<16x1xf32>
    %122 = vector.broadcast %121 : vector<16x1xf32> to vector<16x32xf32>
    %123 = arith.subf %115, %122 : vector<16x32xf32>
    %124 = arith.mulf %123, %123 : vector<16x32xf32>
    %cst_49 = arith.constant dense<0.000000e+00> : vector<16xf32>
    %125 = vector.multi_reduction <add>, %124, %cst_49 [1] : vector<16x32xf32> to vector<16xf32>
    %126 = vector.shape_cast %125 : vector<16xf32> to vector<16x1xf32>
    %cst_50 = arith.constant 3.200000e+01 : f32
    %127 = vector.broadcast %cst_50 : f32 to vector<16x1xf32>
    %128 = arith.divf %126, %127 : vector<16x1xf32>
    %129 = vector.broadcast %121 : vector<16x1xf32> to vector<16x32xf32>
    %130 = arith.subf %115, %129 : vector<16x32xf32>
    %cst_51 = arith.constant 9.99999974E-6 : f32
    %131 = vector.broadcast %cst_51 : f32 to vector<16x1xf32>
    %132 = arith.addf %128, %131 : vector<16x1xf32>
    %133 = math.rsqrt %132 : vector<16x1xf32>
    %134 = vector.broadcast %133 : vector<16x1xf32> to vector<16x32xf32>
    %135 = arith.mulf %130, %134 : vector<16x32xf32>
    %136 = vector.broadcast %116 : vector<1x32xf32> to vector<16x32xf32>
    %137 = arith.mulf %135, %136 : vector<16x32xf32>
    %138 = vector.broadcast %117 : vector<1x32xf32> to vector<16x32xf32>
    %139 = arith.addf %137, %138 : vector<16x32xf32>
    %c0_52 = arith.constant 0 : index
    %c0_53 = arith.constant 0 : index
    %140 = vector.load %arg2[%c0_52, %c0_53] : memref<64x480xf32, #tpu.memory_space<vmem>>, vector<32x480xf32>
    %cst_54 = arith.constant dense<0.000000e+00> : vector<16x480xf32>
    %141 = tpu.matmul %139, %140, %cst_54 {dimension_numbers = #tpu.dot_dimension_numbers<[1], [0], [0], [1], [0, 0, 1, 1], [], []>} : vector<16x32xf32>, vector<32x480xf32>, vector<16x480xf32> -> vector<16x480xf32>
    %142 = vector.extract_strided_slice %141 {offsets = [0, 0], sizes = [16, 32], strides = [1, 1]} : vector<16x480xf32> to vector<16x32xf32>
    %143 = vector.extract_strided_slice %141 {offsets = [0, 32], sizes = [16, 32], strides = [1, 1]} : vector<16x480xf32> to vector<16x32xf32>
    %144 = vector.extract_strided_slice %141 {offsets = [0, 64], sizes = [16, 32], strides = [1, 1]} : vector<16x480xf32> to vector<16x32xf32>
    %145 = vector.extract_strided_slice %141 {offsets = [0, 96], sizes = [16, 32], strides = [1, 1]} : vector<16x480xf32> to vector<16x32xf32>
    %146 = vector.extract_strided_slice %141 {offsets = [0, 128], sizes = [16, 32], strides = [1, 1]} : vector<16x480xf32> to vector<16x32xf32>
    %147 = vector.extract_strided_slice %141 {offsets = [0, 160], sizes = [16, 32], strides = [1, 1]} : vector<16x480xf32> to vector<16x32xf32>
    %148 = vector.extract_strided_slice %141 {offsets = [0, 192], sizes = [16, 32], strides = [1, 1]} : vector<16x480xf32> to vector<16x32xf32>
    %149 = vector.extract_strided_slice %141 {offsets = [0, 224], sizes = [16, 32], strides = [1, 1]} : vector<16x480xf32> to vector<16x32xf32>
    %150 = vector.extract_strided_slice %141 {offsets = [0, 256], sizes = [16, 32], strides = [1, 1]} : vector<16x480xf32> to vector<16x32xf32>
    %151 = vector.extract_strided_slice %141 {offsets = [0, 288], sizes = [16, 32], strides = [1, 1]} : vector<16x480xf32> to vector<16x32xf32>
    %152 = vector.extract_strided_slice %141 {offsets = [0, 320], sizes = [16, 32], strides = [1, 1]} : vector<16x480xf32> to vector<16x32xf32>
    %153 = vector.extract_strided_slice %141 {offsets = [0, 352], sizes = [16, 32], strides = [1, 1]} : vector<16x480xf32> to vector<16x32xf32>
    %154 = vector.extract_strided_slice %141 {offsets = [0, 384], sizes = [16, 32], strides = [1, 1]} : vector<16x480xf32> to vector<16x32xf32>
    %155 = vector.extract_strided_slice %141 {offsets = [0, 416], sizes = [16, 32], strides = [1, 1]} : vector<16x480xf32> to vector<16x32xf32>
    %156 = vector.extract_strided_slice %141 {offsets = [0, 448], sizes = [16, 32], strides = [1, 1]} : vector<16x480xf32> to vector<16x32xf32>
    %157 = tpu.concatenate %142, %143, %144, %145, %146, %147, %148, %149, %150, %151, %152, %153, %154, %155, %156 in 0 : vector<16x32xf32>, vector<16x32xf32>, vector<16x32xf32>, vector<16x32xf32>, vector<16x32xf32>, vector<16x32xf32>, vector<16x32xf32>, vector<16x32xf32>, vector<16x32xf32>, vector<16x32xf32>, vector<16x32xf32>, vector<16x32xf32>, vector<16x32xf32>, vector<16x32xf32>, vector<16x32xf32> -> vector<240x32xf32>
    %c0_55 = arith.constant 0 : index
    %c0_56 = arith.constant 0 : index
    %158 = vector.load %arg3[%c0_55, %c0_56] : memref<16x240xf32, #tpu.memory_space<vmem>>, vector<16x240xf32>
    %cst_57 = arith.constant dense<0.000000e+00> : vector<16x32xf32>
    %159 = tpu.matmul %158, %157, %cst_57 {dimension_numbers = #tpu.dot_dimension_numbers<[1], [0], [0], [1], [0, 0, 1, 1], [], []>} : vector<16x240xf32>, vector<240x32xf32>, vector<16x32xf32> -> vector<16x32xf32>
    %c613 = arith.constant 613 : index
    %c0_58 = arith.constant 0 : index
    %160 = vector.load %arg1[%c613, %c0_58] : memref<648x128xf32, #tpu.memory_space<vmem>>, vector<1x32xf32>
    %161 = vector.broadcast %160 : vector<1x32xf32> to vector<16x32xf32>
    %162 = arith.addf %159, %161 : vector<16x32xf32>
    %163 = arith.addf %139, %162 : vector<16x32xf32>
    %c614 = arith.constant 614 : index
    %c0_59 = arith.constant 0 : index
    %164 = vector.load %arg1[%c614, %c0_59] : memref<648x128xf32, #tpu.memory_space<vmem>>, vector<1x32xf32>
    %c615 = arith.constant 615 : index
    %c0_60 = arith.constant 0 : index
    %165 = vector.load %arg1[%c615, %c0_60] : memref<648x128xf32, #tpu.memory_space<vmem>>, vector<1x32xf32>
    %cst_61 = arith.constant dense<0.000000e+00> : vector<16xf32>
    %166 = vector.multi_reduction <add>, %163, %cst_61 [1] : vector<16x32xf32> to vector<16xf32>
    %167 = vector.shape_cast %166 : vector<16xf32> to vector<16x1xf32>
    %cst_62 = arith.constant 3.200000e+01 : f32
    %168 = vector.broadcast %cst_62 : f32 to vector<16x1xf32>
    %169 = arith.divf %167, %168 : vector<16x1xf32>
    %170 = vector.broadcast %169 : vector<16x1xf32> to vector<16x32xf32>
    %171 = arith.subf %163, %170 : vector<16x32xf32>
    %172 = arith.mulf %171, %171 : vector<16x32xf32>
    %cst_63 = arith.constant dense<0.000000e+00> : vector<16xf32>
    %173 = vector.multi_reduction <add>, %172, %cst_63 [1] : vector<16x32xf32> to vector<16xf32>
    %174 = vector.shape_cast %173 : vector<16xf32> to vector<16x1xf32>
    %cst_64 = arith.constant 3.200000e+01 : f32
    %175 = vector.broadcast %cst_64 : f32 to vector<16x1xf32>
    %176 = arith.divf %174, %175 : vector<16x1xf32>
    %177 = vector.broadcast %169 : vector<16x1xf32> to vector<16x32xf32>
    %178 = arith.subf %163, %177 : vector<16x32xf32>
    %cst_65 = arith.constant 9.99999974E-6 : f32
    %179 = vector.broadcast %cst_65 : f32 to vector<16x1xf32>
    %180 = arith.addf %176, %179 : vector<16x1xf32>
    %181 = math.rsqrt %180 : vector<16x1xf32>
    %182 = vector.broadcast %181 : vector<16x1xf32> to vector<16x32xf32>
    %183 = arith.mulf %178, %182 : vector<16x32xf32>
    %184 = vector.broadcast %164 : vector<1x32xf32> to vector<16x32xf32>
    %185 = arith.mulf %183, %184 : vector<16x32xf32>
    %186 = vector.broadcast %165 : vector<1x32xf32> to vector<16x32xf32>
    %187 = arith.addf %185, %186 : vector<16x32xf32>
    %188 = arith.addf %139, %187 : vector<16x32xf32>
    %c620 = arith.constant 620 : index
    %c0_66 = arith.constant 0 : index
    %189 = vector.load %arg1[%c620, %c0_66] : memref<648x128xf32, #tpu.memory_space<vmem>>, vector<1x32xf32>
    %c621 = arith.constant 621 : index
    %c0_67 = arith.constant 0 : index
    %190 = vector.load %arg1[%c621, %c0_67] : memref<648x128xf32, #tpu.memory_space<vmem>>, vector<1x32xf32>
    %cst_68 = arith.constant dense<0.000000e+00> : vector<16xf32>
    %191 = vector.multi_reduction <add>, %188, %cst_68 [1] : vector<16x32xf32> to vector<16xf32>
    %192 = vector.shape_cast %191 : vector<16xf32> to vector<16x1xf32>
    %cst_69 = arith.constant 3.200000e+01 : f32
    %193 = vector.broadcast %cst_69 : f32 to vector<16x1xf32>
    %194 = arith.divf %192, %193 : vector<16x1xf32>
    %195 = vector.broadcast %194 : vector<16x1xf32> to vector<16x32xf32>
    %196 = arith.subf %188, %195 : vector<16x32xf32>
    %197 = arith.mulf %196, %196 : vector<16x32xf32>
    %cst_70 = arith.constant dense<0.000000e+00> : vector<16xf32>
    %198 = vector.multi_reduction <add>, %197, %cst_70 [1] : vector<16x32xf32> to vector<16xf32>
    %199 = vector.shape_cast %198 : vector<16xf32> to vector<16x1xf32>
    %cst_71 = arith.constant 3.200000e+01 : f32
    %200 = vector.broadcast %cst_71 : f32 to vector<16x1xf32>
    %201 = arith.divf %199, %200 : vector<16x1xf32>
    %202 = vector.broadcast %194 : vector<16x1xf32> to vector<16x32xf32>
    %203 = arith.subf %188, %202 : vector<16x32xf32>
    %cst_72 = arith.constant 9.99999974E-6 : f32
    %204 = vector.broadcast %cst_72 : f32 to vector<16x1xf32>
    %205 = arith.addf %201, %204 : vector<16x1xf32>
    %206 = math.rsqrt %205 : vector<16x1xf32>
    %207 = vector.broadcast %206 : vector<16x1xf32> to vector<16x32xf32>
    %208 = arith.mulf %203, %207 : vector<16x32xf32>
    %209 = vector.broadcast %189 : vector<1x32xf32> to vector<16x32xf32>
    %210 = arith.mulf %208, %209 : vector<16x32xf32>
    %211 = vector.broadcast %190 : vector<1x32xf32> to vector<16x32xf32>
    %212 = arith.addf %210, %211 : vector<16x32xf32>
    %c240 = arith.constant 240 : index
    %c0_73 = arith.constant 0 : index
    %213 = vector.load %arg1[%c240, %c0_73] : memref<648x128xf32, #tpu.memory_space<vmem>>, vector<32x64xf32>
    %cst_74 = arith.constant dense<0.000000e+00> : vector<16x64xf32>
    %214 = tpu.matmul %212, %213, %cst_74 {dimension_numbers = #tpu.dot_dimension_numbers<[1], [0], [0], [1], [0, 0, 1, 1], [], []>} : vector<16x32xf32>, vector<32x64xf32>, vector<16x64xf32> -> vector<16x64xf32>
    %c616 = arith.constant 616 : index
    %c0_75 = arith.constant 0 : index
    %215 = vector.load %arg1[%c616, %c0_75] : memref<648x128xf32, #tpu.memory_space<vmem>>, vector<1x64xf32>
    %216 = vector.broadcast %215 : vector<1x64xf32> to vector<16x64xf32>
    %217 = arith.addf %214, %216 : vector<16x64xf32>
    %cst_76 = arith.constant 0.000000e+00 : f32
    %218 = vector.broadcast %cst_76 : f32 to vector<16x64xf32>
    %219 = arith.maximumf %217, %218 : vector<16x64xf32>
    %c272 = arith.constant 272 : index
    %c0_77 = arith.constant 0 : index
    %220 = vector.load %arg1[%c272, %c0_77] : memref<648x128xf32, #tpu.memory_space<vmem>>, vector<64x32xf32>
    %cst_78 = arith.constant dense<0.000000e+00> : vector<16x32xf32>
    %221 = tpu.matmul %219, %220, %cst_78 {dimension_numbers = #tpu.dot_dimension_numbers<[1], [0], [0], [1], [0, 0, 1, 1], [], []>} : vector<16x64xf32>, vector<64x32xf32>, vector<16x32xf32> -> vector<16x32xf32>
    %c617 = arith.constant 617 : index
    %c0_79 = arith.constant 0 : index
    %222 = vector.load %arg1[%c617, %c0_79] : memref<648x128xf32, #tpu.memory_space<vmem>>, vector<1x32xf32>
    %223 = vector.broadcast %222 : vector<1x32xf32> to vector<16x32xf32>
    %224 = arith.addf %221, %223 : vector<16x32xf32>
    %225 = arith.addf %212, %224 : vector<16x32xf32>
    %c622 = arith.constant 622 : index
    %c0_80 = arith.constant 0 : index
    %226 = vector.load %arg1[%c622, %c0_80] : memref<648x128xf32, #tpu.memory_space<vmem>>, vector<1x32xf32>
    %c623 = arith.constant 623 : index
    %c0_81 = arith.constant 0 : index
    %227 = vector.load %arg1[%c623, %c0_81] : memref<648x128xf32, #tpu.memory_space<vmem>>, vector<1x32xf32>
    %cst_82 = arith.constant dense<0.000000e+00> : vector<16xf32>
    %228 = vector.multi_reduction <add>, %225, %cst_82 [1] : vector<16x32xf32> to vector<16xf32>
    %229 = vector.shape_cast %228 : vector<16xf32> to vector<16x1xf32>
    %cst_83 = arith.constant 3.200000e+01 : f32
    %230 = vector.broadcast %cst_83 : f32 to vector<16x1xf32>
    %231 = arith.divf %229, %230 : vector<16x1xf32>
    %232 = vector.broadcast %231 : vector<16x1xf32> to vector<16x32xf32>
    %233 = arith.subf %225, %232 : vector<16x32xf32>
    %234 = arith.mulf %233, %233 : vector<16x32xf32>
    %cst_84 = arith.constant dense<0.000000e+00> : vector<16xf32>
    %235 = vector.multi_reduction <add>, %234, %cst_84 [1] : vector<16x32xf32> to vector<16xf32>
    %236 = vector.shape_cast %235 : vector<16xf32> to vector<16x1xf32>
    %cst_85 = arith.constant 3.200000e+01 : f32
    %237 = vector.broadcast %cst_85 : f32 to vector<16x1xf32>
    %238 = arith.divf %236, %237 : vector<16x1xf32>
    %239 = vector.broadcast %231 : vector<16x1xf32> to vector<16x32xf32>
    %240 = arith.subf %225, %239 : vector<16x32xf32>
    %cst_86 = arith.constant 9.99999974E-6 : f32
    %241 = vector.broadcast %cst_86 : f32 to vector<16x1xf32>
    %242 = arith.addf %238, %241 : vector<16x1xf32>
    %243 = math.rsqrt %242 : vector<16x1xf32>
    %244 = vector.broadcast %243 : vector<16x1xf32> to vector<16x32xf32>
    %245 = arith.mulf %240, %244 : vector<16x32xf32>
    %246 = vector.broadcast %226 : vector<1x32xf32> to vector<16x32xf32>
    %247 = arith.mulf %245, %246 : vector<16x32xf32>
    %248 = vector.broadcast %227 : vector<1x32xf32> to vector<16x32xf32>
    %249 = arith.addf %247, %248 : vector<16x32xf32>
    %c336 = arith.constant 336 : index
    %c0_87 = arith.constant 0 : index
    %250 = vector.load %arg1[%c336, %c0_87] : memref<648x128xf32, #tpu.memory_space<vmem>>, vector<32x8xf32>
    %cst_88 = arith.constant dense<0.000000e+00> : vector<16x8xf32>
    %251 = tpu.matmul %249, %250, %cst_88 {dimension_numbers = #tpu.dot_dimension_numbers<[1], [0], [0], [1], [0, 0, 1, 1], [], []>} : vector<16x32xf32>, vector<32x8xf32>, vector<16x8xf32> -> vector<16x8xf32>
    %c624 = arith.constant 624 : index
    %c0_89 = arith.constant 0 : index
    %252 = vector.load %arg1[%c624, %c0_89] : memref<648x128xf32, #tpu.memory_space<vmem>>, vector<1x8xf32>
    %253 = vector.broadcast %252 : vector<1x8xf32> to vector<16x8xf32>
    %254 = arith.addf %251, %253 : vector<16x8xf32>
    %cst_90 = arith.constant 0.000000e+00 : f32
    %255 = vector.broadcast %cst_90 : f32 to vector<16x8xf32>
    %256 = arith.maximumf %254, %255 : vector<16x8xf32>
    %c368 = arith.constant 368 : index
    %c0_91 = arith.constant 0 : index
    %257 = vector.load %arg1[%c368, %c0_91] : memref<648x128xf32, #tpu.memory_space<vmem>>, vector<8x32xf32>
    %cst_92 = arith.constant dense<0.000000e+00> : vector<16x32xf32>
    %258 = tpu.matmul %256, %257, %cst_92 {dimension_numbers = #tpu.dot_dimension_numbers<[1], [0], [0], [1], [0, 0, 1, 1], [], []>} : vector<16x8xf32>, vector<8x32xf32>, vector<16x32xf32> -> vector<16x32xf32>
    %259 = arith.addf %249, %258 : vector<16x32xf32>
    %c625 = arith.constant 625 : index
    %c0_93 = arith.constant 0 : index
    %260 = vector.load %arg1[%c625, %c0_93] : memref<648x128xf32, #tpu.memory_space<vmem>>, vector<1x32xf32>
    %261 = vector.broadcast %260 : vector<1x32xf32> to vector<16x32xf32>
    %262 = arith.addf %259, %261 : vector<16x32xf32>
    %c376 = arith.constant 376 : index
    %c0_94 = arith.constant 0 : index
    %263 = vector.load %arg1[%c376, %c0_94] : memref<648x128xf32, #tpu.memory_space<vmem>>, vector<32x96xf32>
    %cst_95 = arith.constant dense<0.000000e+00> : vector<16x96xf32>
    %264 = tpu.matmul %262, %263, %cst_95 {dimension_numbers = #tpu.dot_dimension_numbers<[1], [0], [0], [1], [0, 0, 1, 1], [], []>} : vector<16x32xf32>, vector<32x96xf32>, vector<16x96xf32> -> vector<16x96xf32>
    %c626 = arith.constant 626 : index
    %c0_96 = arith.constant 0 : index
    %265 = vector.load %arg1[%c626, %c0_96] : memref<648x128xf32, #tpu.memory_space<vmem>>, vector<1x96xf32>
    %266 = vector.broadcast %265 : vector<1x96xf32> to vector<16x96xf32>
    %267 = arith.addf %264, %266 : vector<16x96xf32>
    %268 = vector.extract_strided_slice %267 {offsets = [0, 0], sizes = [16, 8], strides = [1, 1]} : vector<16x96xf32> to vector<16x8xf32>
    %269 = vector.extract_strided_slice %267 {offsets = [0, 32], sizes = [16, 8], strides = [1, 1]} : vector<16x96xf32> to vector<16x8xf32>
    %270 = vector.extract_strided_slice %267 {offsets = [0, 64], sizes = [16, 8], strides = [1, 1]} : vector<16x96xf32> to vector<16x8xf32>
    %cst_97 = arith.constant dense<0.000000e+00> : vector<16x16xf32>
    %271 = tpu.matmul %268, %269, %cst_97 {dimension_numbers = #tpu.dot_dimension_numbers<[1], [1], [0], [0], [0, 0, 1, 0], [], []>} : vector<16x8xf32>, vector<16x8xf32>, vector<16x16xf32> -> vector<16x16xf32>
    %cst_98 = arith.constant 0.353553385 : f32
    %272 = vector.broadcast %cst_98 : f32 to vector<16x16xf32>
    %273 = arith.mulf %271, %272 : vector<16x16xf32>
    %274 = arith.addf %273, %23 : vector<16x16xf32>
    %cst_99 = arith.constant dense<0xFF800000> : vector<16xf32>
    %275 = vector.multi_reduction <maximumf>, %274, %cst_99 [1] : vector<16x16xf32> to vector<16xf32>
    %276 = vector.shape_cast %275 : vector<16xf32> to vector<16x1xf32>
    %277 = vector.broadcast %276 : vector<16x1xf32> to vector<16x16xf32>
    %278 = arith.subf %274, %277 : vector<16x16xf32>
    %279 = math.exp %278 : vector<16x16xf32>
    %cst_100 = arith.constant dense<0.000000e+00> : vector<16xf32>
    %280 = vector.multi_reduction <add>, %279, %cst_100 [1] : vector<16x16xf32> to vector<16xf32>
    %281 = vector.shape_cast %280 : vector<16xf32> to vector<16x1xf32>
    %282 = tpu.reciprocal %281 {approx = true} : vector<16x1xf32> -> vector<16x1xf32>
    %283 = vector.broadcast %282 : vector<16x1xf32> to vector<16x16xf32>
    %284 = arith.mulf %279, %283 : vector<16x16xf32>
    %cst_101 = arith.constant dense<0.000000e+00> : vector<16x8xf32>
    %285 = tpu.matmul %284, %270, %cst_101 {dimension_numbers = #tpu.dot_dimension_numbers<[1], [0], [0], [1], [0, 0, 1, 1], [], []>} : vector<16x16xf32>, vector<16x8xf32>, vector<16x8xf32> -> vector<16x8xf32>
    %c408 = arith.constant 408 : index
    %c0_102 = arith.constant 0 : index
    %286 = vector.load %arg1[%c408, %c0_102] : memref<648x128xf32, #tpu.memory_space<vmem>>, vector<8x32xf32>
    %cst_103 = arith.constant dense<0.000000e+00> : vector<16x32xf32>
    %287 = tpu.matmul %285, %286, %cst_103 {dimension_numbers = #tpu.dot_dimension_numbers<[1], [0], [0], [1], [0, 0, 1, 1], [], []>} : vector<16x8xf32>, vector<8x32xf32>, vector<16x32xf32> -> vector<16x32xf32>
    %288 = vector.extract_strided_slice %267 {offsets = [0, 8], sizes = [16, 8], strides = [1, 1]} : vector<16x96xf32> to vector<16x8xf32>
    %289 = vector.extract_strided_slice %267 {offsets = [0, 40], sizes = [16, 8], strides = [1, 1]} : vector<16x96xf32> to vector<16x8xf32>
    %290 = vector.extract_strided_slice %267 {offsets = [0, 72], sizes = [16, 8], strides = [1, 1]} : vector<16x96xf32> to vector<16x8xf32>
    %cst_104 = arith.constant dense<0.000000e+00> : vector<16x16xf32>
    %291 = tpu.matmul %288, %289, %cst_104 {dimension_numbers = #tpu.dot_dimension_numbers<[1], [1], [0], [0], [0, 0, 1, 0], [], []>} : vector<16x8xf32>, vector<16x8xf32>, vector<16x16xf32> -> vector<16x16xf32>
    %cst_105 = arith.constant 0.353553385 : f32
    %292 = vector.broadcast %cst_105 : f32 to vector<16x16xf32>
    %293 = arith.mulf %291, %292 : vector<16x16xf32>
    %294 = arith.addf %293, %23 : vector<16x16xf32>
    %cst_106 = arith.constant dense<0xFF800000> : vector<16xf32>
    %295 = vector.multi_reduction <maximumf>, %294, %cst_106 [1] : vector<16x16xf32> to vector<16xf32>
    %296 = vector.shape_cast %295 : vector<16xf32> to vector<16x1xf32>
    %297 = vector.broadcast %296 : vector<16x1xf32> to vector<16x16xf32>
    %298 = arith.subf %294, %297 : vector<16x16xf32>
    %299 = math.exp %298 : vector<16x16xf32>
    %cst_107 = arith.constant dense<0.000000e+00> : vector<16xf32>
    %300 = vector.multi_reduction <add>, %299, %cst_107 [1] : vector<16x16xf32> to vector<16xf32>
    %301 = vector.shape_cast %300 : vector<16xf32> to vector<16x1xf32>
    %302 = tpu.reciprocal %301 {approx = true} : vector<16x1xf32> -> vector<16x1xf32>
    %303 = vector.broadcast %302 : vector<16x1xf32> to vector<16x16xf32>
    %304 = arith.mulf %299, %303 : vector<16x16xf32>
    %cst_108 = arith.constant dense<0.000000e+00> : vector<16x8xf32>
    %305 = tpu.matmul %304, %290, %cst_108 {dimension_numbers = #tpu.dot_dimension_numbers<[1], [0], [0], [1], [0, 0, 1, 1], [], []>} : vector<16x16xf32>, vector<16x8xf32>, vector<16x8xf32> -> vector<16x8xf32>
    %c416 = arith.constant 416 : index
    %c0_109 = arith.constant 0 : index
    %306 = vector.load %arg1[%c416, %c0_109] : memref<648x128xf32, #tpu.memory_space<vmem>>, vector<8x32xf32>
    %cst_110 = arith.constant dense<0.000000e+00> : vector<16x32xf32>
    %307 = tpu.matmul %305, %306, %cst_110 {dimension_numbers = #tpu.dot_dimension_numbers<[1], [0], [0], [1], [0, 0, 1, 1], [], []>} : vector<16x8xf32>, vector<8x32xf32>, vector<16x32xf32> -> vector<16x32xf32>
    %308 = arith.addf %287, %307 : vector<16x32xf32>
    %309 = vector.extract_strided_slice %267 {offsets = [0, 16], sizes = [16, 8], strides = [1, 1]} : vector<16x96xf32> to vector<16x8xf32>
    %310 = vector.extract_strided_slice %267 {offsets = [0, 48], sizes = [16, 8], strides = [1, 1]} : vector<16x96xf32> to vector<16x8xf32>
    %311 = vector.extract_strided_slice %267 {offsets = [0, 80], sizes = [16, 8], strides = [1, 1]} : vector<16x96xf32> to vector<16x8xf32>
    %cst_111 = arith.constant dense<0.000000e+00> : vector<16x16xf32>
    %312 = tpu.matmul %309, %310, %cst_111 {dimension_numbers = #tpu.dot_dimension_numbers<[1], [1], [0], [0], [0, 0, 1, 0], [], []>} : vector<16x8xf32>, vector<16x8xf32>, vector<16x16xf32> -> vector<16x16xf32>
    %cst_112 = arith.constant 0.353553385 : f32
    %313 = vector.broadcast %cst_112 : f32 to vector<16x16xf32>
    %314 = arith.mulf %312, %313 : vector<16x16xf32>
    %315 = arith.addf %314, %23 : vector<16x16xf32>
    %cst_113 = arith.constant dense<0xFF800000> : vector<16xf32>
    %316 = vector.multi_reduction <maximumf>, %315, %cst_113 [1] : vector<16x16xf32> to vector<16xf32>
    %317 = vector.shape_cast %316 : vector<16xf32> to vector<16x1xf32>
    %318 = vector.broadcast %317 : vector<16x1xf32> to vector<16x16xf32>
    %319 = arith.subf %315, %318 : vector<16x16xf32>
    %320 = math.exp %319 : vector<16x16xf32>
    %cst_114 = arith.constant dense<0.000000e+00> : vector<16xf32>
    %321 = vector.multi_reduction <add>, %320, %cst_114 [1] : vector<16x16xf32> to vector<16xf32>
    %322 = vector.shape_cast %321 : vector<16xf32> to vector<16x1xf32>
    %323 = tpu.reciprocal %322 {approx = true} : vector<16x1xf32> -> vector<16x1xf32>
    %324 = vector.broadcast %323 : vector<16x1xf32> to vector<16x16xf32>
    %325 = arith.mulf %320, %324 : vector<16x16xf32>
    %cst_115 = arith.constant dense<0.000000e+00> : vector<16x8xf32>
    %326 = tpu.matmul %325, %311, %cst_115 {dimension_numbers = #tpu.dot_dimension_numbers<[1], [0], [0], [1], [0, 0, 1, 1], [], []>} : vector<16x16xf32>, vector<16x8xf32>, vector<16x8xf32> -> vector<16x8xf32>
    %c424 = arith.constant 424 : index
    %c0_116 = arith.constant 0 : index
    %327 = vector.load %arg1[%c424, %c0_116] : memref<648x128xf32, #tpu.memory_space<vmem>>, vector<8x32xf32>
    %cst_117 = arith.constant dense<0.000000e+00> : vector<16x32xf32>
    %328 = tpu.matmul %326, %327, %cst_117 {dimension_numbers = #tpu.dot_dimension_numbers<[1], [0], [0], [1], [0, 0, 1, 1], [], []>} : vector<16x8xf32>, vector<8x32xf32>, vector<16x32xf32> -> vector<16x32xf32>
    %329 = arith.addf %308, %328 : vector<16x32xf32>
    %330 = vector.extract_strided_slice %267 {offsets = [0, 24], sizes = [16, 8], strides = [1, 1]} : vector<16x96xf32> to vector<16x8xf32>
    %331 = vector.extract_strided_slice %267 {offsets = [0, 56], sizes = [16, 8], strides = [1, 1]} : vector<16x96xf32> to vector<16x8xf32>
    %332 = vector.extract_strided_slice %267 {offsets = [0, 88], sizes = [16, 8], strides = [1, 1]} : vector<16x96xf32> to vector<16x8xf32>
    %cst_118 = arith.constant dense<0.000000e+00> : vector<16x16xf32>
    %333 = tpu.matmul %330, %331, %cst_118 {dimension_numbers = #tpu.dot_dimension_numbers<[1], [1], [0], [0], [0, 0, 1, 0], [], []>} : vector<16x8xf32>, vector<16x8xf32>, vector<16x16xf32> -> vector<16x16xf32>
    %cst_119 = arith.constant 0.353553385 : f32
    %334 = vector.broadcast %cst_119 : f32 to vector<16x16xf32>
    %335 = arith.mulf %333, %334 : vector<16x16xf32>
    %336 = arith.addf %335, %23 : vector<16x16xf32>
    %cst_120 = arith.constant dense<0xFF800000> : vector<16xf32>
    %337 = vector.multi_reduction <maximumf>, %336, %cst_120 [1] : vector<16x16xf32> to vector<16xf32>
    %338 = vector.shape_cast %337 : vector<16xf32> to vector<16x1xf32>
    %339 = vector.broadcast %338 : vector<16x1xf32> to vector<16x16xf32>
    %340 = arith.subf %336, %339 : vector<16x16xf32>
    %341 = math.exp %340 : vector<16x16xf32>
    %cst_121 = arith.constant dense<0.000000e+00> : vector<16xf32>
    %342 = vector.multi_reduction <add>, %341, %cst_121 [1] : vector<16x16xf32> to vector<16xf32>
    %343 = vector.shape_cast %342 : vector<16xf32> to vector<16x1xf32>
    %344 = tpu.reciprocal %343 {approx = true} : vector<16x1xf32> -> vector<16x1xf32>
    %345 = vector.broadcast %344 : vector<16x1xf32> to vector<16x16xf32>
    %346 = arith.mulf %341, %345 : vector<16x16xf32>
    %cst_122 = arith.constant dense<0.000000e+00> : vector<16x8xf32>
    %347 = tpu.matmul %346, %332, %cst_122 {dimension_numbers = #tpu.dot_dimension_numbers<[1], [0], [0], [1], [0, 0, 1, 1], [], []>} : vector<16x16xf32>, vector<16x8xf32>, vector<16x8xf32> -> vector<16x8xf32>
    %c432 = arith.constant 432 : index
    %c0_123 = arith.constant 0 : index
    %348 = vector.load %arg1[%c432, %c0_123] : memref<648x128xf32, #tpu.memory_space<vmem>>, vector<8x32xf32>
    %cst_124 = arith.constant dense<0.000000e+00> : vector<16x32xf32>
    %349 = tpu.matmul %347, %348, %cst_124 {dimension_numbers = #tpu.dot_dimension_numbers<[1], [0], [0], [1], [0, 0, 1, 1], [], []>} : vector<16x8xf32>, vector<8x32xf32>, vector<16x32xf32> -> vector<16x32xf32>
    %350 = arith.addf %329, %349 : vector<16x32xf32>
    %c627 = arith.constant 627 : index
    %c0_125 = arith.constant 0 : index
    %351 = vector.load %arg1[%c627, %c0_125] : memref<648x128xf32, #tpu.memory_space<vmem>>, vector<1x32xf32>
    %352 = vector.broadcast %351 : vector<1x32xf32> to vector<16x32xf32>
    %353 = arith.addf %350, %352 : vector<16x32xf32>
    %354 = arith.addf %262, %353 : vector<16x32xf32>
    %c633 = arith.constant 633 : index
    %c0_126 = arith.constant 0 : index
    %355 = vector.load %arg1[%c633, %c0_126] : memref<648x128xf32, #tpu.memory_space<vmem>>, vector<1x32xf32>
    %c634 = arith.constant 634 : index
    %c0_127 = arith.constant 0 : index
    %356 = vector.load %arg1[%c634, %c0_127] : memref<648x128xf32, #tpu.memory_space<vmem>>, vector<1x32xf32>
    %cst_128 = arith.constant dense<0.000000e+00> : vector<16xf32>
    %357 = vector.multi_reduction <add>, %354, %cst_128 [1] : vector<16x32xf32> to vector<16xf32>
    %358 = vector.shape_cast %357 : vector<16xf32> to vector<16x1xf32>
    %cst_129 = arith.constant 3.200000e+01 : f32
    %359 = vector.broadcast %cst_129 : f32 to vector<16x1xf32>
    %360 = arith.divf %358, %359 : vector<16x1xf32>
    %361 = vector.broadcast %360 : vector<16x1xf32> to vector<16x32xf32>
    %362 = arith.subf %354, %361 : vector<16x32xf32>
    %363 = arith.mulf %362, %362 : vector<16x32xf32>
    %cst_130 = arith.constant dense<0.000000e+00> : vector<16xf32>
    %364 = vector.multi_reduction <add>, %363, %cst_130 [1] : vector<16x32xf32> to vector<16xf32>
    %365 = vector.shape_cast %364 : vector<16xf32> to vector<16x1xf32>
    %cst_131 = arith.constant 3.200000e+01 : f32
    %366 = vector.broadcast %cst_131 : f32 to vector<16x1xf32>
    %367 = arith.divf %365, %366 : vector<16x1xf32>
    %368 = vector.broadcast %360 : vector<16x1xf32> to vector<16x32xf32>
    %369 = arith.subf %354, %368 : vector<16x32xf32>
    %cst_132 = arith.constant 9.99999974E-6 : f32
    %370 = vector.broadcast %cst_132 : f32 to vector<16x1xf32>
    %371 = arith.addf %367, %370 : vector<16x1xf32>
    %372 = math.rsqrt %371 : vector<16x1xf32>
    %373 = vector.broadcast %372 : vector<16x1xf32> to vector<16x32xf32>
    %374 = arith.mulf %369, %373 : vector<16x32xf32>
    %375 = vector.broadcast %355 : vector<1x32xf32> to vector<16x32xf32>
    %376 = arith.mulf %374, %375 : vector<16x32xf32>
    %377 = vector.broadcast %356 : vector<1x32xf32> to vector<16x32xf32>
    %378 = arith.addf %376, %377 : vector<16x32xf32>
    %c32 = arith.constant 32 : index
    %c0_133 = arith.constant 0 : index
    %379 = vector.load %arg2[%c32, %c0_133] : memref<64x480xf32, #tpu.memory_space<vmem>>, vector<32x480xf32>
    %cst_134 = arith.constant dense<0.000000e+00> : vector<16x480xf32>
    %380 = tpu.matmul %378, %379, %cst_134 {dimension_numbers = #tpu.dot_dimension_numbers<[1], [0], [0], [1], [0, 0, 1, 1], [], []>} : vector<16x32xf32>, vector<32x480xf32>, vector<16x480xf32> -> vector<16x480xf32>
    %381 = vector.extract_strided_slice %380 {offsets = [0, 0], sizes = [16, 32], strides = [1, 1]} : vector<16x480xf32> to vector<16x32xf32>
    %382 = vector.extract_strided_slice %380 {offsets = [0, 32], sizes = [16, 32], strides = [1, 1]} : vector<16x480xf32> to vector<16x32xf32>
    %383 = vector.extract_strided_slice %380 {offsets = [0, 64], sizes = [16, 32], strides = [1, 1]} : vector<16x480xf32> to vector<16x32xf32>
    %384 = vector.extract_strided_slice %380 {offsets = [0, 96], sizes = [16, 32], strides = [1, 1]} : vector<16x480xf32> to vector<16x32xf32>
    %385 = vector.extract_strided_slice %380 {offsets = [0, 128], sizes = [16, 32], strides = [1, 1]} : vector<16x480xf32> to vector<16x32xf32>
    %386 = vector.extract_strided_slice %380 {offsets = [0, 160], sizes = [16, 32], strides = [1, 1]} : vector<16x480xf32> to vector<16x32xf32>
    %387 = vector.extract_strided_slice %380 {offsets = [0, 192], sizes = [16, 32], strides = [1, 1]} : vector<16x480xf32> to vector<16x32xf32>
    %388 = vector.extract_strided_slice %380 {offsets = [0, 224], sizes = [16, 32], strides = [1, 1]} : vector<16x480xf32> to vector<16x32xf32>
    %389 = vector.extract_strided_slice %380 {offsets = [0, 256], sizes = [16, 32], strides = [1, 1]} : vector<16x480xf32> to vector<16x32xf32>
    %390 = vector.extract_strided_slice %380 {offsets = [0, 288], sizes = [16, 32], strides = [1, 1]} : vector<16x480xf32> to vector<16x32xf32>
    %391 = vector.extract_strided_slice %380 {offsets = [0, 320], sizes = [16, 32], strides = [1, 1]} : vector<16x480xf32> to vector<16x32xf32>
    %392 = vector.extract_strided_slice %380 {offsets = [0, 352], sizes = [16, 32], strides = [1, 1]} : vector<16x480xf32> to vector<16x32xf32>
    %393 = vector.extract_strided_slice %380 {offsets = [0, 384], sizes = [16, 32], strides = [1, 1]} : vector<16x480xf32> to vector<16x32xf32>
    %394 = vector.extract_strided_slice %380 {offsets = [0, 416], sizes = [16, 32], strides = [1, 1]} : vector<16x480xf32> to vector<16x32xf32>
    %395 = vector.extract_strided_slice %380 {offsets = [0, 448], sizes = [16, 32], strides = [1, 1]} : vector<16x480xf32> to vector<16x32xf32>
    %396 = tpu.concatenate %381, %382, %383, %384, %385, %386, %387, %388, %389, %390, %391, %392, %393, %394, %395 in 0 : vector<16x32xf32>, vector<16x32xf32>, vector<16x32xf32>, vector<16x32xf32>, vector<16x32xf32>, vector<16x32xf32>, vector<16x32xf32>, vector<16x32xf32>, vector<16x32xf32>, vector<16x32xf32>, vector<16x32xf32>, vector<16x32xf32>, vector<16x32xf32>, vector<16x32xf32>, vector<16x32xf32> -> vector<240x32xf32>
    %c0_135 = arith.constant 0 : index
    %c0_136 = arith.constant 0 : index
    %397 = vector.load %arg3[%c0_135, %c0_136] : memref<16x240xf32, #tpu.memory_space<vmem>>, vector<16x240xf32>
    %cst_137 = arith.constant dense<0.000000e+00> : vector<16x32xf32>
    %398 = tpu.matmul %397, %396, %cst_137 {dimension_numbers = #tpu.dot_dimension_numbers<[1], [0], [0], [1], [0, 0, 1, 1], [], []>} : vector<16x240xf32>, vector<240x32xf32>, vector<16x32xf32> -> vector<16x32xf32>
    %c628 = arith.constant 628 : index
    %c0_138 = arith.constant 0 : index
    %399 = vector.load %arg1[%c628, %c0_138] : memref<648x128xf32, #tpu.memory_space<vmem>>, vector<1x32xf32>
    %400 = vector.broadcast %399 : vector<1x32xf32> to vector<16x32xf32>
    %401 = arith.addf %398, %400 : vector<16x32xf32>
    %402 = arith.addf %378, %401 : vector<16x32xf32>
    %c629 = arith.constant 629 : index
    %c0_139 = arith.constant 0 : index
    %403 = vector.load %arg1[%c629, %c0_139] : memref<648x128xf32, #tpu.memory_space<vmem>>, vector<1x32xf32>
    %c630 = arith.constant 630 : index
    %c0_140 = arith.constant 0 : index
    %404 = vector.load %arg1[%c630, %c0_140] : memref<648x128xf32, #tpu.memory_space<vmem>>, vector<1x32xf32>
    %cst_141 = arith.constant dense<0.000000e+00> : vector<16xf32>
    %405 = vector.multi_reduction <add>, %402, %cst_141 [1] : vector<16x32xf32> to vector<16xf32>
    %406 = vector.shape_cast %405 : vector<16xf32> to vector<16x1xf32>
    %cst_142 = arith.constant 3.200000e+01 : f32
    %407 = vector.broadcast %cst_142 : f32 to vector<16x1xf32>
    %408 = arith.divf %406, %407 : vector<16x1xf32>
    %409 = vector.broadcast %408 : vector<16x1xf32> to vector<16x32xf32>
    %410 = arith.subf %402, %409 : vector<16x32xf32>
    %411 = arith.mulf %410, %410 : vector<16x32xf32>
    %cst_143 = arith.constant dense<0.000000e+00> : vector<16xf32>
    %412 = vector.multi_reduction <add>, %411, %cst_143 [1] : vector<16x32xf32> to vector<16xf32>
    %413 = vector.shape_cast %412 : vector<16xf32> to vector<16x1xf32>
    %cst_144 = arith.constant 3.200000e+01 : f32
    %414 = vector.broadcast %cst_144 : f32 to vector<16x1xf32>
    %415 = arith.divf %413, %414 : vector<16x1xf32>
    %416 = vector.broadcast %408 : vector<16x1xf32> to vector<16x32xf32>
    %417 = arith.subf %402, %416 : vector<16x32xf32>
    %cst_145 = arith.constant 9.99999974E-6 : f32
    %418 = vector.broadcast %cst_145 : f32 to vector<16x1xf32>
    %419 = arith.addf %415, %418 : vector<16x1xf32>
    %420 = math.rsqrt %419 : vector<16x1xf32>
    %421 = vector.broadcast %420 : vector<16x1xf32> to vector<16x32xf32>
    %422 = arith.mulf %417, %421 : vector<16x32xf32>
    %423 = vector.broadcast %403 : vector<1x32xf32> to vector<16x32xf32>
    %424 = arith.mulf %422, %423 : vector<16x32xf32>
    %425 = vector.broadcast %404 : vector<1x32xf32> to vector<16x32xf32>
    %426 = arith.addf %424, %425 : vector<16x32xf32>
    %427 = arith.addf %378, %426 : vector<16x32xf32>
    %c635 = arith.constant 635 : index
    %c0_146 = arith.constant 0 : index
    %428 = vector.load %arg1[%c635, %c0_146] : memref<648x128xf32, #tpu.memory_space<vmem>>, vector<1x32xf32>
    %c636 = arith.constant 636 : index
    %c0_147 = arith.constant 0 : index
    %429 = vector.load %arg1[%c636, %c0_147] : memref<648x128xf32, #tpu.memory_space<vmem>>, vector<1x32xf32>
    %cst_148 = arith.constant dense<0.000000e+00> : vector<16xf32>
    %430 = vector.multi_reduction <add>, %427, %cst_148 [1] : vector<16x32xf32> to vector<16xf32>
    %431 = vector.shape_cast %430 : vector<16xf32> to vector<16x1xf32>
    %cst_149 = arith.constant 3.200000e+01 : f32
    %432 = vector.broadcast %cst_149 : f32 to vector<16x1xf32>
    %433 = arith.divf %431, %432 : vector<16x1xf32>
    %434 = vector.broadcast %433 : vector<16x1xf32> to vector<16x32xf32>
    %435 = arith.subf %427, %434 : vector<16x32xf32>
    %436 = arith.mulf %435, %435 : vector<16x32xf32>
    %cst_150 = arith.constant dense<0.000000e+00> : vector<16xf32>
    %437 = vector.multi_reduction <add>, %436, %cst_150 [1] : vector<16x32xf32> to vector<16xf32>
    %438 = vector.shape_cast %437 : vector<16xf32> to vector<16x1xf32>
    %cst_151 = arith.constant 3.200000e+01 : f32
    %439 = vector.broadcast %cst_151 : f32 to vector<16x1xf32>
    %440 = arith.divf %438, %439 : vector<16x1xf32>
    %441 = vector.broadcast %433 : vector<16x1xf32> to vector<16x32xf32>
    %442 = arith.subf %427, %441 : vector<16x32xf32>
    %cst_152 = arith.constant 9.99999974E-6 : f32
    %443 = vector.broadcast %cst_152 : f32 to vector<16x1xf32>
    %444 = arith.addf %440, %443 : vector<16x1xf32>
    %445 = math.rsqrt %444 : vector<16x1xf32>
    %446 = vector.broadcast %445 : vector<16x1xf32> to vector<16x32xf32>
    %447 = arith.mulf %442, %446 : vector<16x32xf32>
    %448 = vector.broadcast %428 : vector<1x32xf32> to vector<16x32xf32>
    %449 = arith.mulf %447, %448 : vector<16x32xf32>
    %450 = vector.broadcast %429 : vector<1x32xf32> to vector<16x32xf32>
    %451 = arith.addf %449, %450 : vector<16x32xf32>
    %c440 = arith.constant 440 : index
    %c0_153 = arith.constant 0 : index
    %452 = vector.load %arg1[%c440, %c0_153] : memref<648x128xf32, #tpu.memory_space<vmem>>, vector<32x64xf32>
    %cst_154 = arith.constant dense<0.000000e+00> : vector<16x64xf32>
    %453 = tpu.matmul %451, %452, %cst_154 {dimension_numbers = #tpu.dot_dimension_numbers<[1], [0], [0], [1], [0, 0, 1, 1], [], []>} : vector<16x32xf32>, vector<32x64xf32>, vector<16x64xf32> -> vector<16x64xf32>
    %c631 = arith.constant 631 : index
    %c0_155 = arith.constant 0 : index
    %454 = vector.load %arg1[%c631, %c0_155] : memref<648x128xf32, #tpu.memory_space<vmem>>, vector<1x64xf32>
    %455 = vector.broadcast %454 : vector<1x64xf32> to vector<16x64xf32>
    %456 = arith.addf %453, %455 : vector<16x64xf32>
    %cst_156 = arith.constant 0.000000e+00 : f32
    %457 = vector.broadcast %cst_156 : f32 to vector<16x64xf32>
    %458 = arith.maximumf %456, %457 : vector<16x64xf32>
    %c472 = arith.constant 472 : index
    %c0_157 = arith.constant 0 : index
    %459 = vector.load %arg1[%c472, %c0_157] : memref<648x128xf32, #tpu.memory_space<vmem>>, vector<64x32xf32>
    %cst_158 = arith.constant dense<0.000000e+00> : vector<16x32xf32>
    %460 = tpu.matmul %458, %459, %cst_158 {dimension_numbers = #tpu.dot_dimension_numbers<[1], [0], [0], [1], [0, 0, 1, 1], [], []>} : vector<16x64xf32>, vector<64x32xf32>, vector<16x32xf32> -> vector<16x32xf32>
    %c632 = arith.constant 632 : index
    %c0_159 = arith.constant 0 : index
    %461 = vector.load %arg1[%c632, %c0_159] : memref<648x128xf32, #tpu.memory_space<vmem>>, vector<1x32xf32>
    %462 = vector.broadcast %461 : vector<1x32xf32> to vector<16x32xf32>
    %463 = arith.addf %460, %462 : vector<16x32xf32>
    %464 = arith.addf %451, %463 : vector<16x32xf32>
    %c637 = arith.constant 637 : index
    %c0_160 = arith.constant 0 : index
    %465 = vector.load %arg1[%c637, %c0_160] : memref<648x128xf32, #tpu.memory_space<vmem>>, vector<1x32xf32>
    %c638 = arith.constant 638 : index
    %c0_161 = arith.constant 0 : index
    %466 = vector.load %arg1[%c638, %c0_161] : memref<648x128xf32, #tpu.memory_space<vmem>>, vector<1x32xf32>
    %cst_162 = arith.constant dense<0.000000e+00> : vector<16xf32>
    %467 = vector.multi_reduction <add>, %464, %cst_162 [1] : vector<16x32xf32> to vector<16xf32>
    %468 = vector.shape_cast %467 : vector<16xf32> to vector<16x1xf32>
    %cst_163 = arith.constant 3.200000e+01 : f32
    %469 = vector.broadcast %cst_163 : f32 to vector<16x1xf32>
    %470 = arith.divf %468, %469 : vector<16x1xf32>
    %471 = vector.broadcast %470 : vector<16x1xf32> to vector<16x32xf32>
    %472 = arith.subf %464, %471 : vector<16x32xf32>
    %473 = arith.mulf %472, %472 : vector<16x32xf32>
    %cst_164 = arith.constant dense<0.000000e+00> : vector<16xf32>
    %474 = vector.multi_reduction <add>, %473, %cst_164 [1] : vector<16x32xf32> to vector<16xf32>
    %475 = vector.shape_cast %474 : vector<16xf32> to vector<16x1xf32>
    %cst_165 = arith.constant 3.200000e+01 : f32
    %476 = vector.broadcast %cst_165 : f32 to vector<16x1xf32>
    %477 = arith.divf %475, %476 : vector<16x1xf32>
    %478 = vector.broadcast %470 : vector<16x1xf32> to vector<16x32xf32>
    %479 = arith.subf %464, %478 : vector<16x32xf32>
    %cst_166 = arith.constant 9.99999974E-6 : f32
    %480 = vector.broadcast %cst_166 : f32 to vector<16x1xf32>
    %481 = arith.addf %477, %480 : vector<16x1xf32>
    %482 = math.rsqrt %481 : vector<16x1xf32>
    %483 = vector.broadcast %482 : vector<16x1xf32> to vector<16x32xf32>
    %484 = arith.mulf %479, %483 : vector<16x32xf32>
    %485 = vector.broadcast %465 : vector<1x32xf32> to vector<16x32xf32>
    %486 = arith.mulf %484, %485 : vector<16x32xf32>
    %487 = vector.broadcast %466 : vector<1x32xf32> to vector<16x32xf32>
    %488 = arith.addf %486, %487 : vector<16x32xf32>
    %c536 = arith.constant 536 : index
    %c0_167 = arith.constant 0 : index
    %489 = vector.load %arg1[%c536, %c0_167] : memref<648x128xf32, #tpu.memory_space<vmem>>, vector<32x8xf32>
    %cst_168 = arith.constant dense<0.000000e+00> : vector<16x8xf32>
    %490 = tpu.matmul %488, %489, %cst_168 {dimension_numbers = #tpu.dot_dimension_numbers<[1], [0], [0], [1], [0, 0, 1, 1], [], []>} : vector<16x32xf32>, vector<32x8xf32>, vector<16x8xf32> -> vector<16x8xf32>
    %c639 = arith.constant 639 : index
    %c0_169 = arith.constant 0 : index
    %491 = vector.load %arg1[%c639, %c0_169] : memref<648x128xf32, #tpu.memory_space<vmem>>, vector<1x8xf32>
    %492 = vector.broadcast %491 : vector<1x8xf32> to vector<16x8xf32>
    %493 = arith.addf %490, %492 : vector<16x8xf32>
    %cst_170 = arith.constant 0.000000e+00 : f32
    %494 = vector.broadcast %cst_170 : f32 to vector<16x8xf32>
    %495 = arith.maximumf %493, %494 : vector<16x8xf32>
    %c568 = arith.constant 568 : index
    %c0_171 = arith.constant 0 : index
    %496 = vector.load %arg1[%c568, %c0_171] : memref<648x128xf32, #tpu.memory_space<vmem>>, vector<8x32xf32>
    %cst_172 = arith.constant dense<0.000000e+00> : vector<16x32xf32>
    %497 = tpu.matmul %495, %496, %cst_172 {dimension_numbers = #tpu.dot_dimension_numbers<[1], [0], [0], [1], [0, 0, 1, 1], [], []>} : vector<16x8xf32>, vector<8x32xf32>, vector<16x32xf32> -> vector<16x32xf32>
    %498 = arith.addf %488, %497 : vector<16x32xf32>
    %c640 = arith.constant 640 : index
    %c0_173 = arith.constant 0 : index
    %499 = vector.load %arg1[%c640, %c0_173] : memref<648x128xf32, #tpu.memory_space<vmem>>, vector<1x32xf32>
    %500 = vector.broadcast %499 : vector<1x32xf32> to vector<16x32xf32>
    %501 = arith.addf %498, %500 : vector<16x32xf32>
    %c576 = arith.constant 576 : index
    %c0_174 = arith.constant 0 : index
    %502 = vector.load %arg1[%c576, %c0_174] : memref<648x128xf32, #tpu.memory_space<vmem>>, vector<32x128xf32>
    %cst_175 = arith.constant dense<0.000000e+00> : vector<16x128xf32>
    %503 = tpu.matmul %501, %502, %cst_175 {dimension_numbers = #tpu.dot_dimension_numbers<[1], [0], [0], [1], [0, 0, 1, 1], [], []>} : vector<16x32xf32>, vector<32x128xf32>, vector<16x128xf32> -> vector<16x128xf32>
    %c641 = arith.constant 641 : index
    %c0_176 = arith.constant 0 : index
    %504 = vector.load %arg1[%c641, %c0_176] : memref<648x128xf32, #tpu.memory_space<vmem>>, vector<1x128xf32>
    %505 = vector.broadcast %504 : vector<1x128xf32> to vector<16x128xf32>
    %506 = arith.addf %503, %505 : vector<16x128xf32>
    %c0_177 = arith.constant 0 : index
    %c0_178 = arith.constant 0 : index
    %507 = vector.load %arg4[%c0_177, %c0_178] : memref<16x128xf32, #tpu.memory_space<vmem>>, vector<16x128xf32>
    tpu.vector_store %arg4[%c0_177, %c0_178], %506 {strides = array<i32>} : memref<16x128xf32, #tpu.memory_space<vmem>>, vector<16x128xf32>,
    return
  }
}

</mosaic_0001>

<bundles_post_ra>
// kernel: forward.1
= control target key start
LH: loop header
LB: loop body
LE: loop exit
PB: predicated region body
PF: predicated region fallthrough
CT: control target
= control target key end

     0   :  { %9 = vsyncpa [#allocation3], 0  ;;  %s6104_s0 = inlined_call_operand.vmem [shape: f32[16,48], index: 0, kind: input, shape index: {}]   ;;  %s6105_s1 = inlined_call_operand.hbm [shape: f32[648,128], index: 1, kind: input, shape index: {}]   ;;  %s6106_s2 = inlined_call_operand.hbm [shape: f32[64,480], index: 2, kind: input, shape index: {}]   ;;  %s6107_s3 = inlined_call_operand.vmem [shape: f32[16,240], index: 3, kind: input, shape index: {}]   ;;  %s6108_s4 = inlined_call_operand.vmem [shape: f32[16,128], index: 4, kind: output, shape index: {}]  }
   0x1   :  { %10 = vsyncpa [#allocation5], 0  ;;  %s5476_s15 = smov [#allocation2]  }
   0x2   :  { %s18_s16 = sshll.u32 %s5476_s15, 4  ;;  %s19_s16 = int_to_ptr.vmem [resolvable:$true] %s18_s16 }
   0x3   :  { %s5440_s17 = scalar_lea.vmem %s19_s16, 10368  ;;  %p5445_p1 = scmp.lt.s32.totalorder %s19_s16, %s19_s16 }
   0x4   :  { %p5441_p0 = scmp.ne.s32.totalorder %s19_s16, %s5440_s17  ;;  %p5446_p2 = scmp.lt.s32.totalorder %s5440_s17, %s5440_s17 }
   0x6   :  { %p5447_p3 = por %p5446_p2, %p5445_p1 }
   0x8   :  { %p5448_p4 = pnand %p5447_p3, %p5441_p0 }
   0xa   :  { %5451 = shalt.err (!%p5448_p4)
}
   0xb   :  { %s5477_s18 = smov 128   ;;  %s5478_s19 = smov 8  }
   0xc   :  { %24 = dma.hbm_to_vmem [thread:$0]  %s6105_s1, 10368, %s19_s16, [#allocation3], %s5477_s18, %s5477_s18, %s5478_s19  }
   0xd   :  { %s5479_s22 = smov [#allocation4]  }
   0xe   :  { %s30_s23 = sshll.u32 %s5479_s22, 4  ;;  %s31_s23 = int_to_ptr.vmem [resolvable:$true] %s30_s23 }
   0xf   :  { %s5460_s24 = scalar_lea.vmem %s31_s23, 4096  ;;  %p5465_p6 = scmp.lt.s32.totalorder %s31_s23, %s31_s23 }
  0x10   :  { %p5461_p5 = scmp.ne.s32.totalorder %s31_s23, %s5460_s24  ;;  %p5466_p7 = scmp.lt.s32.totalorder %s5460_s24, %s5460_s24 }
  0x12   :  { %p5467_p8 = por %p5466_p7, %p5465_p6 }
  0x14   :  { %p5468_p9 = pnand %p5467_p8, %p5461_p5 }
  0x16   :  { %5471 = shalt.err (!%p5468_p9)
}
  0x17   :  { %s5480_s25 = smov 512   ;;  %s5481_s26 = smov 32  }
  0x18   :  { %36 = dma.hbm_to_vmem [thread:$0]  %s6106_s2, 4096, %s31_s23, [#allocation5], %s5480_s25, %s5480_s25, %s5481_s26  }
  0x19   :  { %5472 = dma.done.wait [#allocation3], 10368  }
  0x1a   :  { %5473 = vsyncadd [#allocation3], 4294956928 }
  0x1b   :  { %5474 = dma.done.wait [#allocation5], 4096  }
  0x1c   :  { %5475 = vsyncadd [#allocation5], 4294963200  ;;  %v52_v0 = vld [vmem:[#allocation2 + $0x28] sm:$0xff]  ;;  %v51_v1 = vld [vmem:[#allocation2 + $0x20] sm:$0xff]  ;;  %vm58_vm0 = vcmask 392192   ;;  %vm159_vm1 = vcmask 523264  }
  0x1d   :  { %4990 = vmatprep.subr.mxu1 %v52_v0  ;;  %v50_v2 = vld [vmem:[#allocation2 + $0x18] sm:$0xff]  ;;  %v45_v3 = vld [vmem:[%s6104_s0] sm:$0xff]  ;;  %v49_v4 = vld [vmem:[#allocation2 + $0x10] sm:$0xff]  ;;  %vm250_vm2 = vcmask 261120   ;;  %vm436_vm3 = vcmask 64512   ;;  %s5483_s5 = smov 88  }
  0x1e   :  { %4991 = vmatpush3.msra.mxu1 %v52_v0  ;;  %5002 = vmatprep.mubr.msk.f32.mxu1 %vm58_vm0, %v45_v3  ;;  %v48_v5 = vld [vmem:[#allocation2 + $0x8] sm:$0xff]  ;;  %v47_v6 = vld [vmem:[#allocation2] sm:$0xff]  ;;  %v145_v10 = vld [vmem:[#allocation2 + $0x58] sm:$0xff]  ;;  %s5484_s6 = smov 120   ;;  %vm524_vm4 = vcmask 130048   ;;  %s5485_s7 = smov 64  }
  0x1f   :  { %4992 = vmatprep.subr.mxu1 %v51_v1  ;;  %v46_v7 = vld [vmem:[%s6104_s0 + $0x8] sm:$0xff]  ;;  %v146_v9 = vld [vmem:[#allocation2 + $0x60] sm:$0xff]  ;;  %v144_v11 = vld [vmem:[#allocation2 + $0x50] sm:$0xff]  ;;  %s5482_s0 = smov 96   ;;  %s5486_s8 = smov 56   ;;  %vm1887_vm5 = vcmask 916480  }
  0x20   :  { %4993 = vmatpush3.msra.mxu1 %v51_v1  ;;  %v147_v8 = vld [vmem:[#allocation2 + $0x68] sm:$0xff]  ;;  %v142_v13 = vld [vmem:[#allocation2 + $0x40] sm:$0xff]  ;;  %v141_v14 = vld [vmem:[#allocation2 + $0x38] sm:$0xff]  ;;  %s5487_s9 = smov 80   ;;  %s5488_s10 = smov 112  }
  0x21   :  { %4994 = vmatprep.subr.mxu1 %v50_v2  ;;  %v143_v12 = vld [vmem:[#allocation2 + $0x48] sm:$0xff]  ;;  %v140_v15 = vld [vmem:[#allocation2 + $0x30] sm:$0xff]  ;;  %v4672_v17 = vld [vmem:[#allocation2 + $0x260] ss:$0 sm:$0xff]  ;;  %s5489_s11 = smov 72   ;;  %s5490_s12 = smov 104  }
  0x22   :  { %4995 = vmatpush3.msra.mxu1 %v50_v2  ;;  %v244_v23 = vld [vmem:[#allocation2 + $0x88] sm:$0xff]  ;;  %v243_v24 = vld [vmem:[#allocation2 + $0x80] sm:$0xff]  ;;  %v242_v25 = vld [vmem:[#allocation2 + $0x78] sm:$0xff]  ;;  %s5491_s13 = smov 48   ;;  %s5492_s14 = smov 40  }
  0x23   :  { %4996 = vmatprep.subr.mxu1 %v49_v4  ;;  %5024 = vmatprep.subr.mxu0 %v244_v23  ;;  %v241_v26 = vld [vmem:[#allocation2 + $0x70] sm:$0xff]  ;;  %v4675_v27 = vld [vmem:[#allocation2 + $0x261] ss:$0 sm:$0xff]  ;;  %v343_v34 = vld [vmem:[#allocation2 + $0xc8] sm:$0xff] }
  0x24   :  { %4997 = vmatpush3.msra.mxu1 %v49_v4  ;;  %5025 = vmatpush3.msra.mxu0 %v244_v23  ;;  %v342_v35 = vld [vmem:[#allocation2 + $0xc0] sm:$0xff]  ;;  %v341_v36 = vld [vmem:[#allocation2 + $0xb8] sm:$0xff]  ;;  %v340_v37 = vld [vmem:[#allocation2 + $0xb0] sm:$0xff] }
  0x25   :  { %4998 = vmatprep.subr.mxu1 %v48_v5  ;;  %5026 = vmatprep.subr.mxu0 %v243_v24  ;;  %v4678_v38 = vld [vmem:[#allocation2 + $0x262] ss:$0 sm:$0xff]  ;;  %v334_v44 = vld [vmem:[#allocation2 + $0x90] sm:$0xff]  ;;  %v335_v45 = vld [vmem:[#allocation2 + $0x98] sm:$0xff] }
  0x26   :  { %4999 = vmatpush3.msra.mxu1 %v48_v5  ;;  %5027 = vmatpush3.msra.mxu0 %v243_v24  ;;  %v4681_v49 = vld [vmem:[#allocation2 + $0x263] ss:$0 sm:$0xff]  ;;  %v5578_v61 = vld [vmem:[#allocation2 + $0xa8] sm:$0xff] }
  0x27   :  { %5000 = vmatprep.subr.mxu1 %v47_v6  ;;  %5028 = vmatprep.subr.mxu0 %v242_v25  ;;  %v5580_v0 = vld [vmem:[#allocation2 + $0xa0] sm:$0xff] }
  0x28   :  { %5001 = vmatpush3.msra.mxu1 %v47_v6  ;;  %5029 = vmatpush3.msra.mxu0 %v242_v25 }
  0x29   :  { %5003 = vmatmul.mubr.msk.f32.vlgmr.msra.gmra.mxu1 %vm58_vm0, %v46_v7  ;;  %5005 = vmatprep.subr.mxu1 %v147_v8 }
  0x2a   :  { %5006 = vmatpush3.msra.mxu1 %v147_v8  ;;  %5030 = vmatprep.subr.mxu0 %v241_v26 }
  0x2b   :  { %5007 = vmatprep.subr.mxu1 %v146_v9  ;;  %5031 = vmatpush3.msra.mxu0 %v241_v26 }
  0x2c   :  { %5008 = vmatpush3.msra.mxu1 %v146_v9 }
  0x2d   :  { %5009 = vmatprep.subr.mxu1 %v145_v10 }
  0x2e   :  { %5010 = vmatpush3.msra.mxu1 %v145_v10 }
  0x2f   :  { %5011 = vmatprep.subr.mxu1 %v144_v11 }
  0x30   :  { %5012 = vmatpush3.msra.mxu1 %v144_v11 }
  0x31   :  { %5013 = vmatprep.subr.mxu1 %v143_v12 }
  0x32   :  { %5014 = vmatpush3.msra.mxu1 %v143_v12 }
  0x33   :  { %5015 = vmatprep.subr.mxu1 %v142_v13 }
  0x34   :  { %5016 = vmatpush3.msra.mxu1 %v142_v13 }
  0x35   :  { %5017 = vmatprep.subr.mxu1 %v141_v14 }
  0x36   :  { %5018 = vmatpush3.msra.mxu1 %v141_v14 }
  0x37   :  { %5019 = vmatprep.subr.mxu1 %v140_v15 }
  0x38   :  { %5020 = vmatpush3.msra.mxu1 %v140_v15 }
  0x39   :  { %5035 = vmatprep.subr.mxu1 %v343_v34 }
  0xe9   :  { %v5004_v16 = vpop.f32.mrf.mxu1 }
  0xea   :  { %v137_v20 = vadd.f32 %v5004_v16, %v4672_v17 }
  0xeb   :  { %v131_v18 = vpop.f32.mrf.mxu1 }
  0xec   :  { %v132_v19 = vadd.f32 %v4672_v17, %v131_v18 }
  0xee   :  { %155 = vrot.lane.b32.xlu0 %v132_v19, %s5482_s0 }
  0xf2   :  { %157 = vrot.lane.b32.xlu0 %v137_v20, %s5482_s0 }
 0x160   :  { %v156_v21 = vpop.permute.xlu0 %155 }
 0x161   :  { %5021 = vmatprep.mubr.msk.f32.mxu1 %vm159_vm1, %v156_v21 }
 0x164   :  { %v158_v22 = vpop.permute.xlu0 %157 }
 0x165   :  { %5022 = vmatmul.mubr.msk.f32.vlgmr.msra.gmra.mxu1 %vm159_vm1, %v158_v22 }
 0x166   :  { %5036 = vmatpush3.msra.mxu1 %v343_v34 }
 0x167   :  { %5037 = vmatprep.subr.mxu1 %v342_v35 }
 0x168   :  { %5038 = vmatpush3.msra.mxu1 %v342_v35 }
 0x169   :  { %5039 = vmatprep.subr.mxu1 %v341_v36 }
 0x16a   :  { %5040 = vmatpush3.msra.mxu1 %v341_v36 }
 0x16b   :  { %5041 = vmatprep.subr.mxu1 %v340_v37 }
 0x16c   :  { %5042 = vmatpush3.msra.mxu1 %v340_v37 }
 0x225   :  { %v5023_v28 = vpop.f32.mrf.mxu1 }
 0x226   :  { %v236_v29 = vadd.f32 %v5023_v28, %v4675_v27 }
 0x227   :  { %v230_v30 = vpop.f32.mrf.mxu1 }
 0x228   :  { %v231_v31 = vadd.f32 %v4675_v27, %v230_v30  ;;  %v240_v33 = vmax.f32 %v236_v29, 0.0 }
 0x22a   :  { %v239_v32 = vmax.f32 %v231_v31, 0.0 }
 0x22c   :  { %5032 = vmatprep.mubr.msk.f32.mxu0 %vm250_vm2, %v239_v32 }
 0x22d   :  { %5033 = vmatmul.mubr.msk.f32.vlgmr.msra.gmra.mxu0 %vm250_vm2, %v240_v33 }
 0x2ed   :  { %v5034_v39 = vpop.f32.mrf.mxu0 }
 0x2ee   :  { %v329_v40 = vadd.f32 %v5034_v39, %v4678_v38 }
 0x2ef   :  { %v323_v41 = vpop.f32.mrf.mxu0 }
 0x2f0   :  { %v324_v42 = vadd.f32 %v4678_v38, %v323_v41  ;;  %v333_v43 = vadd.f32 %v329_v40, %v137_v20 }
 0x2f2   :  { %v332_v46 = vadd.f32 %v324_v42, %v132_v19  ;;  %v5542_v48 = vadd.f32 %v335_v45, %v333_v43 }
 0x2f4   :  { %v5540_v47 = vadd.f32 %v334_v44, %v332_v46  ;;  %v839_v46 = vld [vmem:[#allocation2 + $0xd8] sm:$0xff] }
 0x2f6   :  { %5043 = vmatprep.mubr.msk.f32.mxu1 %vm250_vm2, %v5540_v47 }
 0x2f7   :  { %5044 = vmatmul.mubr.msk.f32.vlgmr.msra.gmra.mxu1 %vm250_vm2, %v5542_v48 }
 0x3b7   :  { %v5045_v50 = vpop.f32.mrf.mxu1 }
 0x3b8   :  { %v5548_v51 = vadd.f32 %v5045_v50, %v4681_v49 }
 0x3b9   :  { %v421_v52 = vpop.f32.mrf.mxu1 }
 0x3ba   :  { %v5550_v53 = vadd.f32 %v4681_v49, %v421_v52  ;;  %641 = vrot.lane.b32.xlu0 %v5548_v51, %s5483_s5  ;;  %434 = vrot.lane.b32.xlu1 %v5548_v51, %s5482_s0 }
 0x3bc   :  { %5050 = vmatprep.mubr.msk.f32.mxu0 %vm436_vm3, %v5550_v53 }
 0x3be   :  { %635 = vrot.lane.b32.xlu0 %v5550_v53, %s5484_s6  ;;  %432 = vrot.lane.b32.xlu1 %v5550_v53, %s5482_s0 }
 0x3c2   :  { %639 = vrot.lane.b32.xlu1 %v5550_v53, %s5483_s5 }
 0x3c6   :  { %637 = vrot.lane.b32.xlu1 %v5548_v51, %s5484_s6 }
 0x42c   :  { %v435_v54 = vpop.permute.xlu1 %434  ;;  %v642_v55 = vpop.permute.xlu0 %641 }
 0x42d   :  { %5046 = vmatprep.subr.msk.mxu0 %vm436_vm3, %v435_v54 }
 0x42e   :  { %5047 = vmatpush3.xpose.msk.msra.mxu0 %vm436_vm3, %v435_v54 }
 0x430   :  { %v433_v56 = vpop.permute.xlu1 %432  ;;  %v636_v57 = vpop.permute.xlu0 %635 }
 0x431   :  { %5048 = vmatprep.subr.msk.mxu0 %vm436_vm3, %v433_v56 }
 0x432   :  { %5049 = vmatpush3.xpose.msk.msra.mxu0 %vm436_vm3, %v433_v56  ;;  %v634_v56 = vld [vmem:[#allocation2 + $0xd0] sm:$0xff] }
 0x433   :  { %5060 = vmatprep.subr.msk.mxu0 %vm436_vm3, %v642_v55 }
 0x434   :  { %v640_v58 = vpop.permute.xlu1 %639 }
 0x435   :  { %5051 = vmatmul.mubr.msk.f32.vlgmr.msra.gmra.mxu0 %vm436_vm3, %v5548_v51 }
 0x436   :  { %5061 = vmatpush3.xpose.msk.msra.mxu0 %vm436_vm3, %v642_v55  ;;  %5064 = vmatprep.mubr.msk.f32.mxu0 %vm436_vm3, %v636_v57 }
 0x437   :  { %5062 = vmatprep.subr.msk.mxu0 %vm436_vm3, %v640_v58 }
 0x438   :  { %v638_v59 = vpop.permute.xlu1 %637 }
 0x43a   :  { %5063 = vmatpush3.xpose.msk.msra.mxu0 %vm436_vm3, %v640_v58 }
 0x43b   :  { %5079 = vmatprep.subr.mxu0 %v634_v56 }
 0x43d   :  { %5065 = vmatmul.mubr.msk.f32.vlgmr.msra.gmra.mxu0 %vm436_vm3, %v638_v59 }
 0x43e   :  { %5080 = vmatpush3.msra.mxu0 %v634_v56 }
 0x4f5   :  { %v5052_v60 = vpop.f32.mrf.mxu0 }
 0x4f6   :  { %v521_v62 = vmul.f32 0.35355338, %v5052_v60 }
 0x4f7   :  { %v511_v63 = vpop.f32.mrf.mxu0 }
 0x4f8   :  { %v520_v1 = vmul.f32 0.35355338, %v511_v63  ;;  %v523_v2 = vadd.f32 %v521_v62, %v5578_v61 }
 0x4fa   :  { %v528_v3 = vsel %vm524_vm4, %v523_v2, -inf  ;;  %v522_v4 = vadd.f32 %v520_v1, %v5580_v0 }
 0x4fb   :  { %529 = vmax.xlane.f32.xlu1 %v528_v3 }
 0x4fc   :  { %v525_v5 = vsel %vm524_vm4, %v522_v4, -inf }
 0x4fd   :  { %v5066_v6 = vpop.f32.mrf.mxu0  ;;  %526 = vmax.xlane.f32.xlu0 %v525_v5 }
 0x4fe   :  { %v727_v8 = vmul.f32 0.35355338, %v5066_v6 }
 0x4ff   :  { %v717_v7 = vpop.f32.mrf.mxu0 }
 0x500   :  { %v726_v9 = vmul.f32 0.35355338, %v717_v7  ;;  %v729_v12 = vadd.f32 %v727_v8, %v5578_v61 }
 0x502   :  { %v728_v10 = vadd.f32 %v726_v9, %v5580_v0  ;;  %v733_v13 = vsel %vm524_vm4, %v729_v12, -inf }
 0x504   :  { %v730_v11 = vsel %vm524_vm4, %v728_v10, -inf }
 0x505   :  { %731 = vmax.xlane.f32.xlu0 %v730_v11 }
 0x509   :  { %734 = vmax.xlane.f32.xlu0 %v733_v13 }
 0x50c   :  { %549 = vrot.lane.b32.xlu1 %v5548_v51, %s5485_s7 }
 0x584   :  { %v530_v14 = vpop.xlane.xlu1 %529 }
 0x585   :  { %v532_v15 = vsub.f32 %v523_v2, %v530_v14 }
 0x586   :  { %v527_v16 = vpop.xlane.xlu0 %526 }
 0x587   :  { %v535_v17 = vmul.f32 1.442695, %v532_v15  ;;  %v531_v18 = vsub.f32 %v522_v4, %v527_v16 }
 0x588   :  { %v550_v19 = vpop.permute.xlu1 %549 }
 0x589   :  { %5330 = vpow2.f32 %v535_v17  ;;  %v533_v20 = vmul.f32 1.442695, %v531_v18  ;;  %5053 = vmatprep.subr.mxu1 %v550_v19 }
 0x58a   :  { %5054 = vmatpush3.msra.mxu1 %v550_v19 }
 0x58b   :  { %5332 = vpow2.f32 %v533_v20 }
 0x58e   :  { %v732_v21 = vpop.xlane.xlu0 %731 }
 0x58f   :  { %v736_v31 = vsub.f32 %v728_v10, %v732_v21 }
 0x591   :  { %v738_v32 = vmul.f32 1.442695, %v736_v31 }
 0x592   :  { %v735_v22 = vpop.xlane.xlu0 %734 }
 0x593   :  { %v737_v23 = vsub.f32 %v729_v12, %v735_v22 }
 0x595   :  { %v740_v24 = vmul.f32 1.442695, %v737_v23 }
 0x596   :  { %v5331_v25 = vpop.eup %5330 }
 0x597   :  { %5334 = vpow2.f32 %v740_v24  ;;  %v540_v26 = vsel %vm524_vm4, %v5331_v25, 0.0 }
 0x598   :  { %v5333_v27 = vpop.eup %5332  ;;  %541 = vadd.xlane.f32.xlu0 %v540_v26  ;;  %5336 = vpow2.f32 %v738_v32 }
 0x599   :  { %v537_v28 = vsel %vm524_vm4, %v5333_v27, 0.0 }
 0x59a   :  { %538 = vadd.xlane.f32.xlu1 %v537_v28 }
 0x5a4   :  { %v5335_v29 = vpop.eup %5334 }
 0x5a5   :  { %v745_v30 = vsel %vm524_vm4, %v5335_v29, 0.0  ;;  %v5337_v33 = vpop.eup %5336 }
 0x5a6   :  { %746 = vadd.xlane.f32.xlu0 %v745_v30  ;;  %v742_v34 = vsel %vm524_vm4, %v5337_v33, 0.0 }
 0x5ab   :  { %754 = vrot.lane.b32.xlu1 %v5548_v51, %s5486_s8 }
 0x5bc   :  { %547 = vrot.lane.b32.xlu0 %v5550_v53, %s5485_s7 }
 0x5c0   :  { %1008 = vrot.lane.b32.xlu0 %v5548_v51, %s5487_s9 }
 0x5c4   :  { %1002 = vrot.lane.b32.xlu0 %v5550_v53, %s5488_s10 }
 0x5c8   :  { %1296 = vrot.lane.b32.xlu0 %v5548_v51, %s5489_s11 }
 0x5cc   :  { %1290 = vrot.lane.b32.xlu0 %v5550_v53, %s5490_s12 }
 0x5cf   :  { %743 = vadd.xlane.f32.xlu1 %v742_v34 }
 0x5e0   :  { %752 = vrot.lane.b32.xlu1 %v5550_v53, %s5486_s8 }
 0x5e4   :  { %1006 = vrot.lane.b32.xlu1 %v5550_v53, %s5487_s9 }
 0x5e8   :  { %1004 = vrot.lane.b32.xlu1 %v5548_v51, %s5488_s10 }
 0x5ec   :  { %1294 = vrot.lane.b32.xlu1 %v5550_v53, %s5489_s11 }
 0x5f0   :  { %1292 = vrot.lane.b32.xlu1 %v5548_v51, %s5490_s12 }
 0x621   :  { %v542_v35 = vpop.xlane.xlu0 %541 }
 0x622   :  { %5338 = vrcp.f32 %v542_v35 }
 0x623   :  { %v539_v36 = vpop.xlane.xlu1 %538 }
 0x624   :  { %5340 = vrcp.f32 %v539_v36 }
 0x627   :  { %v755_v43 = vpop.permute.xlu1 %754 }
 0x62f   :  { %v747_v37 = vpop.xlane.xlu0 %746  ;;  %v5339_v38 = vpop.eup %5338 }
 0x630   :  { %v546_v42 = vmul.f32 %v5339_v38, %v5331_v25  ;;  %5342 = vrcp.f32 %v747_v37 }
 0x631   :  { %v5341_v39 = vpop.eup %5340 }
 0x632   :  { %v545_v40 = vmul.f32 %v5341_v39, %v5333_v27 }
 0x633   :  { %v548_v41 = vpop.permute.xlu0 %547 }
 0x634   :  { %5055 = vmatprep.subr.mxu1 %v548_v41  ;;  %5057 = vmatprep.mubr.msk.f32.mxu1 %vm524_vm4, %v545_v40 }
 0x635   :  { %5056 = vmatpush3.msra.mxu1 %v548_v41 }
 0x636   :  { %5058 = vmatmul.mubr.msk.f32.vlgmr.msra.gmra.mxu1 %vm524_vm4, %v546_v42  ;;  %5067 = vmatprep.subr.mxu1 %v755_v43 }
 0x637   :  { %5068 = vmatpush3.msra.mxu1 %v755_v43  ;;  %v1009_v55 = vpop.permute.xlu0 %1008 }
 0x63b   :  { %v1003_v59 = vpop.permute.xlu0 %1002 }
 0x63d   :  { %v5343_v49 = vpop.eup %5342 }
 0x63e   :  { %v751_v54 = vmul.f32 %v5343_v49, %v5335_v29 }
 0x63f   :  { %v1297_v1 = vpop.permute.xlu0 %1296 }
 0x643   :  { %v1291_v3 = vpop.permute.xlu0 %1290 }
 0x658   :  { %v744_v44 = vpop.xlane.xlu1 %743 }
 0x659   :  { %5344 = vrcp.f32 %v744_v44  ;;  %v1206_v44 = vld [vmem:[#allocation2 + $0xe0] sm:$0xff] }
 0x65c   :  { %v753_v45 = vpop.permute.xlu1 %752 }
 0x65d   :  { %5069 = vmatprep.subr.mxu1 %v753_v45 }
 0x65e   :  { %5070 = vmatpush3.msra.mxu1 %v753_v45 }
 0x65f   :  { %5074 = vmatprep.subr.mxu1 %v839_v46 }
 0x660   :  { %v1007_v62 = vpop.permute.xlu1 %1006 }
 0x664   :  { %v1005_v2 = vpop.permute.xlu1 %1004 }
 0x666   :  { %v5345_v50 = vpop.eup %5344 }
 0x667   :  { %v750_v52 = vmul.f32 %v5345_v50, %v5337_v33 }
 0x668   :  { %v1295_v4 = vpop.permute.xlu1 %1294 }
 0x669   :  { %5071 = vmatprep.mubr.msk.f32.mxu1 %vm524_vm4, %v750_v52 }
 0x66a   :  { %5072 = vmatmul.mubr.msk.f32.vlgmr.msra.gmra.mxu1 %vm524_vm4, %v751_v54 }
 0x66b   :  { %5075 = vmatpush3.msra.mxu1 %v839_v46 }
 0x66c   :  { %5084 = vmatprep.subr.msk.mxu1 %vm436_vm3, %v1009_v55  ;;  %v1293_v5 = vpop.permute.xlu1 %1292 }
 0x6f6   :  { %v5059_v57 = vpop.f32.mrf.mxu1 }
 0x6f8   :  { %v625_v58 = vpop.f32.mrf.mxu1 }
 0x6f9   :  { %5081 = vmatprep.mubr.msk.f32.mxu0 %vm436_vm3, %v625_v58 }
 0x6fa   :  { %5082 = vmatmul.mubr.msk.f32.vlgmr.msra.gmra.mxu0 %vm436_vm3, %v5059_v57 }
 0x72a   :  { %v5073_v60 = vpop.f32.mrf.mxu1 }
 0x72c   :  { %v830_v63 = vpop.f32.mrf.mxu1 }
 0x72d   :  { %5076 = vmatprep.mubr.msk.f32.mxu1 %vm436_vm3, %v830_v63 }
 0x72e   :  { %5077 = vmatmul.mubr.msk.f32.vlgmr.msra.gmra.mxu1 %vm436_vm3, %v5073_v60 }
 0x72f   :  { %5085 = vmatpush3.xpose.msk.msra.mxu1 %vm436_vm3, %v1009_v55  ;;  %5088 = vmatprep.mubr.msk.f32.mxu1 %vm436_vm3, %v1003_v59 }
 0x730   :  { %5086 = vmatprep.subr.msk.mxu1 %vm436_vm3, %v1007_v62 }
 0x733   :  { %5087 = vmatpush3.xpose.msk.msra.mxu1 %vm436_vm3, %v1007_v62 }
 0x734   :  { %5103 = vmatprep.subr.msk.mxu1 %vm436_vm3, %v1297_v1 }
 0x736   :  { %5089 = vmatmul.mubr.msk.f32.vlgmr.msra.gmra.mxu1 %vm436_vm3, %v1005_v2 }
 0x737   :  { %5104 = vmatpush3.xpose.msk.msra.mxu1 %vm436_vm3, %v1297_v1  ;;  %5107 = vmatprep.mubr.msk.f32.mxu1 %vm436_vm3, %v1291_v3 }
 0x738   :  { %5105 = vmatprep.subr.msk.mxu1 %vm436_vm3, %v1295_v4 }
 0x73b   :  { %5106 = vmatpush3.xpose.msk.msra.mxu1 %vm436_vm3, %v1295_v4  ;;  %v1494_v4 = vld [vmem:[#allocation2 + $0xe8] sm:$0xff] }
 0x73e   :  { %5108 = vmatmul.mubr.msk.f32.vlgmr.msra.gmra.mxu1 %vm436_vm3, %v1293_v5 }
 0x7ba   :  { %v5083_v6 = vpop.f32.mrf.mxu0 }
 0x7bc   :  { %v993_v58 = vpop.f32.mrf.mxu0 }
 0x7ee   :  { %v5078_v7 = vpop.f32.mrf.mxu1 }
 0x7ef   :  { %v5638_v8 = vadd.f32 %v5083_v6, %v5078_v7 }
 0x7f0   :  { %v5640_v9 = vpop.f32.mrf.mxu1 }
 0x7f1   :  { %v994_v6 = vadd.f32 %v993_v58, %v5640_v9 }
 0x7f6   :  { %v5090_v10 = vpop.f32.mrf.mxu1 }
 0x7f7   :  { %v1094_v11 = vmul.f32 0.35355338, %v5090_v10 }
 0x7f8   :  { %v1084_v12 = vpop.f32.mrf.mxu1 }
 0x7f9   :  { %v1093_v13 = vmul.f32 0.35355338, %v1084_v12  ;;  %v1096_v14 = vadd.f32 %v1094_v11, %v5578_v61 }
 0x7fb   :  { %v1100_v15 = vsel %vm524_vm4, %v1096_v14, -inf  ;;  %v1095_v16 = vadd.f32 %v1093_v13, %v5580_v0 }
 0x7fc   :  { %1101 = vmax.xlane.f32.xlu1 %v1100_v15  ;;  %v4716_v15 = vld [vmem:[#allocation2 + $0x264] ss:$0 sm:$0xff] }
 0x7fd   :  { %v1097_v17 = vsel %vm524_vm4, %v1095_v16, -inf }
 0x7fe   :  { %1098 = vmax.xlane.f32.xlu0 %v1097_v17  ;;  %v5109_v18 = vpop.f32.mrf.mxu1 }
 0x7ff   :  { %v1382_v36 = vmul.f32 0.35355338, %v5109_v18 }
 0x800   :  { %v1372_v19 = vpop.f32.mrf.mxu1 }
 0x801   :  { %v1381_v20 = vmul.f32 0.35355338, %v1372_v19  ;;  %v1384_v39 = vadd.f32 %v1382_v36, %v5578_v61  ;;  %v1636_v36 = vld [vmem:[#allocation4 + $0x40] sm:$0xff] }
 0x803   :  { %v1383_v21 = vadd.f32 %v1381_v20, %v5580_v0  ;;  %v1388_v40 = vsel %vm524_vm4, %v1384_v39, -inf }
 0x805   :  { %v1385_v22 = vsel %vm524_vm4, %v1383_v21, -inf }
 0x80d   :  { %1121 = vrot.lane.b32.xlu1 %v5548_v51, %s5491_s13 }
 0x831   :  { %1386 = vmax.xlane.f32.xlu1 %v1385_v22 }
 0x885   :  { %v1102_v23 = vpop.xlane.xlu1 %1101 }
 0x886   :  { %v1104_v24 = vsub.f32 %v1096_v14, %v1102_v23 }
 0x887   :  { %v1099_v25 = vpop.xlane.xlu0 %1098 }
 0x888   :  { %v1107_v26 = vmul.f32 1.442695, %v1104_v24  ;;  %v1103_v27 = vsub.f32 %v1095_v16, %v1099_v25 }
 0x889   :  { %v1122_v28 = vpop.permute.xlu1 %1121 }
 0x88a   :  { %5346 = vpow2.f32 %v1107_v26  ;;  %v1105_v29 = vmul.f32 1.442695, %v1103_v27  ;;  %5091 = vmatprep.subr.mxu0 %v1122_v28 }
 0x88b   :  { %5092 = vmatpush3.msra.mxu0 %v1122_v28 }
 0x88c   :  { %5348 = vpow2.f32 %v1105_v29 }
 0x897   :  { %v5347_v30 = vpop.eup %5346 }
 0x898   :  { %v1112_v31 = vsel %vm524_vm4, %v5347_v30, 0.0 }
 0x899   :  { %v5349_v32 = vpop.eup %5348  ;;  %1113 = vadd.xlane.f32.xlu0 %v1112_v31 }
 0x89a   :  { %v1109_v0 = vsel %vm524_vm4, %v5349_v32, 0.0 }
 0x89d   :  { %1110 = vadd.xlane.f32.xlu0 %v1109_v0  ;;  %v1640_v0 = vld [vmem:[#allocation4 + $0x60] sm:$0xff] }
 0x8b3   :  { %1119 = vrot.lane.b32.xlu0 %v5550_v53, %s5491_s13 }
 0x8ba   :  { %v1387_v33 = vpop.xlane.xlu1 %1386 }
 0x8bb   :  { %v1391_v34 = vsub.f32 %v1383_v21, %v1387_v33  ;;  %v1642_v33 = vld [vmem:[#allocation4 + $0x70] sm:$0xff] }
 0x8bd   :  { %v1393_v35 = vmul.f32 1.442695, %v1391_v34  ;;  %v1637_v34 = vld [vmem:[#allocation4 + $0x48] sm:$0xff] }
 0x8bf   :  { %5350 = vpow2.f32 %v1393_v35  ;;  %v1639_v35 = vld [vmem:[#allocation4 + $0x58] sm:$0xff] }
 0x8cc   :  { %v5351_v37 = vpop.eup %5350 }
 0x8cd   :  { %v1397_v38 = vsel %vm524_vm4, %v5351_v37, 0.0 }
 0x8ce   :  { %1398 = vadd.xlane.f32.xlu1 %v1397_v38  ;;  %v1633_v38 = vld [vmem:[#allocation4 + $0x28] sm:$0xff] }
 0x8d2   :  { %1389 = vmax.xlane.f32.xlu0 %v1388_v40  ;;  %v1632_v40 = vld [vmem:[#allocation4 + $0x20] sm:$0xff] }
 0x8df   :  { %1409 = vrot.lane.b32.xlu1 %v5548_v51, %s5492_s14 }
 0x922   :  { %v1114_v41 = vpop.xlane.xlu0 %1113 }
 0x923   :  { %5352 = vrcp.f32 %v1114_v41  ;;  %v1634_v41 = vld [vmem:[#allocation4 + $0x30] sm:$0xff] }
 0x926   :  { %v1111_v42 = vpop.xlane.xlu0 %1110 }
 0x927   :  { %5354 = vrcp.f32 %v1111_v42  ;;  %v1629_v42 = vld [vmem:[#allocation4 + $0x8] sm:$0xff] }
 0x92a   :  { %v1120_v43 = vpop.permute.xlu0 %1119 }
 0x92b   :  { %5093 = vmatprep.subr.mxu0 %v1120_v43 }
 0x92c   :  { %5094 = vmatpush3.msra.mxu0 %v1120_v43  ;;  %v1631_v43 = vld [vmem:[#allocation4 + $0x18] sm:$0xff] }
 0x92d   :  { %5098 = vmatprep.subr.mxu0 %v1206_v44 }
 0x930   :  { %v5353_v45 = vpop.eup %5352 }
 0x931   :  { %v1118_v49 = vmul.f32 %v5353_v45, %v5347_v30  ;;  %v1630_v45 = vld [vmem:[#allocation4 + $0x10] sm:$0xff] }
 0x934   :  { %v5355_v46 = vpop.eup %5354 }
 0x935   :  { %v1117_v61 = vmul.f32 %v5355_v46, %v5349_v32  ;;  %v1641_v32 = vld [vmem:[#allocation4 + $0x68] sm:$0xff]  ;;  %v5493_v46 = vmov 0.0  }
 0x936   :  { %1674 = vmatprep.subr.mxu1 %v1641_v32  ;;  %1714 = vmatprep.mubr.f32.mxu1 %v5493_v46  ;;  %v1878_v32 = vld [vmem:[%s6107_s3] sm:$0xff] }
 0x937   :  { %5095 = vmatprep.mubr.msk.f32.mxu0 %vm524_vm4, %v1117_v61  ;;  %1675 = vmatpush1.msra.mxu1 %v1640_v0  ;;  %v1880_v0 = vld [vmem:[%s6107_s3 + $0x10] sm:$0xff] }
 0x938   :  { %5096 = vmatmul.mubr.msk.f32.vlgmr.msra.gmra.mxu0 %vm524_vm4, %v1118_v49  ;;  %1676 = vmatprep.subr.mxu1 %v1637_v34 }
 0x939   :  { %5099 = vmatpush3.msra.mxu0 %v1206_v44  ;;  %1677 = vmatpush1.msra.mxu1 %v1636_v36  ;;  %v1628_v44 = vld [vmem:[#allocation4] sm:$0xff] }
 0x93a   :  { %1678 = vmatprep.subr.mxu1 %v1633_v38 }
 0x93b   :  { %1679 = vmatpush1.msra.mxu1 %v1632_v40 }
 0x93c   :  { %1680 = vmatprep.subr.mxu1 %v1629_v42 }
 0x93d   :  { %1681 = vmatpush1.msra.mxu1 %v1628_v44 }
 0x93e   :  { %1894 = vmatprep.subr.mxu1 %v5493_v46 }
 0x957   :  { %v1399_v50 = vpop.xlane.xlu1 %1398 }
 0x95b   :  { %v1410_v51 = vpop.permute.xlu1 %1409  ;;  %v1390_v52 = vpop.xlane.xlu0 %1389 }
 0x95c   :  { %v1392_v54 = vsub.f32 %v1384_v39, %v1390_v52  ;;  %5110 = vmatprep.subr.mxu0 %v1410_v51  ;;  %v1635_v39 = vld [vmem:[#allocation4 + $0x38] sm:$0xff] }
 0x95e   :  { %v1395_v55 = vmul.f32 1.442695, %v1392_v54 }
 0x960   :  { %5356 = vpow2.f32 %v1395_v55 }
 0x961   :  { %5358 = vrcp.f32 %v1399_v50 }
 0x96d   :  { %v5357_v56 = vpop.eup %5356 }
 0x96e   :  { %v1400_v57 = vsel %vm524_vm4, %v5357_v56, 0.0  ;;  %v5359_v59 = vpop.eup %5358 }
 0x96f   :  { %1401 = vadd.xlane.f32.xlu0 %v1400_v57  ;;  %v1405_v1 = vmul.f32 %v5359_v59, %v5351_v37  ;;  %v1638_v37 = vld [vmem:[#allocation4 + $0x50] sm:$0xff]  ;;  %v4717_v59 = vld [vmem:[#allocation2 + $0x26a] ss:$0 sm:$0xff] }
 0x985   :  { %1407 = vrot.lane.b32.xlu0 %v5550_v53, %s5492_s14 }
 0x9f8   :  { %v5097_v60 = vpop.f32.mrf.mxu0  ;;  %v1402_v62 = vpop.xlane.xlu0 %1401 }
 0x9f9   :  { %5360 = vrcp.f32 %v1402_v62  ;;  %v4718_v62 = vld [vmem:[#allocation2 + $0x26b] ss:$0 sm:$0xff] }
 0x9fa   :  { %v1197_v63 = vpop.f32.mrf.mxu0 }
 0x9fb   :  { %5100 = vmatprep.mubr.msk.f32.mxu0 %vm436_vm3, %v1197_v63 }
 0x9fc   :  { %5101 = vmatmul.mubr.msk.f32.vlgmr.msra.gmra.mxu0 %vm436_vm3, %v5097_v60  ;;  %v1408_v2 = vpop.permute.xlu0 %1407 }
 0x9fd   :  { %5111 = vmatpush3.msra.mxu0 %v1410_v51  ;;  %5114 = vmatprep.mubr.msk.f32.mxu0 %vm524_vm4, %v1405_v1 }
 0x9fe   :  { %5112 = vmatprep.subr.mxu0 %v1408_v2 }
 0x9ff   :  { %5113 = vmatpush3.msra.mxu0 %v1408_v2 }
 0xa00   :  { %5117 = vmatprep.subr.mxu0 %v1494_v4 }
 0xa06   :  { %v5361_v3 = vpop.eup %5360 }
 0xa07   :  { %v1406_v53 = vmul.f32 %v5361_v3, %v5357_v56 }
 0xa09   :  { %5115 = vmatmul.mubr.msk.f32.vlgmr.msra.gmra.mxu0 %vm524_vm4, %v1406_v53 }
 0xa0a   :  { %5118 = vmatpush3.msra.mxu0 %v1494_v4 }
 0xabc   :  { %v5102_v5 = vpop.f32.mrf.mxu0 }
 0xabd   :  { %v1289_v7 = vadd.f32 %v5102_v5, %v5638_v8 }
 0xabe   :  { %v1279_v10 = vpop.f32.mrf.mxu0 }
 0xabf   :  { %v1288_v11 = vadd.f32 %v1279_v10, %v994_v6 }
 0xac9   :  { %v5116_v12 = vpop.f32.mrf.mxu0 }
 0xacb   :  { %v1485_v13 = vpop.f32.mrf.mxu0 }
 0xacc   :  { %5119 = vmatprep.mubr.msk.f32.mxu0 %vm436_vm3, %v1485_v13 }
 0xacd   :  { %5120 = vmatmul.mubr.msk.f32.vlgmr.msra.gmra.mxu0 %vm436_vm3, %v5116_v12  ;;  %v1879_v12 = vld [vmem:[%s6107_s3 + $0x8] sm:$0xff] }
 0xace   :  { %1791 = vmatprep.mubr.f32.mxu0 %v5493_v46 }
 0xb8d   :  { %v5121_v14 = vpop.f32.mrf.mxu0 }
 0xb8e   :  { %v1577_v16 = vadd.f32 %v5121_v14, %v1289_v7 }
 0xb8f   :  { %v1567_v17 = vpop.f32.mrf.mxu0 }
 0xb90   :  { %v1584_v18 = vadd.f32 %v4716_v15, %v1577_v16  ;;  %v1576_v19 = vadd.f32 %v1567_v17, %v1288_v11 }
 0xb92   :  { %v1583_v20 = vadd.f32 %v4716_v15, %v1576_v19  ;;  %v1586_v21 = vadd.f32 %v1584_v18, %v5542_v48 }
 0xb94   :  { %v1592_v9 = vsel %vm250_vm2, %v1586_v21, 0.0  ;;  %v1585_v8 = vadd.f32 %v1583_v20, %v5540_v47  ;;  %v1643_v47 = vld [vmem:[#allocation4 + $0x78] sm:$0xff] }
 0xb95   :  { %1593 = vadd.xlane.f32.xlu0 %v1592_v9  ;;  %1751 = vmatprep.subr.mxu0 %v1643_v47  ;;  %v1881_v47 = vld [vmem:[%s6107_s3 + $0x18] sm:$0xff] }
 0xb96   :  { %v1589_v22 = vsel %vm250_vm2, %v1585_v8, 0.0  ;;  %1752 = vmatpush1.msra.mxu0 %v1642_v33  ;;  %v4723_v33 = vld [vmem:[#allocation2 + $0x265] ss:$0 sm:$0xff] }
 0xb97   :  { %1590 = vadd.xlane.f32.xlu1 %v1589_v22  ;;  %1753 = vmatprep.subr.mxu0 %v1639_v35 }
 0xb98   :  { %1754 = vmatpush1.msra.mxu0 %v1638_v37 }
 0xb99   :  { %1755 = vmatprep.subr.mxu0 %v1635_v39 }
 0xb9a   :  { %1756 = vmatpush1.msra.mxu0 %v1634_v41 }
 0xb9b   :  { %1757 = vmatprep.subr.mxu0 %v1631_v43 }
 0xb9c   :  { %1758 = vmatpush1.msra.mxu0 %v1630_v45 }
 0xc1e   :  { %v1594_v23 = vpop.xlane.xlu0 %1593 }
 0xc1f   :  { %v1597_v24 = vmul.f32 0.03125, %v1594_v23 }
 0xc20   :  { %v1591_v25 = vpop.xlane.xlu1 %1590 }
 0xc21   :  { %v1599_v26 = vsub.f32 %v1586_v21, %v1597_v24  ;;  %v1596_v27 = vmul.f32 0.03125, %v1591_v25 }
 0xc23   :  { %v1598_v28 = vsub.f32 %v1585_v8, %v1596_v27  ;;  %v1601_v29 = vmul.f32 %v1599_v26, %v1599_v26 }
 0xc25   :  { %v1605_v30 = vsel %vm250_vm2, %v1601_v29, 0.0  ;;  %v1600_v31 = vmul.f32 %v1598_v28, %v1598_v28 }
 0xc26   :  { %1606 = vadd.xlane.f32.xlu0 %v1605_v30 }
 0xc27   :  { %v1602_v48 = vsel %vm250_vm2, %v1600_v31, 0.0 }
 0xc28   :  { %1603 = vadd.xlane.f32.xlu1 %v1602_v48 }
 0xcaf   :  { %v1607_v61 = vpop.xlane.xlu0 %1606 }
 0xcb0   :  { %v1609_v49 = vmul.f32 0.03125, %v1607_v61 }
 0xcb1   :  { %v1604_v50 = vpop.xlane.xlu1 %1603 }
 0xcb2   :  { %v1611_v51 = vadd.f32 1e-05, %v1609_v49  ;;  %v1608_v52 = vmul.f32 0.03125, %v1604_v50 }
 0xcb4   :  { %5362 = vrsqrt.f32 %v1611_v51  ;;  %v1610_v54 = vadd.f32 1e-05, %v1608_v52 }
 0xcb6   :  { %5364 = vrsqrt.f32 %v1610_v54 }
 0xcc1   :  { %v5363_v55 = vpop.eup %5362 }
 0xcc2   :  { %v1615_v58 = vmul.f32 %v5363_v55, %v1599_v26 }
 0xcc3   :  { %v5365_v56 = vpop.eup %5364 }
 0xcc4   :  { %v1614_v57 = vmul.f32 %v5365_v56, %v1598_v28  ;;  %v1621_v1 = vmul.f32 %v4717_v59, %v1615_v58 }
 0xcc6   :  { %v1620_v60 = vmul.f32 %v4717_v59, %v1614_v57  ;;  %v5689_v2 = vadd.f32 %v4718_v62, %v1621_v1 }
 0xcc8   :  { %v5681_v63 = vadd.f32 %v4718_v62, %v1620_v60 }
 0xcca   :  { %4719 = vmatmul.mubr.msk.f32.vlgmr.msra.gmra.mxu1 %vm250_vm2, %v5681_v63  ;;  %4721 = vmatmul.mubr.msk.f32.vlgmr.msra.gmra.mxu0 %vm250_vm2, %v5681_v63 }
 0xccb   :  { %1720 = vmatprep.mubr.f32.mxu1 %v5493_v46  ;;  %1797 = vmatprep.mubr.f32.mxu0 %v5493_v46 }
 0xcce   :  { %4720 = vmatmul.mubr.msk.f32.gmra.mxu1 %vm250_vm2, %v5689_v2  ;;  %4722 = vmatmul.mubr.msk.f32.gmra.mxu0 %vm250_vm2, %v5689_v2 }
 0xccf   :  { %4724 = vmatprep.mubr.msk.f32.mxu1 %vm1887_vm5, %v1879_v12 }
 0xd8a   :  { %v5695_v3 = vpop.f32.mrf.mxu1  ;;  %v5702_v6 = vpop.f32.mrf.mxu0 }
 0xd8c   :  { %v1718_v53 = vpop.f32.mrf.mxu1  ;;  %v5707_v7 = vpop.f32.mrf.mxu0 }
 0xd8d   :  { %1838 = vrot.lane.b32.xlu0 %v1718_v53, %s5481_s26 }
 0xd8e   :  { %v5698_v4 = vpop.f32.mrf.mxu1  ;;  %v5712_v10 = vpop.f32.mrf.mxu0 }
 0xd90   :  { %v1724_v5 = vpop.f32.mrf.mxu1  ;;  %v5717_v11 = vpop.f32.mrf.mxu0 }
 0xd91   :  { %1828 = vrot.lane.b32.xlu0 %v1724_v5, %s5482_s0  ;;  %1840 = vrot.lane.b32.xlu1 %v1724_v5, %s5481_s26 }
 0xd95   :  { %1820 = vrot.lane.b32.xlu0 %v5698_v4, %s5481_s26  ;;  %1834 = vrot.lane.b32.xlu1 %v1724_v5, %s5485_s7 }
 0xd99   :  { %1814 = vrot.lane.b32.xlu0 %v5698_v4, %s5485_s7  ;;  %1832 = vrot.lane.b32.xlu1 %v1718_v53, %s5485_s7 }
 0xd9d   :  { %1808 = vrot.lane.b32.xlu0 %v5698_v4, %s5482_s0  ;;  %1826 = vrot.lane.b32.xlu1 %v1718_v53, %s5482_s0 }
 0xda1   :  { %1874 = vrot.lane.b32.xlu0 %v5717_v11, %s5485_s7  ;;  %1818 = vrot.lane.b32.xlu1 %v5695_v3, %s5481_s26 }
 0xda5   :  { %1868 = vrot.lane.b32.xlu0 %v5717_v11, %s5482_s0  ;;  %1812 = vrot.lane.b32.xlu1 %v5695_v3, %s5485_s7 }
 0xda9   :  { %1860 = vrot.lane.b32.xlu0 %v5712_v10, %s5481_s26  ;;  %1806 = vrot.lane.b32.xlu1 %v5695_v3, %s5482_s0 }
 0xdad   :  { %1854 = vrot.lane.b32.xlu0 %v5712_v10, %s5485_s7  ;;  %1872 = vrot.lane.b32.xlu1 %v5707_v7, %s5485_s7 }
 0xdb1   :  { %1848 = vrot.lane.b32.xlu0 %v5712_v10, %s5482_s0  ;;  %1866 = vrot.lane.b32.xlu1 %v5707_v7, %s5482_s0 }
 0xdb5   :  { %1858 = vrot.lane.b32.xlu1 %v5702_v6, %s5481_s26 }
 0xdb9   :  { %1852 = vrot.lane.b32.xlu1 %v5702_v6, %s5485_s7 }
 0xdbd   :  { %1846 = vrot.lane.b32.xlu1 %v5702_v6, %s5482_s0 }
 0xdff   :  { %v1839_v13 = vpop.permute.xlu0 %1838 }
 0xe03   :  { %v1841_v14 = vpop.permute.xlu1 %1840  ;;  %v1829_v16 = vpop.permute.xlu0 %1828 }
 0xe04   :  { %1895 = vmatpush1.msra.mxu1 %v1841_v14 }
 0xe05   :  { %1896 = vmatprep.subr.mxu1 %v5493_v46 }
 0xe06   :  { %1897 = vmatpush1.msra.mxu1 %v1839_v13 }
 0xe07   :  { %1898 = vmatprep.subr.mxu1 %v5493_v46  ;;  %v1835_v15 = vpop.permute.xlu1 %1834  ;;  %v1821_v18 = vpop.permute.xlu0 %1820 }
 0xe08   :  { %1899 = vmatpush1.msra.mxu1 %v1835_v15 }
 0xe09   :  { %1900 = vmatprep.subr.mxu1 %v5493_v46 }
 0xe0b   :  { %v1833_v17 = vpop.permute.xlu1 %1832  ;;  %v1815_v21 = vpop.permute.xlu0 %1814 }
 0xe0c   :  { %1901 = vmatpush1.msra.mxu1 %v1833_v17 }
 0xe0d   :  { %1902 = vmatprep.subr.mxu1 %v5493_v46 }
 0xe0e   :  { %1903 = vmatpush1.msra.mxu1 %v1829_v16 }
 0xe0f   :  { %1904 = vmatprep.subr.mxu1 %v5493_v46  ;;  %v1827_v19 = vpop.permute.xlu1 %1826  ;;  %v1809_v8 = vpop.permute.xlu0 %1808 }
 0xe10   :  { %1905 = vmatpush1.msra.mxu1 %v1827_v19 }
 0xe11   :  { %1906 = vmatprep.subr.mxu1 %v5493_v46 }
 0xe12   :  { %1907 = vmatpush1.msra.mxu1 %v1724_v5  ;;  %v4727_v5 = vld [vmem:[#allocation2 + $0x267] ss:$0 sm:$0xff] }
 0xe13   :  { %1908 = vmatprep.subr.mxu1 %v5493_v46  ;;  %v1819_v20 = vpop.permute.xlu1 %1818  ;;  %v1875_v23 = vpop.permute.xlu0 %1874 }
 0xe14   :  { %1909 = vmatpush1.msra.mxu1 %v1718_v53  ;;  %v4726_v53 = vld [vmem:[#allocation2 + $0x266] ss:$0 sm:$0xff] }
 0xe15   :  { %1910 = vmatprep.subr.mxu1 %v5493_v46 }
 0xe16   :  { %1911 = vmatpush1.msra.mxu1 %v1821_v18 }
 0xe17   :  { %1912 = vmatprep.subr.mxu1 %v5493_v46  ;;  %v1813_v9 = vpop.permute.xlu1 %1812  ;;  %v1869_v25 = vpop.permute.xlu0 %1868 }
 0xe18   :  { %1913 = vmatpush1.msra.mxu1 %v1819_v20 }
 0xe19   :  { %1914 = vmatprep.subr.mxu1 %v5493_v46 }
 0xe1a   :  { %1915 = vmatpush1.msra.mxu1 %v1815_v21 }
 0xe1b   :  { %1916 = vmatprep.subr.mxu1 %v5493_v46  ;;  %v1807_v22 = vpop.permute.xlu1 %1806  ;;  %v1861_v27 = vpop.permute.xlu0 %1860 }
 0xe1c   :  { %1917 = vmatpush1.msra.mxu1 %v1813_v9 }
 0xe1d   :  { %1918 = vmatprep.subr.mxu1 %v5493_v46 }
 0xe1e   :  { %1919 = vmatpush1.msra.mxu1 %v1809_v8 }
 0xe1f   :  { %1920 = vmatprep.subr.mxu1 %v5493_v46  ;;  %v1873_v24 = vpop.permute.xlu1 %1872  ;;  %v1855_v29 = vpop.permute.xlu0 %1854 }
 0xe20   :  { %1921 = vmatpush1.msra.mxu1 %v1807_v22 }
 0xe21   :  { %1922 = vmatprep.subr.mxu1 %v5493_v46 }
 0xe22   :  { %1923 = vmatpush1.msra.mxu1 %v5698_v4 }
 0xe23   :  { %1924 = vmatprep.subr.mxu1 %v5493_v46  ;;  %v1867_v26 = vpop.permute.xlu1 %1866  ;;  %v1849_v31 = vpop.permute.xlu0 %1848 }
 0xe24   :  { %1925 = vmatpush1.msra.mxu1 %v5695_v3 }
 0xe25   :  { %1930 = vmatprep.subr.mxu1 %v5493_v46 }
 0xe26   :  { %1931 = vmatpush2.msra.mxu1 %v1875_v23 }
 0xe27   :  { %1932 = vmatprep.subr.mxu1 %v5493_v46  ;;  %v1859_v28 = vpop.permute.xlu1 %1858 }
 0xe28   :  { %1933 = vmatpush2.msra.mxu1 %v1873_v24 }
 0xe29   :  { %1934 = vmatprep.subr.mxu1 %v5493_v46 }
 0xe2a   :  { %1935 = vmatpush2.msra.mxu1 %v1869_v25  ;;  %v2056_v25 = vld [vmem:[#allocation2 + $0x108] sm:$0xff] }
 0xe2b   :  { %1936 = vmatprep.subr.mxu1 %v5493_v46  ;;  %v1853_v30 = vpop.permute.xlu1 %1852  ;;  %5122 = vmatprep.subr.mxu0 %v2056_v25 }
 0xe2c   :  { %1937 = vmatpush2.msra.mxu1 %v1867_v26  ;;  %v2055_v26 = vld [vmem:[#allocation2 + $0x100] sm:$0xff]  ;;  %5123 = vmatpush3.msra.mxu0 %v2056_v25 }
 0xe2d   :  { %1938 = vmatprep.subr.mxu1 %v5493_v46  ;;  %5124 = vmatprep.subr.mxu0 %v2055_v26 }
 0xe2e   :  { %1939 = vmatpush2.msra.mxu1 %v5717_v11  ;;  %5125 = vmatpush3.msra.mxu0 %v2055_v26 }
 0xe2f   :  { %1940 = vmatprep.subr.mxu1 %v5493_v46  ;;  %v1847_v48 = vpop.permute.xlu1 %1846 }
 0xe30   :  { %1941 = vmatpush2.msra.mxu1 %v5707_v7 }
 0xe31   :  { %1942 = vmatprep.subr.mxu1 %v5493_v46 }
 0xe32   :  { %1943 = vmatpush2.msra.mxu1 %v1861_v27  ;;  %v2053_v27 = vld [vmem:[#allocation2 + $0xf0] sm:$0xff] }
 0xe33   :  { %1944 = vmatprep.subr.mxu1 %v5493_v46 }
 0xe34   :  { %1945 = vmatpush2.msra.mxu1 %v1859_v28  ;;  %v2152_v28 = vld [vmem:[#allocation2 + $0x148] sm:$0xff] }
 0xe35   :  { %1946 = vmatprep.subr.mxu1 %v5493_v46 }
 0xe36   :  { %1947 = vmatpush2.msra.mxu1 %v1855_v29 }
 0xe37   :  { %1948 = vmatprep.subr.mxu1 %v5493_v46 }
 0xe38   :  { %1949 = vmatpush2.msra.mxu1 %v1853_v30 }
 0xe39   :  { %1950 = vmatprep.subr.mxu1 %v5493_v46 }
 0xe3a   :  { %1951 = vmatpush2.msra.mxu1 %v1849_v31 }
 0xe3b   :  { %1952 = vmatprep.subr.mxu1 %v5493_v46 }
 0xe3c   :  { %1953 = vmatpush2.msra.mxu1 %v1847_v48 }
 0xe3d   :  { %1954 = vmatprep.subr.mxu1 %v5493_v46 }
 0xe3e   :  { %1955 = vmatpush2.msra.mxu1 %v5712_v10 }
 0xe3f   :  { %1956 = vmatprep.subr.mxu1 %v5493_v46 }
 0xe40   :  { %1957 = vmatpush2.msra.mxu1 %v5702_v6 }
 0xe41   :  { %1959 = vmatmul.mubr.f32.vlgmr.msra.gmra.mxu1 %v1878_v32 }
 0xe42   :  { %4725 = vmatprep.mubr.msk.f32.mxu1 %vm1887_vm5, %v1881_v47 }
 0xe45   :  { %1964 = vmatmul.mubr.f32.gmra.mxu1 %v1880_v0 }
 0xf01   :  { %v1960_v34 = vpop.f32.mrf.mxu1 }
 0xf02   :  { %v1961_v35 = vadd.f32 %v4723_v33, %v1960_v34 }
 0xf03   :  { %v1962_v36 = vpop.f32.mrf.mxu1 }
 0xf04   :  { %v1969_v37 = vadd.f32 %v1961_v35, %v5681_v63  ;;  %v4729_v35 = vld [vmem:[#allocation2 + $0x26d] ss:$0 sm:$0xff] }
 0xf05   :  { %v1965_v38 = vpop.f32.mrf.mxu1 }
 0xf06   :  { %v1966_v39 = vadd.f32 %v4723_v33, %v1965_v38  ;;  %v1973_v40 = vsel %vm250_vm2, %v1969_v37, 0.0  ;;  %v4728_v33 = vld [vmem:[#allocation2 + $0x26c] ss:$0 sm:$0xff] }
 0xf07   :  { %v1967_v41 = vpop.f32.mrf.mxu1  ;;  %1974 = vadd.xlane.f32.xlu0 %v1973_v40 }
 0xf08   :  { %v1970_v42 = vadd.f32 %v1966_v39, %v5689_v2 }
 0xf0a   :  { %v1976_v43 = vsel %vm250_vm2, %v1970_v42, 0.0 }
 0xf0b   :  { %1977 = vadd.xlane.f32.xlu1 %v1976_v43  ;;  %v2150_v43 = vld [vmem:[#allocation2 + $0x138] sm:$0xff] }
 0xf90   :  { %v1975_v44 = vpop.xlane.xlu0 %1974 }
 0xf91   :  { %v1979_v45 = vmul.f32 0.03125, %v1975_v44  ;;  %v2149_v44 = vld [vmem:[#allocation2 + $0x130] sm:$0xff] }
 0xf93   :  { %v1981_v61 = vsub.f32 %v1969_v37, %v1979_v45  ;;  %v2148_v45 = vld [vmem:[#allocation2 + $0x128] sm:$0xff] }
 0xf94   :  { %v1978_v49 = vpop.xlane.xlu1 %1977 }
 0xf95   :  { %v1980_v50 = vmul.f32 0.03125, %v1978_v49  ;;  %v1983_v51 = vmul.f32 %v1981_v61, %v1981_v61  ;;  %v2146_v49 = vld [vmem:[#allocation2 + $0x118] sm:$0xff] }
 0xf97   :  { %v1982_v52 = vsub.f32 %v1970_v42, %v1980_v50  ;;  %v1985_v54 = vsel %vm250_vm2, %v1983_v51, 0.0  ;;  %v2151_v42 = vld [vmem:[#allocation2 + $0x140] sm:$0xff]  ;;  %v2145_v50 = vld [vmem:[#allocation2 + $0x110] sm:$0xff]  ;;  %v4730_v51 = vld [vmem:[#allocation2 + $0x268] ss:$0 sm:$0xff] }
 0xf98   :  { %1986 = vadd.xlane.f32.xlu0 %v1985_v54 }
 0xf99   :  { %v1984_v55 = vmul.f32 %v1982_v52, %v1982_v52 }
 0xf9b   :  { %v1988_v56 = vsel %vm250_vm2, %v1984_v55, 0.0 }
 0xf9c   :  { %1989 = vadd.xlane.f32.xlu0 %v1988_v56 }
0x1021   :  { %v1987_v57 = vpop.xlane.xlu0 %1986 }
0x1022   :  { %v1991_v58 = vmul.f32 0.03125, %v1987_v57 }
0x1024   :  { %v1993_v59 = vadd.f32 1e-05, %v1991_v58 }
0x1025   :  { %v1990_v60 = vpop.xlane.xlu0 %1989 }
0x1026   :  { %5366 = vrsqrt.f32 %v1993_v59  ;;  %v1992_v62 = vmul.f32 0.03125, %v1990_v60  ;;  %v4733_v59 = vld [vmem:[#allocation2 + $0x269] ss:$0 sm:$0xff] }
0x1028   :  { %v1994_v1 = vadd.f32 1e-05, %v1992_v62 }
0x102a   :  { %5368 = vrsqrt.f32 %v1994_v1 }
0x1033   :  { %v5367_v3 = vpop.eup %5366 }
0x1034   :  { %v1997_v4 = vmul.f32 %v5367_v3, %v1981_v61  ;;  %v2147_v61 = vld [vmem:[#allocation2 + $0x120] sm:$0xff] }
0x1036   :  { %v2003_v6 = vmul.f32 %v4726_v53, %v1997_v4 }
0x1037   :  { %v5369_v7 = vpop.eup %5368 }
0x1038   :  { %v2009_v10 = vadd.f32 %v4727_v5, %v2003_v6  ;;  %v1998_v11 = vmul.f32 %v5369_v7, %v1982_v52 }
0x103a   :  { %v2011_v12 = vadd.f32 %v2009_v10, %v5681_v63  ;;  %v2004_v13 = vmul.f32 %v4726_v53, %v1998_v11 }
0x103c   :  { %v2015_v14 = vsel %vm250_vm2, %v2011_v12, 0.0  ;;  %v2010_v15 = vadd.f32 %v4727_v5, %v2004_v13 }
0x103d   :  { %2016 = vadd.xlane.f32.xlu1 %v2015_v14 }
0x103e   :  { %v2012_v16 = vadd.f32 %v2010_v15, %v5689_v2  ;;  %v2054_v2 = vld [vmem:[#allocation2 + $0xf8] sm:$0xff] }
0x103f   :  { %5126 = vmatprep.subr.mxu0 %v2054_v2 }
0x1040   :  { %v2018_v17 = vsel %vm250_vm2, %v2012_v16, 0.0  ;;  %5127 = vmatpush3.msra.mxu0 %v2054_v2  ;;  %v4736_v2 = vld [vmem:[#allocation2 + $0x26e] ss:$0 sm:$0xff] }
0x1041   :  { %2019 = vadd.xlane.f32.xlu0 %v2018_v17  ;;  %5128 = vmatprep.subr.mxu0 %v2053_v27 }
0x1042   :  { %5129 = vmatpush3.msra.mxu0 %v2053_v27 }
0x1043   :  { %5133 = vmatprep.subr.mxu0 %v2152_v28 }
0x10c6   :  { %v2017_v18 = vpop.xlane.xlu1 %2016 }
0x10c7   :  { %v2021_v19 = vmul.f32 0.03125, %v2017_v18 }
0x10c9   :  { %v2023_v20 = vsub.f32 %v2011_v12, %v2021_v19  ;;  %v2284_v19 = vld [vmem:[#allocation2 + $0x168] sm:$0xff] }
0x10ca   :  { %v2020_v21 = vpop.xlane.xlu0 %2019 }
0x10cb   :  { %v2022_v9 = vmul.f32 0.03125, %v2020_v21  ;;  %v2025_v8 = vmul.f32 %v2023_v20, %v2023_v20  ;;  %v2282_v21 = vld [vmem:[#allocation2 + $0x158] sm:$0xff] }
0x10cd   :  { %v2024_v22 = vsub.f32 %v2012_v16, %v2022_v9  ;;  %v2027_v23 = vsel %vm250_vm2, %v2025_v8, 0.0  ;;  %v2281_v9 = vld [vmem:[#allocation2 + $0x150] sm:$0xff] }
0x10ce   :  { %2028 = vadd.xlane.f32.xlu1 %v2027_v23 }
0x10cf   :  { %v2026_v63 = vmul.f32 %v2024_v22, %v2024_v22 }
0x10d1   :  { %v2030_v24 = vsel %vm250_vm2, %v2026_v63, 0.0 }
0x10d2   :  { %2031 = vadd.xlane.f32.xlu0 %v2030_v24 }
0x1157   :  { %v2029_v29 = vpop.xlane.xlu1 %2028 }
0x1158   :  { %v2033_v30 = vmul.f32 0.03125, %v2029_v29 }
0x115a   :  { %v2035_v31 = vadd.f32 1e-05, %v2033_v30 }
0x115b   :  { %v2032_v48 = vpop.xlane.xlu0 %2031 }
0x115c   :  { %5370 = vrsqrt.f32 %v2035_v31  ;;  %v2034_v32 = vmul.f32 0.03125, %v2032_v48  ;;  %v4737_v31 = vld [vmem:[#allocation2 + $0x26f] ss:$0 sm:$0xff] }
0x115e   :  { %v2036_v47 = vadd.f32 1e-05, %v2034_v32 }
0x1160   :  { %5372 = vrsqrt.f32 %v2036_v47 }
0x1169   :  { %v5371_v0 = vpop.eup %5370 }
0x116a   :  { %v2039_v34 = vmul.f32 %v5371_v0, %v2023_v20  ;;  %v2283_v20 = vld [vmem:[#allocation2 + $0x160] sm:$0xff]  ;;  %v2373_v0 = vld [vmem:[#allocation2 + $0x170] sm:$0xff] }
0x116c   :  { %v2045_v36 = vmul.f32 %v4728_v33, %v2039_v34 }
0x116d   :  { %v5373_v37 = vpop.eup %5372 }
0x116e   :  { %v2040_v38 = vmul.f32 %v5373_v37, %v2024_v22  ;;  %v2051_v39 = vadd.f32 %v4729_v35, %v2045_v36 }
0x1170   :  { %v2046_v40 = vmul.f32 %v4728_v33, %v2040_v38  ;;  %5130 = vmatprep.mubr.msk.f32.mxu0 %vm250_vm2, %v2051_v39  ;;  %v4738_v33 = vld [vmem:[#allocation2 + $0x270] ss:$0 sm:$0xff] }
0x1172   :  { %v2052_v41 = vadd.f32 %v4729_v35, %v2046_v40  ;;  %v2467_v40 = vld [vmem:[#allocation2 + $0x190] sm:$0xff] }
0x1174   :  { %5131 = vmatmul.mubr.msk.f32.vlgmr.msra.gmra.mxu0 %vm250_vm2, %v2052_v41 }
0x1175   :  { %5134 = vmatpush3.msra.mxu0 %v2152_v28 }
0x1176   :  { %5135 = vmatprep.subr.mxu0 %v2151_v42 }
0x1177   :  { %5136 = vmatpush3.msra.mxu0 %v2151_v42  ;;  %v2465_v42 = vld [vmem:[#allocation2 + $0x180] sm:$0xff] }
0x1178   :  { %5137 = vmatprep.subr.mxu0 %v2150_v43 }
0x1179   :  { %5138 = vmatpush3.msra.mxu0 %v2150_v43  ;;  %v2464_v43 = vld [vmem:[#allocation2 + $0x178] sm:$0xff] }
0x117a   :  { %5139 = vmatprep.subr.mxu0 %v2149_v44 }
0x117b   :  { %5140 = vmatpush3.msra.mxu0 %v2149_v44 }
0x117c   :  { %5141 = vmatprep.subr.mxu0 %v2148_v45 }
0x117d   :  { %5142 = vmatpush3.msra.mxu0 %v2148_v45 }
0x117e   :  { %5143 = vmatprep.subr.mxu0 %v2147_v61 }
0x117f   :  { %5144 = vmatpush3.msra.mxu0 %v2147_v61 }
0x1180   :  { %5145 = vmatprep.subr.mxu0 %v2146_v49 }
0x1181   :  { %5146 = vmatpush3.msra.mxu0 %v2146_v49  ;;  %v4743_v49 = vld [vmem:[#allocation2 + $0x271] ss:$0 sm:$0xff] }
0x1182   :  { %5147 = vmatprep.subr.mxu0 %v2145_v50 }
0x1183   :  { %5148 = vmatpush3.msra.mxu0 %v2145_v50 }
0x1184   :  { %5152 = vmatprep.subr.mxu0 %v2284_v19 }
0x1234   :  { %v5132_v52 = vpop.f32.mrf.mxu0 }
0x1235   :  { %v2140_v54 = vadd.f32 %v5132_v52, %v4730_v51 }
0x1236   :  { %v2134_v55 = vpop.f32.mrf.mxu0 }
0x1237   :  { %v2135_v56 = vadd.f32 %v4730_v51, %v2134_v55  ;;  %v2144_v58 = vmax.f32 %v2140_v54, 0.0  ;;  %v4744_v54 = vld [vmem:[#allocation2 + $0x272] ss:$0 sm:$0xff] }
0x1239   :  { %v2143_v57 = vmax.f32 %v2135_v56, 0.0 }
0x123b   :  { %5149 = vmatprep.mubr.msk.f32.mxu0 %vm159_vm1, %v2143_v57 }
0x123c   :  { %5150 = vmatmul.mubr.msk.f32.vlgmr.msra.gmra.mxu0 %vm159_vm1, %v2144_v58 }
0x123d   :  { %5153 = vmatpush3.msra.mxu0 %v2284_v19 }
0x123e   :  { %5154 = vmatprep.subr.mxu0 %v2283_v20 }
0x123f   :  { %5155 = vmatpush3.msra.mxu0 %v2283_v20 }
0x1240   :  { %5156 = vmatprep.subr.mxu0 %v2282_v21 }
0x1241   :  { %5157 = vmatpush3.msra.mxu0 %v2282_v21 }
0x1242   :  { %5158 = vmatprep.subr.mxu0 %v2281_v9 }
0x1243   :  { %5159 = vmatpush3.msra.mxu0 %v2281_v9 }
0x1244   :  { %5163 = vmatprep.subr.mxu0 %v2373_v0 }
0x12fc   :  { %v5151_v60 = vpop.f32.mrf.mxu0 }
0x12fd   :  { %v2236_v62 = vadd.f32 %v5151_v60, %v4733_v59 }
0x12fe   :  { %v2230_v1 = vpop.f32.mrf.mxu0 }
0x12ff   :  { %v2231_v3 = vadd.f32 %v4733_v59, %v2230_v1  ;;  %v2240_v53 = vadd.f32 %v2236_v62, %v2052_v41  ;;  %v2466_v41 = vld [vmem:[#allocation2 + $0x188] sm:$0xff] }
0x1301   :  { %v2246_v4 = vsel %vm250_vm2, %v2240_v53, 0.0  ;;  %v2239_v5 = vadd.f32 %v2231_v3, %v2051_v39 }
0x1302   :  { %2247 = vadd.xlane.f32.xlu0 %v2246_v4  ;;  %v5842_v4 = vld [vmem:[#allocation2 + $0xa8] sm:$0xff] }
0x1303   :  { %v2243_v6 = vsel %vm250_vm2, %v2239_v5, 0.0 }
0x1304   :  { %2244 = vadd.xlane.f32.xlu1 %v2243_v6 }
0x138b   :  { %v2248_v7 = vpop.xlane.xlu0 %2247 }
0x138c   :  { %v2250_v10 = vmul.f32 0.03125, %v2248_v7  ;;  %v5846_v7 = vld [vmem:[#allocation2 + $0xa0] sm:$0xff] }
0x138d   :  { %v2245_v11 = vpop.xlane.xlu1 %2244 }
0x138e   :  { %v2252_v12 = vsub.f32 %v2240_v53, %v2250_v10  ;;  %v2249_v13 = vmul.f32 0.03125, %v2245_v11 }
0x1390   :  { %v2251_v14 = vsub.f32 %v2239_v5, %v2249_v13  ;;  %v2254_v15 = vmul.f32 %v2252_v12, %v2252_v12 }
0x1392   :  { %v2258_v16 = vsel %vm250_vm2, %v2254_v15, 0.0  ;;  %v2253_v17 = vmul.f32 %v2251_v14, %v2251_v14 }
0x1393   :  { %2259 = vadd.xlane.f32.xlu0 %v2258_v16 }
0x1394   :  { %v2255_v18 = vsel %vm250_vm2, %v2253_v17, 0.0 }
0x1395   :  { %2256 = vadd.xlane.f32.xlu1 %v2255_v18 }
0x141c   :  { %v2260_v8 = vpop.xlane.xlu0 %2259 }
0x141d   :  { %v2262_v22 = vmul.f32 0.03125, %v2260_v8 }
0x141e   :  { %v2257_v23 = vpop.xlane.xlu1 %2256 }
0x141f   :  { %v2264_v63 = vadd.f32 1e-05, %v2262_v22  ;;  %v2261_v24 = vmul.f32 0.03125, %v2257_v23 }
0x1421   :  { %5374 = vrsqrt.f32 %v2264_v63  ;;  %v2263_v25 = vadd.f32 1e-05, %v2261_v24 }
0x1423   :  { %5376 = vrsqrt.f32 %v2263_v25 }
0x142e   :  { %v5375_v26 = vpop.eup %5374 }
0x142f   :  { %v2268_v27 = vmul.f32 %v5375_v26, %v2252_v12 }
0x1430   :  { %v5377_v28 = vpop.eup %5376 }
0x1431   :  { %v2267_v29 = vmul.f32 %v5377_v28, %v2251_v14  ;;  %v2274_v30 = vmul.f32 %v4736_v2, %v2268_v27 }
0x1433   :  { %v2273_v48 = vmul.f32 %v4736_v2, %v2267_v29  ;;  %v2280_v47 = vadd.f32 %v4737_v31, %v2274_v30 }
0x1435   :  { %v2279_v32 = vadd.f32 %v4737_v31, %v2273_v48 }
0x1437   :  { %5160 = vmatprep.mubr.msk.f32.mxu0 %vm250_vm2, %v2279_v32 }
0x1438   :  { %5161 = vmatmul.mubr.msk.f32.vlgmr.msra.gmra.mxu0 %vm250_vm2, %v2280_v47 }
0x1439   :  { %5164 = vmatpush3.msra.mxu0 %v2373_v0 }
0x143a   :  { %5168 = vmatprep.subr.mxu0 %v2467_v40 }
0x14f8   :  { %v5162_v34 = vpop.f32.mrf.mxu0 }
0x14f9   :  { %v2368_v35 = vadd.f32 %v5162_v34, %v4738_v33 }
0x14fa   :  { %v2362_v36 = vpop.f32.mrf.mxu0 }
0x14fb   :  { %v2363_v37 = vadd.f32 %v4738_v33, %v2362_v36  ;;  %v2372_v39 = vmax.f32 %v2368_v35, 0.0 }
0x14fd   :  { %v2371_v38 = vmax.f32 %v2363_v37, 0.0  ;;  %v2961_v37 = vld [vmem:[#allocation2 + $0x1a0] sm:$0xff] }
0x14ff   :  { %5165 = vmatprep.mubr.msk.f32.mxu0 %vm436_vm3, %v2371_v38 }
0x1500   :  { %5166 = vmatmul.mubr.msk.f32.vlgmr.msra.gmra.mxu0 %vm436_vm3, %v2372_v39 }
0x1501   :  { %5169 = vmatpush3.msra.mxu0 %v2467_v40 }
0x1502   :  { %5170 = vmatprep.subr.mxu0 %v2466_v41 }
0x1503   :  { %5171 = vmatpush3.msra.mxu0 %v2466_v41 }
0x1504   :  { %5172 = vmatprep.subr.mxu0 %v2465_v42 }
0x1505   :  { %5173 = vmatpush3.msra.mxu0 %v2465_v42 }
0x1506   :  { %5174 = vmatprep.subr.mxu0 %v2464_v43 }
0x1507   :  { %5175 = vmatpush3.msra.mxu0 %v2464_v43 }
0x15c0   :  { %v5167_v44 = vpop.f32.mrf.mxu0 }
0x15c1   :  { %v2456_v45 = vadd.f32 %v5167_v44, %v2280_v47 }
0x15c2   :  { %v2446_v61 = vpop.f32.mrf.mxu0 }
0x15c3   :  { %v2455_v50 = vadd.f32 %v2446_v61, %v2279_v32  ;;  %v5820_v52 = vadd.f32 %v4743_v49, %v2456_v45 }
0x15c5   :  { %v5818_v51 = vadd.f32 %v4743_v49, %v2455_v50 }
0x15c7   :  { %5176 = vmatprep.mubr.msk.f32.mxu0 %vm250_vm2, %v5818_v51 }
0x15c8   :  { %5177 = vmatmul.mubr.msk.f32.vlgmr.msra.gmra.mxu0 %vm250_vm2, %v5820_v52 }
0x1688   :  { %v5178_v55 = vpop.f32.mrf.mxu0 }
0x1689   :  { %v5826_v56 = vadd.f32 %v5178_v55, %v4744_v54 }
0x168a   :  { %v2545_v57 = vpop.f32.mrf.mxu0 }
0x168b   :  { %v5828_v58 = vadd.f32 %v4744_v54, %v2545_v57  ;;  %2558 = vrot.lane.b32.xlu1 %v5826_v56, %s5482_s0 }
0x168d   :  { %2556 = vrot.lane.b32.xlu0 %v5828_v58, %s5482_s0  ;;  %5183 = vmatprep.mubr.msk.f32.mxu0 %vm436_vm3, %v5828_v58 }
0x16fd   :  { %v2559_v59 = vpop.permute.xlu1 %2558 }
0x16fe   :  { %5179 = vmatprep.subr.msk.mxu0 %vm436_vm3, %v2559_v59 }
0x16ff   :  { %5180 = vmatpush3.xpose.msk.msra.mxu0 %vm436_vm3, %v2559_v59  ;;  %v2557_v60 = vpop.permute.xlu0 %2556 }
0x1700   :  { %5181 = vmatprep.subr.msk.mxu0 %vm436_vm3, %v2557_v60 }
0x1703   :  { %5182 = vmatpush3.xpose.msk.msra.mxu0 %vm436_vm3, %v2557_v60  ;;  %v2756_v60 = vld [vmem:[#allocation2 + $0x198] sm:$0xff] }
0x1706   :  { %5184 = vmatmul.mubr.msk.f32.vlgmr.msra.gmra.mxu0 %vm436_vm3, %v5826_v56 }
0x17c6   :  { %v5185_v62 = vpop.f32.mrf.mxu0 }
0x17c7   :  { %v2644_v1 = vmul.f32 0.35355338, %v5185_v62 }
0x17c8   :  { %v2634_v3 = vpop.f32.mrf.mxu0 }
0x17c9   :  { %v2643_v53 = vmul.f32 0.35355338, %v2634_v3  ;;  %v2646_v5 = vadd.f32 %v5842_v4, %v2644_v1 }
0x17cb   :  { %v2650_v6 = vsel %vm524_vm4, %v2646_v5, -inf  ;;  %v2645_v10 = vadd.f32 %v5846_v7, %v2643_v53 }
0x17cc   :  { %2651 = vmax.xlane.f32.xlu0 %v2650_v6 }
0x17cd   :  { %v2647_v11 = vsel %vm524_vm4, %v2645_v10, -inf }
0x17ce   :  { %2648 = vmax.xlane.f32.xlu1 %v2647_v11 }
0x17df   :  { %2671 = vrot.lane.b32.xlu1 %v5826_v56, %s5485_s7 }
0x17e3   :  { %2763 = vrot.lane.b32.xlu1 %v5826_v56, %s5483_s5 }
0x17e7   :  { %2761 = vrot.lane.b32.xlu1 %v5828_v58, %s5483_s5 }
0x1855   :  { %v2652_v12 = vpop.xlane.xlu0 %2651 }
0x1856   :  { %v2654_v13 = vsub.f32 %v2646_v5, %v2652_v12 }
0x1857   :  { %v2649_v14 = vpop.xlane.xlu1 %2648 }
0x1858   :  { %v2657_v15 = vmul.f32 1.442695, %v2654_v13  ;;  %v2653_v16 = vsub.f32 %v2645_v10, %v2649_v14 }
0x185a   :  { %5378 = vpow2.f32 %v2657_v15  ;;  %v2655_v17 = vmul.f32 1.442695, %v2653_v16 }
0x185b   :  { %v2672_v18 = vpop.permute.xlu1 %2671 }
0x185c   :  { %5380 = vpow2.f32 %v2655_v17  ;;  %5186 = vmatprep.subr.mxu0 %v2672_v18 }
0x185d   :  { %5187 = vmatpush3.msra.mxu0 %v2672_v18 }
0x185f   :  { %v2764_v8 = vpop.permute.xlu1 %2763 }
0x1863   :  { %v2762_v22 = vpop.permute.xlu1 %2761 }
0x1867   :  { %v5379_v19 = vpop.eup %5378 }
0x1868   :  { %v2662_v20 = vsel %vm524_vm4, %v5379_v19, 0.0 }
0x1869   :  { %v5381_v21 = vpop.eup %5380  ;;  %2663 = vadd.xlane.f32.xlu0 %v2662_v20 }
0x186a   :  { %v2659_v9 = vsel %vm524_vm4, %v5381_v21, 0.0 }
0x186b   :  { %2660 = vadd.xlane.f32.xlu1 %v2659_v9 }
0x187c   :  { %2759 = vrot.lane.b32.xlu1 %v5826_v56, %s5484_s6 }
0x187f   :  { %2669 = vrot.lane.b32.xlu0 %v5828_v58, %s5485_s7 }
0x1883   :  { %2757 = vrot.lane.b32.xlu0 %v5828_v58, %s5484_s6 }
0x18f2   :  { %v2664_v23 = vpop.xlane.xlu0 %2663 }
0x18f3   :  { %5382 = vrcp.f32 %v2664_v23 }
0x18f4   :  { %v2661_v63 = vpop.xlane.xlu1 %2660 }
0x18f5   :  { %5384 = vrcp.f32 %v2661_v63 }
0x18f6   :  { %v2670_v24 = vpop.permute.xlu0 %2669 }
0x18f7   :  { %5188 = vmatprep.subr.mxu0 %v2670_v24 }
0x18f8   :  { %5189 = vmatpush3.msra.mxu0 %v2670_v24  ;;  %v2760_v29 = vpop.permute.xlu1 %2759 }
0x18f9   :  { %5193 = vmatprep.subr.msk.mxu0 %vm436_vm3, %v2764_v8 }
0x18fa   :  { %v2758_v28 = vpop.permute.xlu0 %2757 }
0x1900   :  { %v5383_v25 = vpop.eup %5382 }
0x1901   :  { %v2668_v27 = vmul.f32 %v5383_v25, %v5379_v19 }
0x1902   :  { %v5385_v26 = vpop.eup %5384 }
0x1903   :  { %v2667_v2 = vmul.f32 %v5385_v26, %v5381_v21 }
0x1905   :  { %5190 = vmatprep.mubr.msk.f32.mxu0 %vm524_vm4, %v2667_v2 }
0x1906   :  { %5191 = vmatmul.mubr.msk.f32.vlgmr.msra.gmra.mxu0 %vm524_vm4, %v2668_v27 }
0x1907   :  { %5194 = vmatpush3.xpose.msk.msra.mxu0 %vm436_vm3, %v2764_v8  ;;  %5197 = vmatprep.mubr.msk.f32.mxu0 %vm436_vm3, %v2758_v28 }
0x1908   :  { %5195 = vmatprep.subr.msk.mxu0 %vm436_vm3, %v2762_v22 }
0x190b   :  { %5196 = vmatpush3.xpose.msk.msra.mxu0 %vm436_vm3, %v2762_v22 }
0x190c   :  { %5207 = vmatprep.subr.mxu0 %v2961_v37 }
0x190e   :  { %5198 = vmatmul.mubr.msk.f32.vlgmr.msra.gmra.mxu0 %vm436_vm3, %v2760_v29 }
0x190f   :  { %5208 = vmatpush3.msra.mxu0 %v2961_v37 }
0x19c6   :  { %v5192_v30 = vpop.f32.mrf.mxu0 }
0x19c8   :  { %v2747_v31 = vpop.f32.mrf.mxu0 }
0x19ce   :  { %v5199_v48 = vpop.f32.mrf.mxu0 }
0x19cf   :  { %v2849_v32 = vmul.f32 0.35355338, %v5199_v48 }
0x19d0   :  { %v2839_v47 = vpop.f32.mrf.mxu0 }
0x19d1   :  { %v2848_v0 = vmul.f32 0.35355338, %v2839_v47  ;;  %v2851_v33 = vadd.f32 %v5842_v4, %v2849_v32 }
0x19d3   :  { %v2855_v34 = vsel %vm524_vm4, %v2851_v33, -inf  ;;  %v2850_v35 = vadd.f32 %v5846_v7, %v2848_v0 }
0x19d4   :  { %2856 = vmax.xlane.f32.xlu1 %v2855_v34 }
0x19d5   :  { %v2852_v36 = vsel %vm524_vm4, %v2850_v35, -inf }
0x19d6   :  { %2853 = vmax.xlane.f32.xlu0 %v2852_v36 }
0x19e5   :  { %2876 = vrot.lane.b32.xlu1 %v5826_v56, %s5486_s8 }
0x19e9   :  { %3130 = vrot.lane.b32.xlu1 %v5826_v56, %s5487_s9 }
0x19ed   :  { %3128 = vrot.lane.b32.xlu1 %v5828_v58, %s5487_s9 }
0x19f1   :  { %3126 = vrot.lane.b32.xlu1 %v5826_v56, %s5488_s10 }
0x19f5   :  { %3416 = vrot.lane.b32.xlu1 %v5828_v58, %s5489_s11 }
0x19f9   :  { %3414 = vrot.lane.b32.xlu1 %v5826_v56, %s5490_s12 }
0x1a5d   :  { %v2857_v38 = vpop.xlane.xlu1 %2856 }
0x1a5e   :  { %v2859_v39 = vsub.f32 %v2851_v33, %v2857_v38 }
0x1a5f   :  { %v2854_v40 = vpop.xlane.xlu0 %2853 }
0x1a60   :  { %v2862_v41 = vmul.f32 1.442695, %v2859_v39  ;;  %v2858_v42 = vsub.f32 %v2850_v35, %v2854_v40 }
0x1a61   :  { %v2877_v43 = vpop.permute.xlu1 %2876 }
0x1a62   :  { %5386 = vpow2.f32 %v2862_v41  ;;  %v2860_v44 = vmul.f32 1.442695, %v2858_v42  ;;  %5200 = vmatprep.subr.mxu1 %v2877_v43 }
0x1a63   :  { %5201 = vmatpush3.msra.mxu1 %v2877_v43 }
0x1a64   :  { %5388 = vpow2.f32 %v2860_v44 }
0x1a65   :  { %v3131_v45 = vpop.permute.xlu1 %3130 }
0x1a66   :  { %5217 = vmatprep.subr.msk.mxu0 %vm436_vm3, %v3131_v45 }
0x1a69   :  { %v3129_v10 = vpop.permute.xlu1 %3128 }
0x1a6d   :  { %v3127_v13 = vpop.permute.xlu1 %3126 }
0x1a6f   :  { %v5387_v61 = vpop.eup %5386 }
0x1a70   :  { %v2867_v49 = vsel %vm524_vm4, %v5387_v61, 0.0 }
0x1a71   :  { %v5389_v50 = vpop.eup %5388  ;;  %2868 = vadd.xlane.f32.xlu0 %v2867_v49  ;;  %v3417_v15 = vpop.permute.xlu1 %3416 }
0x1a72   :  { %v2864_v54 = vsel %vm524_vm4, %v5389_v50, 0.0 }
0x1a75   :  { %2865 = vadd.xlane.f32.xlu0 %v2864_v54  ;;  %v3415_v16 = vpop.permute.xlu1 %3414 }
0x1a8b   :  { %2874 = vrot.lane.b32.xlu0 %v5828_v58, %s5486_s8 }
0x1a8f   :  { %3124 = vrot.lane.b32.xlu0 %v5828_v58, %s5488_s10 }
0x1a93   :  { %3418 = vrot.lane.b32.xlu0 %v5826_v56, %s5489_s11 }
0x1a97   :  { %3412 = vrot.lane.b32.xlu0 %v5828_v58, %s5490_s12 }
0x1afa   :  { %v2869_v55 = vpop.xlane.xlu0 %2868 }
0x1afb   :  { %5390 = vrcp.f32 %v2869_v55 }
0x1afe   :  { %v2866_v57 = vpop.xlane.xlu0 %2865 }
0x1aff   :  { %5392 = vrcp.f32 %v2866_v57 }
0x1b02   :  { %v2875_v59 = vpop.permute.xlu0 %2874 }
0x1b03   :  { %5202 = vmatprep.subr.mxu1 %v2875_v59 }
0x1b04   :  { %5203 = vmatpush3.msra.mxu1 %v2875_v59 }
0x1b05   :  { %5212 = vmatprep.subr.mxu1 %v2756_v60 }
0x1b06   :  { %v3125_v5 = vpop.permute.xlu0 %3124 }
0x1b08   :  { %v5391_v62 = vpop.eup %5390 }
0x1b09   :  { %v2873_v53 = vmul.f32 %v5391_v62, %v5387_v61  ;;  %v3328_v61 = vld [vmem:[#allocation2 + $0x1a8] sm:$0xff] }
0x1b0a   :  { %v3419_v12 = vpop.permute.xlu0 %3418 }
0x1b0c   :  { %v5393_v1 = vpop.eup %5392 }
0x1b0d   :  { %v2872_v3 = vmul.f32 %v5393_v1, %v5389_v50 }
0x1b0e   :  { %v3413_v14 = vpop.permute.xlu0 %3412 }
0x1b0f   :  { %5204 = vmatprep.mubr.msk.f32.mxu1 %vm524_vm4, %v2872_v3 }
0x1b10   :  { %5205 = vmatmul.mubr.msk.f32.vlgmr.msra.gmra.mxu1 %vm524_vm4, %v2873_v53 }
0x1b11   :  { %5214 = vmatprep.mubr.msk.f32.mxu1 %vm436_vm3, %v2747_v31  ;;  %5213 = vmatpush3.msra.mxu1 %v2756_v60 }
0x1b14   :  { %5215 = vmatmul.mubr.msk.f32.vlgmr.msra.gmra.mxu1 %vm436_vm3, %v5192_v30 }
0x1bd0   :  { %v5206_v6 = vpop.f32.mrf.mxu1 }
0x1bd2   :  { %v2952_v11 = vpop.f32.mrf.mxu1 }
0x1bd3   :  { %5209 = vmatprep.mubr.msk.f32.mxu0 %vm436_vm3, %v2952_v11 }
0x1bd4   :  { %5210 = vmatmul.mubr.msk.f32.vlgmr.msra.gmra.mxu0 %vm436_vm3, %v5206_v6  ;;  %v5216_v3 = vpop.f32.mrf.mxu1 }
0x1bd5   :  { %5218 = vmatpush3.xpose.msk.msra.mxu0 %vm436_vm3, %v3131_v45  ;;  %5221 = vmatprep.mubr.msk.f32.mxu0 %vm436_vm3, %v3125_v5 }
0x1bd6   :  { %5219 = vmatprep.subr.msk.mxu0 %vm436_vm3, %v3129_v10  ;;  %v3115_v53 = vpop.f32.mrf.mxu1 }
0x1bd9   :  { %5220 = vmatpush3.xpose.msk.msra.mxu0 %vm436_vm3, %v3129_v10 }
0x1bda   :  { %5236 = vmatprep.subr.msk.mxu0 %vm436_vm3, %v3419_v12 }
0x1bdc   :  { %5222 = vmatmul.mubr.msk.f32.vlgmr.msra.gmra.mxu0 %vm436_vm3, %v3127_v13 }
0x1bdd   :  { %5237 = vmatpush3.xpose.msk.msra.mxu0 %vm436_vm3, %v3419_v12  ;;  %5240 = vmatprep.mubr.msk.f32.mxu0 %vm436_vm3, %v3413_v14 }
0x1bde   :  { %5238 = vmatprep.subr.msk.mxu0 %vm436_vm3, %v3417_v15 }
0x1be1   :  { %5239 = vmatpush3.xpose.msk.msra.mxu0 %vm436_vm3, %v3417_v15  ;;  %v3616_v15 = vld [vmem:[#allocation2 + $0x1b0] sm:$0xff] }
0x1be4   :  { %5241 = vmatmul.mubr.msk.f32.vlgmr.msra.gmra.mxu0 %vm436_vm3, %v3415_v16 }
0x1be5   :  { %3835 = vmatprep.mubr.f32.mxu0 %v5493_v46 }
0x1c94   :  { %v5917_v17 = vpop.f32.mrf.mxu0 }
0x1c95   :  { %v3121_v16 = vadd.f32 %v5216_v3, %v5917_v17 }
0x1c96   :  { %v5919_v18 = vpop.f32.mrf.mxu0 }
0x1c9c   :  { %v5223_v19 = vpop.f32.mrf.mxu0 }
0x1c9d   :  { %v3216_v20 = vmul.f32 0.35355338, %v5223_v19 }
0x1c9e   :  { %v3206_v21 = vpop.f32.mrf.mxu0 }
0x1c9f   :  { %v3218_v9 = vadd.f32 %v5842_v4, %v3216_v20  ;;  %v3215_v8 = vmul.f32 0.35355338, %v3206_v21  ;;  %v3116_v20 = vadd.f32 %v3115_v53, %v5919_v18 }
0x1ca1   :  { %v3217_v22 = vadd.f32 %v5846_v7, %v3215_v8  ;;  %v3222_v23 = vsel %vm524_vm4, %v3218_v9, -inf }
0x1ca2   :  { %3223 = vmax.xlane.f32.xlu1 %v3222_v23 }
0x1ca3   :  { %v3219_v63 = vsel %vm524_vm4, %v3217_v22, -inf }
0x1ca4   :  { %3220 = vmax.xlane.f32.xlu0 %v3219_v63  ;;  %v5242_v24 = vpop.f32.mrf.mxu0 }
0x1ca5   :  { %v3504_v38 = vmul.f32 0.35355338, %v5242_v24  ;;  %v4779_v24 = vld [vmem:[#allocation2 + $0x273] ss:$0 sm:$0xff] }
0x1ca6   :  { %v3494_v25 = vpop.f32.mrf.mxu0 }
0x1ca7   :  { %v3503_v26 = vmul.f32 0.35355338, %v3494_v25  ;;  %v3506_v40 = vadd.f32 %v5842_v4, %v3504_v38  ;;  %v3763_v38 = vld [vmem:[#allocation4 + $0xf0] sm:$0xff] }
0x1ca9   :  { %v3505_v2 = vadd.f32 %v5846_v7, %v3503_v26  ;;  %v3510_v42 = vsel %vm524_vm4, %v3506_v40, -inf }
0x1cab   :  { %v3507_v27 = vsel %vm524_vm4, %v3505_v2, -inf }
0x1cb3   :  { %3243 = vrot.lane.b32.xlu1 %v5826_v56, %s5491_s13 }
0x1cd7   :  { %3508 = vmax.xlane.f32.xlu1 %v3507_v27 }
0x1d2b   :  { %v3224_v28 = vpop.xlane.xlu1 %3223 }
0x1d2c   :  { %v3226_v29 = vsub.f32 %v3218_v9, %v3224_v28 }
0x1d2d   :  { %v3221_v30 = vpop.xlane.xlu0 %3220 }
0x1d2e   :  { %v3229_v31 = vmul.f32 1.442695, %v3226_v29  ;;  %v3225_v48 = vsub.f32 %v3217_v22, %v3221_v30 }
0x1d2f   :  { %v3244_v32 = vpop.permute.xlu1 %3243 }
0x1d30   :  { %5394 = vpow2.f32 %v3229_v31  ;;  %v3227_v47 = vmul.f32 1.442695, %v3225_v48  ;;  %5224 = vmatprep.subr.mxu1 %v3244_v32 }
0x1d31   :  { %5225 = vmatpush3.msra.mxu1 %v3244_v32 }
0x1d32   :  { %5396 = vpow2.f32 %v3227_v47 }
0x1d3d   :  { %v5395_v0 = vpop.eup %5394 }
0x1d3e   :  { %v3234_v33 = vsel %vm524_vm4, %v5395_v0, 0.0 }
0x1d3f   :  { %v5397_v34 = vpop.eup %5396  ;;  %3235 = vadd.xlane.f32.xlu0 %v3234_v33 }
0x1d40   :  { %v3231_v7 = vsel %vm524_vm4, %v5397_v34, 0.0 }
0x1d43   :  { %3232 = vadd.xlane.f32.xlu0 %v3231_v7 }
0x1d59   :  { %3241 = vrot.lane.b32.xlu0 %v5828_v58, %s5491_s13 }
0x1d60   :  { %v3509_v35 = vpop.xlane.xlu1 %3508 }
0x1d61   :  { %v3513_v36 = vsub.f32 %v3505_v2, %v3509_v35 }
0x1d63   :  { %v3515_v37 = vmul.f32 1.442695, %v3513_v36  ;;  %v3762_v36 = vld [vmem:[#allocation4 + $0xe8] sm:$0xff] }
0x1d64   :  { %3795 = vmatprep.subr.mxu0 %v3762_v36  ;;  %v5429_v36 = vld [vmem:[%s6107_s3] sm:$0xff] }
0x1d65   :  { %5398 = vpow2.f32 %v3515_v37  ;;  %v3761_v37 = vld [vmem:[#allocation4 + $0xe0] sm:$0xff] }
0x1d66   :  { %3796 = vmatpush1.msra.mxu0 %v3761_v37  ;;  %v5431_v37 = vld [vmem:[%s6107_s3 + $0x10] sm:$0xff] }
0x1d72   :  { %v5399_v39 = vpop.eup %5398 }
0x1d73   :  { %v3519_v41 = vsel %vm524_vm4, %v5399_v39, 0.0 }
0x1d74   :  { %3520 = vadd.xlane.f32.xlu1 %v3519_v41  ;;  %v3757_v41 = vld [vmem:[#allocation4 + $0xc0] sm:$0xff] }
0x1d78   :  { %3511 = vmax.xlane.f32.xlu0 %v3510_v42  ;;  %v3759_v42 = vld [vmem:[#allocation4 + $0xd0] sm:$0xff] }
0x1d85   :  { %3531 = vrot.lane.b32.xlu1 %v5826_v56, %s5492_s14 }
0x1dc8   :  { %v3236_v43 = vpop.xlane.xlu0 %3235 }
0x1dc9   :  { %5400 = vrcp.f32 %v3236_v43  ;;  %v3754_v43 = vld [vmem:[#allocation4 + $0xa8] sm:$0xff] }
0x1dcc   :  { %v3233_v44 = vpop.xlane.xlu0 %3232 }
0x1dcd   :  { %5402 = vrcp.f32 %v3233_v44  ;;  %v3756_v44 = vld [vmem:[#allocation4 + $0xb8] sm:$0xff] }
0x1dd0   :  { %v3242_v45 = vpop.permute.xlu0 %3241 }
0x1dd1   :  { %5226 = vmatprep.subr.mxu1 %v3242_v45 }
0x1dd2   :  { %5227 = vmatpush3.msra.mxu1 %v3242_v45  ;;  %v3753_v45 = vld [vmem:[#allocation4 + $0xa0] sm:$0xff] }
0x1dd3   :  { %5231 = vmatprep.subr.mxu1 %v3328_v61 }
0x1dd6   :  { %v5401_v49 = vpop.eup %5400 }
0x1dd7   :  { %v3240_v54 = vmul.f32 %v5401_v49, %v5395_v0  ;;  %v3750_v49 = vld [vmem:[#allocation4 + $0x88] sm:$0xff] }
0x1dda   :  { %v5403_v4 = vpop.eup %5402 }
0x1ddb   :  { %v3239_v50 = vmul.f32 %v5403_v4, %v5397_v34  ;;  %v3752_v4 = vld [vmem:[#allocation4 + $0x98] sm:$0xff] }
0x1ddd   :  { %5228 = vmatprep.mubr.msk.f32.mxu1 %vm524_vm4, %v3239_v50  ;;  %v3749_v50 = vld [vmem:[#allocation4 + $0x80] sm:$0xff] }
0x1dde   :  { %5229 = vmatmul.mubr.msk.f32.vlgmr.msra.gmra.mxu1 %vm524_vm4, %v3240_v54  ;;  %v3751_v54 = vld [vmem:[#allocation4 + $0x90] sm:$0xff] }
0x1ddf   :  { %5232 = vmatpush3.msra.mxu1 %v3328_v61  ;;  %v3755_v61 = vld [vmem:[#allocation4 + $0xb0] sm:$0xff] }
0x1dfd   :  { %v3521_v55 = vpop.xlane.xlu1 %3520 }
0x1e01   :  { %v3532_v56 = vpop.permute.xlu1 %3531  ;;  %v3512_v57 = vpop.xlane.xlu0 %3511 }
0x1e02   :  { %v3514_v59 = vsub.f32 %v3506_v40, %v3512_v57  ;;  %5243 = vmatprep.subr.mxu1 %v3532_v56  ;;  %v3760_v40 = vld [vmem:[#allocation4 + $0xd8] sm:$0xff] }
0x1e04   :  { %v3517_v60 = vmul.f32 1.442695, %v3514_v59 }
0x1e06   :  { %5404 = vpow2.f32 %v3517_v60 }
0x1e07   :  { %5406 = vrcp.f32 %v3521_v55 }
0x1e13   :  { %v5405_v62 = vpop.eup %5404 }
0x1e14   :  { %v3522_v1 = vsel %vm524_vm4, %v5405_v62, 0.0  ;;  %v5407_v5 = vpop.eup %5406 }
0x1e15   :  { %3523 = vadd.xlane.f32.xlu0 %v3522_v1  ;;  %v3527_v12 = vmul.f32 %v5407_v5, %v5399_v39  ;;  %v3758_v39 = vld [vmem:[#allocation4 + $0xc8] sm:$0xff] }
0x1e16   :  { %3797 = vmatprep.subr.mxu0 %v3758_v39 }
0x1e17   :  { %3798 = vmatpush1.msra.mxu0 %v3757_v41 }
0x1e18   :  { %3799 = vmatprep.subr.mxu0 %v3754_v43 }
0x1e19   :  { %3800 = vmatpush1.msra.mxu0 %v3753_v45 }
0x1e1a   :  { %3801 = vmatprep.subr.mxu0 %v3750_v49 }
0x1e1b   :  { %3802 = vmatpush1.msra.mxu0 %v3749_v50 }
0x1e1c   :  { %4004 = vmatprep.subr.mxu0 %v5493_v46 }
0x1e2b   :  { %3529 = vrot.lane.b32.xlu0 %v5828_v58, %s5492_s14 }
0x1e9e   :  { %v5230_v6 = vpop.f32.mrf.mxu1  ;;  %v3524_v10 = vpop.xlane.xlu0 %3523 }
0x1e9f   :  { %5408 = vrcp.f32 %v3524_v10 }
0x1ea0   :  { %v3319_v11 = vpop.f32.mrf.mxu1 }
0x1ea1   :  { %5233 = vmatprep.mubr.msk.f32.mxu1 %vm436_vm3, %v3319_v11  ;;  %v4781_v11 = vld [vmem:[#allocation2 + $0x27a] ss:$0 sm:$0xff] }
0x1ea2   :  { %5234 = vmatmul.mubr.msk.f32.vlgmr.msra.gmra.mxu1 %vm436_vm3, %v5230_v6  ;;  %v3530_v13 = vpop.permute.xlu0 %3529  ;;  %v4780_v6 = vld [vmem:[#allocation2 + $0x279] ss:$0 sm:$0xff] }
0x1ea3   :  { %5244 = vmatpush3.msra.mxu1 %v3532_v56  ;;  %5247 = vmatprep.mubr.msk.f32.mxu1 %vm524_vm4, %v3527_v12 }
0x1ea4   :  { %5245 = vmatprep.subr.mxu1 %v3530_v13 }
0x1ea5   :  { %5246 = vmatpush3.msra.mxu1 %v3530_v13 }
0x1ea6   :  { %5250 = vmatprep.subr.mxu1 %v3616_v15 }
0x1eac   :  { %v5409_v58 = vpop.eup %5408 }
0x1ead   :  { %v3528_v14 = vmul.f32 %v5409_v58, %v5405_v62 }
0x1eaf   :  { %5248 = vmatmul.mubr.msk.f32.vlgmr.msra.gmra.mxu1 %vm524_vm4, %v3528_v14  ;;  %v5428_v14 = vld [vmem:[%s6107_s3 + $0x8] sm:$0xff] }
0x1eb0   :  { %5251 = vmatpush3.msra.mxu1 %v3616_v15 }
0x1f62   :  { %v5235_v19 = vpop.f32.mrf.mxu1 }
0x1f63   :  { %v3411_v21 = vadd.f32 %v5235_v19, %v3121_v16 }
0x1f64   :  { %v3401_v9 = vpop.f32.mrf.mxu1 }
0x1f65   :  { %v3410_v8 = vadd.f32 %v3401_v9, %v3116_v20 }
0x1f6f   :  { %v5249_v22 = vpop.f32.mrf.mxu1 }
0x1f71   :  { %v3607_v23 = vpop.f32.mrf.mxu1 }
0x1f72   :  { %5252 = vmatprep.mubr.msk.f32.mxu1 %vm436_vm3, %v3607_v23 }
0x1f73   :  { %5253 = vmatmul.mubr.msk.f32.vlgmr.msra.gmra.mxu1 %vm436_vm3, %v5249_v22 }
0x1f74   :  { %3912 = vmatprep.mubr.f32.mxu1 %v5493_v46 }
0x2033   :  { %v5254_v63 = vpop.f32.mrf.mxu1 }
0x2034   :  { %v3699_v25 = vadd.f32 %v5254_v63, %v3411_v21 }
0x2035   :  { %v3689_v26 = vpop.f32.mrf.mxu1 }
0x2036   :  { %v3706_v2 = vadd.f32 %v4779_v24, %v3699_v25  ;;  %v3698_v17 = vadd.f32 %v3689_v26, %v3410_v8 }
0x2038   :  { %v3705_v27 = vadd.f32 %v4779_v24, %v3698_v17  ;;  %v3708_v18 = vadd.f32 %v3706_v2, %v5820_v52 }
0x203a   :  { %v3714_v28 = vsel %vm250_vm2, %v3708_v18, 0.0  ;;  %v3707_v29 = vadd.f32 %v3705_v27, %v5818_v51  ;;  %v3764_v51 = vld [vmem:[#allocation4 + $0xf8] sm:$0xff] }
0x203b   :  { %3715 = vadd.xlane.f32.xlu0 %v3714_v28  ;;  %3872 = vmatprep.subr.mxu1 %v3764_v51  ;;  %v5430_v51 = vld [vmem:[%s6107_s3 + $0x18] sm:$0xff] }
0x203c   :  { %v3711_v30 = vsel %vm250_vm2, %v3707_v29, 0.0  ;;  %3873 = vmatpush1.msra.mxu1 %v3763_v38  ;;  %v4786_v38 = vld [vmem:[#allocation2 + $0x274] ss:$0 sm:$0xff] }
0x203d   :  { %3712 = vadd.xlane.f32.xlu1 %v3711_v30  ;;  %3874 = vmatprep.subr.mxu1 %v3760_v40 }
0x203e   :  { %3875 = vmatpush1.msra.mxu1 %v3759_v42 }
0x203f   :  { %3876 = vmatprep.subr.mxu1 %v3756_v44 }
0x2040   :  { %3877 = vmatpush1.msra.mxu1 %v3755_v61 }
0x2041   :  { %3878 = vmatprep.subr.mxu1 %v3752_v4 }
0x2042   :  { %3879 = vmatpush1.msra.mxu1 %v3751_v54 }
0x20c4   :  { %v3716_v31 = vpop.xlane.xlu0 %3715 }
0x20c5   :  { %v3718_v48 = vmul.f32 0.03125, %v3716_v31 }
0x20c6   :  { %v3713_v32 = vpop.xlane.xlu1 %3712 }
0x20c7   :  { %v3720_v47 = vsub.f32 %v3708_v18, %v3718_v48  ;;  %v3717_v0 = vmul.f32 0.03125, %v3713_v32 }
0x20c9   :  { %v3719_v33 = vsub.f32 %v3707_v29, %v3717_v0  ;;  %v3722_v34 = vmul.f32 %v3720_v47, %v3720_v47 }
0x20cb   :  { %v3726_v7 = vsel %vm250_vm2, %v3722_v34, 0.0  ;;  %v3721_v35 = vmul.f32 %v3719_v33, %v3719_v33 }
0x20cc   :  { %3727 = vadd.xlane.f32.xlu0 %v3726_v7 }
0x20cd   :  { %v3723_v52 = vsel %vm250_vm2, %v3721_v35, 0.0 }
0x20ce   :  { %3724 = vadd.xlane.f32.xlu1 %v3723_v52 }
0x2155   :  { %v3728_v55 = vpop.xlane.xlu0 %3727 }
0x2156   :  { %v3730_v56 = vmul.f32 0.03125, %v3728_v55 }
0x2157   :  { %v3725_v57 = vpop.xlane.xlu1 %3724 }
0x2158   :  { %v3732_v59 = vadd.f32 1e-05, %v3730_v56  ;;  %v3729_v60 = vmul.f32 0.03125, %v3725_v57 }
0x215a   :  { %5410 = vrsqrt.f32 %v3732_v59  ;;  %v3731_v62 = vadd.f32 1e-05, %v3729_v60 }
0x215c   :  { %5412 = vrsqrt.f32 %v3731_v62 }
0x2167   :  { %v5411_v1 = vpop.eup %5410 }
0x2168   :  { %v3736_v5 = vmul.f32 %v5411_v1, %v3720_v47 }
0x2169   :  { %v5413_v3 = vpop.eup %5412 }
0x216a   :  { %v3735_v53 = vmul.f32 %v5413_v3, %v3719_v33  ;;  %v3742_v13 = vmul.f32 %v4780_v6, %v3736_v5 }
0x216c   :  { %v3741_v10 = vmul.f32 %v4780_v6, %v3735_v53  ;;  %v5967_v58 = vadd.f32 %v4781_v11, %v3742_v13 }
0x216e   :  { %v5959_v12 = vadd.f32 %v4781_v11, %v3741_v10 }
0x2170   :  { %4782 = vmatmul.mubr.msk.f32.vlgmr.msra.gmra.mxu0 %vm250_vm2, %v5959_v12  ;;  %4784 = vmatmul.mubr.msk.f32.vlgmr.msra.gmra.mxu1 %vm250_vm2, %v5959_v12 }
0x2171   :  { %3841 = vmatprep.mubr.f32.mxu0 %v5493_v46  ;;  %3918 = vmatprep.mubr.f32.mxu1 %v5493_v46 }
0x2174   :  { %4783 = vmatmul.mubr.msk.f32.gmra.mxu0 %vm250_vm2, %v5967_v58  ;;  %4785 = vmatmul.mubr.msk.f32.gmra.mxu1 %vm250_vm2, %v5967_v58 }
0x2175   :  { %4787 = vmatprep.mubr.msk.f32.mxu0 %vm1887_vm5, %v5428_v14  ;;  %v4789_v14 = vld [vmem:[#allocation2 + $0x275] ss:$0 sm:$0xff] }
0x2230   :  { %v5977_v15 = vpop.f32.mrf.mxu0  ;;  %v5984_v21 = vpop.f32.mrf.mxu1 }
0x2232   :  { %v3839_v16 = vpop.f32.mrf.mxu0  ;;  %v5989_v9 = vpop.f32.mrf.mxu1 }
0x2233   :  { %3959 = vrot.lane.b32.xlu0 %v3839_v16, %s5481_s26 }
0x2234   :  { %v5980_v19 = vpop.f32.mrf.mxu0  ;;  %v5994_v8 = vpop.f32.mrf.mxu1 }
0x2236   :  { %v3845_v20 = vpop.f32.mrf.mxu0  ;;  %v5999_v22 = vpop.f32.mrf.mxu1 }
0x2237   :  { %3949 = vrot.lane.b32.xlu0 %v3845_v20, %s5482_s0  ;;  %3961 = vrot.lane.b32.xlu1 %v3845_v20, %s5481_s26 }
0x223b   :  { %3941 = vrot.lane.b32.xlu0 %v5980_v19, %s5481_s26  ;;  %3955 = vrot.lane.b32.xlu1 %v3845_v20, %s5485_s7 }
0x223f   :  { %3935 = vrot.lane.b32.xlu0 %v5980_v19, %s5485_s7  ;;  %3953 = vrot.lane.b32.xlu1 %v3839_v16, %s5485_s7 }
0x2243   :  { %3929 = vrot.lane.b32.xlu0 %v5980_v19, %s5482_s0  ;;  %3947 = vrot.lane.b32.xlu1 %v3839_v16, %s5482_s0 }
0x2247   :  { %3995 = vrot.lane.b32.xlu0 %v5999_v22, %s5485_s7  ;;  %3939 = vrot.lane.b32.xlu1 %v5977_v15, %s5481_s26 }
0x224b   :  { %3989 = vrot.lane.b32.xlu0 %v5999_v22, %s5482_s0  ;;  %3933 = vrot.lane.b32.xlu1 %v5977_v15, %s5485_s7 }
0x224f   :  { %3981 = vrot.lane.b32.xlu0 %v5994_v8, %s5481_s26  ;;  %3927 = vrot.lane.b32.xlu1 %v5977_v15, %s5482_s0 }
0x2253   :  { %3975 = vrot.lane.b32.xlu0 %v5994_v8, %s5485_s7  ;;  %3993 = vrot.lane.b32.xlu1 %v5989_v9, %s5485_s7 }
0x2257   :  { %3969 = vrot.lane.b32.xlu0 %v5994_v8, %s5482_s0  ;;  %3987 = vrot.lane.b32.xlu1 %v5989_v9, %s5482_s0 }
0x225b   :  { %3979 = vrot.lane.b32.xlu1 %v5984_v21, %s5481_s26 }
0x225f   :  { %3973 = vrot.lane.b32.xlu1 %v5984_v21, %s5485_s7 }
0x2263   :  { %3967 = vrot.lane.b32.xlu1 %v5984_v21, %s5482_s0 }
0x22a5   :  { %v3960_v23 = vpop.permute.xlu0 %3959 }
0x22a9   :  { %v3962_v63 = vpop.permute.xlu1 %3961  ;;  %v3950_v25 = vpop.permute.xlu0 %3949 }
0x22aa   :  { %4005 = vmatpush1.msra.mxu0 %v3962_v63 }
0x22ab   :  { %4006 = vmatprep.subr.mxu0 %v5493_v46 }
0x22ac   :  { %4007 = vmatpush1.msra.mxu0 %v3960_v23 }
0x22ad   :  { %4008 = vmatprep.subr.mxu0 %v5493_v46  ;;  %v3956_v24 = vpop.permute.xlu1 %3955  ;;  %v3942_v2 = vpop.permute.xlu0 %3941 }
0x22ae   :  { %4009 = vmatpush1.msra.mxu0 %v3956_v24 }
0x22af   :  { %4010 = vmatprep.subr.mxu0 %v5493_v46 }
0x22b1   :  { %v3954_v26 = vpop.permute.xlu1 %3953  ;;  %v3936_v18 = vpop.permute.xlu0 %3935 }
0x22b2   :  { %4011 = vmatpush1.msra.mxu0 %v3954_v26 }
0x22b3   :  { %4012 = vmatprep.subr.mxu0 %v5493_v46 }
0x22b4   :  { %4013 = vmatpush1.msra.mxu0 %v3950_v25 }
0x22b5   :  { %4014 = vmatprep.subr.mxu0 %v5493_v46  ;;  %v3948_v17 = vpop.permute.xlu1 %3947  ;;  %v3930_v29 = vpop.permute.xlu0 %3929 }
0x22b6   :  { %4015 = vmatpush1.msra.mxu0 %v3948_v17 }
0x22b7   :  { %4016 = vmatprep.subr.mxu0 %v5493_v46 }
0x22b8   :  { %4017 = vmatpush1.msra.mxu0 %v3845_v20 }
0x22b9   :  { %4018 = vmatprep.subr.mxu0 %v5493_v46  ;;  %v3940_v27 = vpop.permute.xlu1 %3939  ;;  %v3996_v31 = vpop.permute.xlu0 %3995 }
0x22ba   :  { %4019 = vmatpush1.msra.mxu0 %v3839_v16  ;;  %v4790_v16 = vld [vmem:[#allocation2 + $0x276] ss:$0 sm:$0xff] }
0x22bb   :  { %4020 = vmatprep.subr.mxu0 %v5493_v46 }
0x22bc   :  { %4021 = vmatpush1.msra.mxu0 %v3942_v2 }
0x22bd   :  { %4022 = vmatprep.subr.mxu0 %v5493_v46  ;;  %v3934_v28 = vpop.permute.xlu1 %3933  ;;  %v3990_v32 = vpop.permute.xlu0 %3989 }
0x22be   :  { %4023 = vmatpush1.msra.mxu0 %v3940_v27 }
0x22bf   :  { %4024 = vmatprep.subr.mxu0 %v5493_v46 }
0x22c0   :  { %4025 = vmatpush1.msra.mxu0 %v3936_v18 }
0x22c1   :  { %4026 = vmatprep.subr.mxu0 %v5493_v46  ;;  %v3928_v30 = vpop.permute.xlu1 %3927  ;;  %v3982_v0 = vpop.permute.xlu0 %3981 }
0x22c2   :  { %4027 = vmatpush1.msra.mxu0 %v3934_v28 }
0x22c3   :  { %4028 = vmatprep.subr.mxu0 %v5493_v46 }
0x22c4   :  { %4029 = vmatpush1.msra.mxu0 %v3930_v29 }
0x22c5   :  { %4030 = vmatprep.subr.mxu0 %v5493_v46  ;;  %v3994_v48 = vpop.permute.xlu1 %3993  ;;  %v3976_v34 = vpop.permute.xlu0 %3975 }
0x22c6   :  { %4031 = vmatpush1.msra.mxu0 %v3928_v30 }
0x22c7   :  { %4032 = vmatprep.subr.mxu0 %v5493_v46 }
0x22c8   :  { %4033 = vmatpush1.msra.mxu0 %v5980_v19 }
0x22c9   :  { %4034 = vmatprep.subr.mxu0 %v5493_v46  ;;  %v3988_v47 = vpop.permute.xlu1 %3987  ;;  %v3970_v35 = vpop.permute.xlu0 %3969 }
0x22ca   :  { %4035 = vmatpush1.msra.mxu0 %v5977_v15 }
0x22cb   :  { %4040 = vmatprep.subr.mxu0 %v5493_v46 }
0x22cc   :  { %4041 = vmatpush2.msra.mxu0 %v3996_v31 }
0x22cd   :  { %4042 = vmatprep.subr.mxu0 %v5493_v46  ;;  %v3980_v33 = vpop.permute.xlu1 %3979 }
0x22ce   :  { %4043 = vmatpush2.msra.mxu0 %v3994_v48  ;;  %v4166_v48 = vld [vmem:[#allocation2 + $0x1d0] sm:$0xff] }
0x22cf   :  { %4044 = vmatprep.subr.mxu0 %v5493_v46  ;;  %5255 = vmatprep.subr.mxu1 %v4166_v48 }
0x22d0   :  { %4045 = vmatpush2.msra.mxu0 %v3990_v32  ;;  %v4165_v32 = vld [vmem:[#allocation2 + $0x1c8] sm:$0xff]  ;;  %5256 = vmatpush3.msra.mxu1 %v4166_v48 }
0x22d1   :  { %4046 = vmatprep.subr.mxu0 %v5493_v46  ;;  %v3974_v7 = vpop.permute.xlu1 %3973  ;;  %5257 = vmatprep.subr.mxu1 %v4165_v32 }
0x22d2   :  { %4047 = vmatpush2.msra.mxu0 %v3988_v47  ;;  %5258 = vmatpush3.msra.mxu1 %v4165_v32  ;;  %v4163_v47 = vld [vmem:[#allocation2 + $0x1b8] sm:$0xff] }
0x22d3   :  { %4048 = vmatprep.subr.mxu0 %v5493_v46  ;;  %v4799_v32 = vld [vmem:[#allocation2 + $0x27d] ss:$0 sm:$0xff] }
0x22d4   :  { %4049 = vmatpush2.msra.mxu0 %v5999_v22 }
0x22d5   :  { %4050 = vmatprep.subr.mxu0 %v5493_v46  ;;  %v3968_v52 = vpop.permute.xlu1 %3967 }
0x22d6   :  { %4051 = vmatpush2.msra.mxu0 %v5989_v9 }
0x22d7   :  { %4052 = vmatprep.subr.mxu0 %v5493_v46 }
0x22d8   :  { %4053 = vmatpush2.msra.mxu0 %v3982_v0  ;;  %v4262_v0 = vld [vmem:[#allocation2 + $0x210] sm:$0xff] }
0x22d9   :  { %4054 = vmatprep.subr.mxu0 %v5493_v46 }
0x22da   :  { %4055 = vmatpush2.msra.mxu0 %v3980_v33 }
0x22db   :  { %4056 = vmatprep.subr.mxu0 %v5493_v46 }
0x22dc   :  { %4057 = vmatpush2.msra.mxu0 %v3976_v34 }
0x22dd   :  { %4058 = vmatprep.subr.mxu0 %v5493_v46 }
0x22de   :  { %4059 = vmatpush2.msra.mxu0 %v3974_v7 }
0x22df   :  { %4060 = vmatprep.subr.mxu0 %v5493_v46 }
0x22e0   :  { %4061 = vmatpush2.msra.mxu0 %v3970_v35 }
0x22e1   :  { %4062 = vmatprep.subr.mxu0 %v5493_v46 }
0x22e2   :  { %4063 = vmatpush2.msra.mxu0 %v3968_v52 }
0x22e3   :  { %4064 = vmatprep.subr.mxu0 %v5493_v46 }
0x22e4   :  { %4065 = vmatpush2.msra.mxu0 %v5994_v8 }
0x22e5   :  { %4066 = vmatprep.subr.mxu0 %v5493_v46 }
0x22e6   :  { %4067 = vmatpush2.msra.mxu0 %v5984_v21 }
0x22e7   :  { %4069 = vmatmul.mubr.f32.vlgmr.msra.gmra.mxu0 %v5429_v36 }
0x22e8   :  { %4788 = vmatprep.mubr.msk.f32.mxu0 %vm1887_vm5, %v5430_v51 }
0x22eb   :  { %4074 = vmatmul.mubr.f32.gmra.mxu0 %v5431_v37  ;;  %v4791_v37 = vld [vmem:[#allocation2 + $0x27b] ss:$0 sm:$0xff] }
0x23a7   :  { %v4070_v46 = vpop.f32.mrf.mxu0 }
0x23a8   :  { %v4071_v39 = vadd.f32 %v4786_v38, %v4070_v46  ;;  %v4792_v46 = vld [vmem:[#allocation2 + $0x27c] ss:$0 sm:$0xff] }
0x23a9   :  { %v4072_v40 = vpop.f32.mrf.mxu0 }
0x23aa   :  { %v4079_v41 = vadd.f32 %v4071_v39, %v5959_v12 }
0x23ab   :  { %v4075_v42 = vpop.f32.mrf.mxu0 }
0x23ac   :  { %v4076_v43 = vadd.f32 %v4786_v38, %v4075_v42  ;;  %v4083_v44 = vsel %vm250_vm2, %v4079_v41, 0.0 }
0x23ad   :  { %v4077_v45 = vpop.f32.mrf.mxu0  ;;  %4084 = vadd.xlane.f32.xlu0 %v4083_v44 }
0x23ae   :  { %v4080_v61 = vadd.f32 %v4076_v43, %v5967_v58  ;;  %v4261_v45 = vld [vmem:[#allocation2 + $0x208] sm:$0xff] }
0x23b0   :  { %v4086_v49 = vsel %vm250_vm2, %v4080_v61, 0.0 }
0x23b1   :  { %4087 = vadd.xlane.f32.xlu1 %v4086_v49  ;;  %v4259_v49 = vld [vmem:[#allocation2 + $0x1f8] sm:$0xff] }
0x2436   :  { %v4085_v4 = vpop.xlane.xlu0 %4084 }
0x2437   :  { %v4089_v50 = vmul.f32 0.03125, %v4085_v4  ;;  %v4258_v4 = vld [vmem:[#allocation2 + $0x1f0] sm:$0xff] }
0x2439   :  { %v4091_v54 = vsub.f32 %v4079_v41, %v4089_v50  ;;  %v4257_v50 = vld [vmem:[#allocation2 + $0x1e8] sm:$0xff] }
0x243a   :  { %v4088_v55 = vpop.xlane.xlu1 %4087 }
0x243b   :  { %v4090_v56 = vmul.f32 0.03125, %v4088_v55  ;;  %v4093_v57 = vmul.f32 %v4091_v54, %v4091_v54  ;;  %v4255_v55 = vld [vmem:[#allocation2 + $0x1d8] sm:$0xff] }
0x243d   :  { %v4092_v59 = vsub.f32 %v4080_v61, %v4090_v56  ;;  %v4095_v60 = vsel %vm250_vm2, %v4093_v57, 0.0  ;;  %v4260_v61 = vld [vmem:[#allocation2 + $0x200] sm:$0xff]  ;;  %v4793_v56 = vld [vmem:[#allocation2 + $0x277] ss:$0 sm:$0xff] }
0x243e   :  { %4096 = vadd.xlane.f32.xlu0 %v4095_v60 }
0x243f   :  { %v4094_v62 = vmul.f32 %v4092_v59, %v4092_v59 }
0x2441   :  { %v4098_v1 = vsel %vm250_vm2, %v4094_v62, 0.0 }
0x2442   :  { %4099 = vadd.xlane.f32.xlu0 %v4098_v1 }
0x24c7   :  { %v4097_v3 = vpop.xlane.xlu0 %4096 }
0x24c8   :  { %v4101_v53 = vmul.f32 0.03125, %v4097_v3 }
0x24ca   :  { %v4103_v5 = vadd.f32 1e-05, %v4101_v53  ;;  %v4796_v53 = vld [vmem:[#allocation2 + $0x278] ss:$0 sm:$0xff] }
0x24cb   :  { %v4100_v6 = vpop.xlane.xlu0 %4099 }
0x24cc   :  { %5414 = vrsqrt.f32 %v4103_v5  ;;  %v4102_v10 = vmul.f32 0.03125, %v4100_v6 }
0x24ce   :  { %v4104_v11 = vadd.f32 1e-05, %v4102_v10 }
0x24d0   :  { %5416 = vrsqrt.f32 %v4104_v11 }
0x24d9   :  { %v5415_v13 = vpop.eup %5414 }
0x24da   :  { %v4107_v15 = vmul.f32 %v5415_v13, %v4091_v54  ;;  %v4256_v54 = vld [vmem:[#allocation2 + $0x1e0] sm:$0xff] }
0x24dc   :  { %v4113_v19 = vmul.f32 %v4789_v14, %v4107_v15 }
0x24dd   :  { %v5417_v20 = vpop.eup %5416 }
0x24de   :  { %v4119_v21 = vadd.f32 %v4790_v16, %v4113_v19  ;;  %v4108_v9 = vmul.f32 %v5417_v20, %v4092_v59 }
0x24e0   :  { %v4121_v8 = vadd.f32 %v4119_v21, %v5959_v12  ;;  %v4114_v22 = vmul.f32 %v4789_v14, %v4108_v9 }
0x24e2   :  { %v4125_v23 = vsel %vm250_vm2, %v4121_v8, 0.0  ;;  %v4120_v63 = vadd.f32 %v4790_v16, %v4114_v22 }
0x24e3   :  { %4126 = vadd.xlane.f32.xlu1 %v4125_v23 }
0x24e4   :  { %v4122_v24 = vadd.f32 %v4120_v63, %v5967_v58  ;;  %v4164_v58 = vld [vmem:[#allocation2 + $0x1c0] sm:$0xff] }
0x24e5   :  { %5259 = vmatprep.subr.mxu1 %v4164_v58 }
0x24e6   :  { %v4128_v25 = vsel %vm250_vm2, %v4122_v24, 0.0  ;;  %5260 = vmatpush3.msra.mxu1 %v4164_v58 }
0x24e7   :  { %4129 = vadd.xlane.f32.xlu0 %v4128_v25  ;;  %5261 = vmatprep.subr.mxu1 %v4163_v47 }
0x24e8   :  { %5262 = vmatpush3.msra.mxu1 %v4163_v47 }
0x24e9   :  { %5266 = vmatprep.subr.mxu1 %v4262_v0 }
0x256c   :  { %v4127_v26 = vpop.xlane.xlu1 %4126 }
0x256d   :  { %v4131_v2 = vmul.f32 0.03125, %v4127_v26  ;;  %v4394_v26 = vld [vmem:[#allocation2 + $0x230] sm:$0xff] }
0x256f   :  { %v4133_v17 = vsub.f32 %v4121_v8, %v4131_v2  ;;  %v4393_v2 = vld [vmem:[#allocation2 + $0x228] sm:$0xff] }
0x2570   :  { %v4130_v27 = vpop.xlane.xlu0 %4129 }
0x2571   :  { %v4132_v18 = vmul.f32 0.03125, %v4130_v27  ;;  %v4135_v28 = vmul.f32 %v4133_v17, %v4133_v17  ;;  %v4391_v27 = vld [vmem:[#allocation2 + $0x218] sm:$0xff] }
0x2573   :  { %v4134_v29 = vsub.f32 %v4122_v24, %v4132_v18  ;;  %v4137_v30 = vsel %vm250_vm2, %v4135_v28, 0.0 }
0x2574   :  { %4138 = vadd.xlane.f32.xlu1 %v4137_v30 }
0x2575   :  { %v4136_v12 = vmul.f32 %v4134_v29, %v4134_v29 }
0x2577   :  { %v4140_v31 = vsel %vm250_vm2, %v4136_v12, 0.0 }
0x2578   :  { %4141 = vadd.xlane.f32.xlu0 %v4140_v31 }
0x25fd   :  { %v4139_v33 = vpop.xlane.xlu1 %4138 }
0x25fe   :  { %v4143_v34 = vmul.f32 0.03125, %v4139_v33 }
0x2600   :  { %v4145_v7 = vadd.f32 1e-05, %v4143_v34  ;;  %v4800_v34 = vld [vmem:[#allocation2 + $0x27e] ss:$0 sm:$0xff] }
0x2601   :  { %v4142_v35 = vpop.xlane.xlu0 %4141 }
0x2602   :  { %5418 = vrsqrt.f32 %v4145_v7  ;;  %v4144_v52 = vmul.f32 0.03125, %v4142_v35 }
0x2604   :  { %v4146_v36 = vadd.f32 1e-05, %v4144_v52 }
0x2606   :  { %5420 = vrsqrt.f32 %v4146_v36  ;;  %v4483_v36 = vld [vmem:[#allocation2 + $0x238] sm:$0xff] }
0x260f   :  { %v5419_v51 = vpop.eup %5418 }
0x2610   :  { %v4149_v38 = vmul.f32 %v5419_v51, %v4133_v17  ;;  %v4392_v17 = vld [vmem:[#allocation2 + $0x220] sm:$0xff]  ;;  %v4801_v51 = vld [vmem:[#allocation2 + $0x27f] ss:$0 sm:$0xff] }
0x2612   :  { %v4155_v39 = vmul.f32 %v4791_v37, %v4149_v38 }
0x2613   :  { %v5421_v40 = vpop.eup %5420 }
0x2614   :  { %v4150_v41 = vmul.f32 %v5421_v40, %v4134_v29  ;;  %v4161_v42 = vadd.f32 %v4792_v46, %v4155_v39 }
0x2616   :  { %v4156_v43 = vmul.f32 %v4791_v37, %v4150_v41  ;;  %5263 = vmatprep.mubr.msk.f32.mxu1 %vm250_vm2, %v4161_v42 }
0x2618   :  { %v4162_v44 = vadd.f32 %v4792_v46, %v4156_v43  ;;  %v4576_v43 = vld [vmem:[#allocation2 + $0x250] sm:$0xff] }
0x261a   :  { %5264 = vmatmul.mubr.msk.f32.vlgmr.msra.gmra.mxu1 %vm250_vm2, %v4162_v44 }
0x261b   :  { %5267 = vmatpush3.msra.mxu1 %v4262_v0 }
0x261c   :  { %5268 = vmatprep.subr.mxu1 %v4261_v45 }
0x261d   :  { %5269 = vmatpush3.msra.mxu1 %v4261_v45  ;;  %v4574_v45 = vld [vmem:[#allocation2 + $0x240] sm:$0xff] }
0x261e   :  { %5270 = vmatprep.subr.mxu1 %v4260_v61 }
0x261f   :  { %5271 = vmatpush3.msra.mxu1 %v4260_v61 }
0x2620   :  { %5272 = vmatprep.subr.mxu1 %v4259_v49 }
0x2621   :  { %5273 = vmatpush3.msra.mxu1 %v4259_v49 }
0x2622   :  { %5274 = vmatprep.subr.mxu1 %v4258_v4 }
0x2623   :  { %5275 = vmatpush3.msra.mxu1 %v4258_v4 }
0x2624   :  { %5276 = vmatprep.subr.mxu1 %v4257_v50 }
0x2625   :  { %5277 = vmatpush3.msra.mxu1 %v4257_v50  ;;  %v4806_v50 = vld [vmem:[#allocation2 + $0x280] ss:$0 sm:$0xff] }
0x2626   :  { %5278 = vmatprep.subr.mxu1 %v4256_v54 }
0x2627   :  { %5279 = vmatpush3.msra.mxu1 %v4256_v54 }
0x2628   :  { %5280 = vmatprep.subr.mxu1 %v4255_v55 }
0x2629   :  { %5281 = vmatpush3.msra.mxu1 %v4255_v55 }
0x262a   :  { %5285 = vmatprep.subr.mxu1 %v4394_v26 }
0x26da   :  { %v5265_v57 = vpop.f32.mrf.mxu1 }
0x26db   :  { %v4250_v59 = vadd.f32 %v5265_v57, %v4793_v56  ;;  %v4807_v57 = vld [vmem:[#allocation2 + $0x281] ss:$0 sm:$0xff] }
0x26dc   :  { %v4244_v60 = vpop.f32.mrf.mxu1 }
0x26dd   :  { %v4245_v62 = vadd.f32 %v4793_v56, %v4244_v60  ;;  %v4254_v3 = vmax.f32 %v4250_v59, 0.0 }
0x26df   :  { %v4253_v1 = vmax.f32 %v4245_v62, 0.0 }
0x26e1   :  { %5282 = vmatprep.mubr.msk.f32.mxu1 %vm159_vm1, %v4253_v1 }
0x26e2   :  { %5283 = vmatmul.mubr.msk.f32.vlgmr.msra.gmra.mxu1 %vm159_vm1, %v4254_v3 }
0x26e3   :  { %5286 = vmatpush3.msra.mxu1 %v4394_v26 }
0x26e4   :  { %5287 = vmatprep.subr.mxu1 %v4393_v2 }
0x26e5   :  { %5288 = vmatpush3.msra.mxu1 %v4393_v2 }
0x26e6   :  { %5289 = vmatprep.subr.mxu1 %v4392_v17 }
0x26e7   :  { %5290 = vmatpush3.msra.mxu1 %v4392_v17 }
0x26e8   :  { %5291 = vmatprep.subr.mxu1 %v4391_v27 }
0x26e9   :  { %5292 = vmatpush3.msra.mxu1 %v4391_v27 }
0x26ea   :  { %5296 = vmatprep.subr.mxu1 %v4483_v36 }
0x27a2   :  { %v5284_v5 = vpop.f32.mrf.mxu1 }
0x27a3   :  { %v4346_v6 = vadd.f32 %v5284_v5, %v4796_v53 }
0x27a4   :  { %v4340_v10 = vpop.f32.mrf.mxu1 }
0x27a5   :  { %v4350_v11 = vadd.f32 %v4346_v6, %v4162_v44  ;;  %v4341_v13 = vadd.f32 %v4796_v53, %v4340_v10  ;;  %v4575_v44 = vld [vmem:[#allocation2 + $0x248] sm:$0xff] }
0x27a7   :  { %v4349_v14 = vadd.f32 %v4341_v13, %v4161_v42  ;;  %v4356_v15 = vsel %vm250_vm2, %v4350_v11, 0.0  ;;  %v4577_v42 = vld [vmem:[#allocation2 + $0x258] sm:$0xff] }
0x27a8   :  { %4357 = vadd.xlane.f32.xlu0 %v4356_v15 }
0x27a9   :  { %v4353_v16 = vsel %vm250_vm2, %v4349_v14, 0.0 }
0x27aa   :  { %4354 = vadd.xlane.f32.xlu1 %v4353_v16 }
0x2831   :  { %v4358_v19 = vpop.xlane.xlu0 %4357 }
0x2832   :  { %v4360_v20 = vmul.f32 0.03125, %v4358_v19 }
0x2833   :  { %v4355_v21 = vpop.xlane.xlu1 %4354 }
0x2834   :  { %v4362_v9 = vsub.f32 %v4350_v11, %v4360_v20  ;;  %v4359_v8 = vmul.f32 0.03125, %v4355_v21 }
0x2836   :  { %v4361_v22 = vsub.f32 %v4349_v14, %v4359_v8  ;;  %v4364_v23 = vmul.f32 %v4362_v9, %v4362_v9 }
0x2838   :  { %v4368_v63 = vsel %vm250_vm2, %v4364_v23, 0.0  ;;  %v4363_v24 = vmul.f32 %v4361_v22, %v4361_v22 }
0x2839   :  { %4369 = vadd.xlane.f32.xlu0 %v4368_v63 }
0x283a   :  { %v4365_v25 = vsel %vm250_vm2, %v4363_v24, 0.0 }
0x283b   :  { %4366 = vadd.xlane.f32.xlu1 %v4365_v25 }
0x28c2   :  { %v4370_v18 = vpop.xlane.xlu0 %4369 }
0x28c3   :  { %v4372_v28 = vmul.f32 0.03125, %v4370_v18 }
0x28c4   :  { %v4367_v29 = vpop.xlane.xlu1 %4366 }
0x28c5   :  { %v4374_v30 = vadd.f32 1e-05, %v4372_v28  ;;  %v4371_v12 = vmul.f32 0.03125, %v4367_v29 }
0x28c7   :  { %5422 = vrsqrt.f32 %v4374_v30  ;;  %v4373_v31 = vadd.f32 1e-05, %v4371_v12 }
0x28c9   :  { %5424 = vrsqrt.f32 %v4373_v31 }
0x28d4   :  { %v5423_v48 = vpop.eup %5422 }
0x28d5   :  { %v4378_v58 = vmul.f32 %v5423_v48, %v4362_v9 }
0x28d6   :  { %v5425_v47 = vpop.eup %5424 }
0x28d7   :  { %v4377_v0 = vmul.f32 %v5425_v47, %v4361_v22  ;;  %v4384_v33 = vmul.f32 %v4799_v32, %v4378_v58 }
0x28d9   :  { %v4383_v7 = vmul.f32 %v4799_v32, %v4377_v0  ;;  %v4390_v52 = vadd.f32 %v4800_v34, %v4384_v33 }
0x28db   :  { %v4389_v35 = vadd.f32 %v4800_v34, %v4383_v7 }
0x28dd   :  { %5293 = vmatprep.mubr.msk.f32.mxu1 %vm250_vm2, %v4389_v35 }
0x28de   :  { %5294 = vmatmul.mubr.msk.f32.vlgmr.msra.gmra.mxu1 %vm250_vm2, %v4390_v52 }
0x28df   :  { %5297 = vmatpush3.msra.mxu1 %v4483_v36 }
0x28e0   :  { %5301 = vmatprep.subr.mxu1 %v4577_v42 }
0x299e   :  { %v5295_v37 = vpop.f32.mrf.mxu1 }
0x299f   :  { %v4478_v38 = vadd.f32 %v5295_v37, %v4801_v51 }
0x29a0   :  { %v4472_v46 = vpop.f32.mrf.mxu1 }
0x29a1   :  { %v4473_v39 = vadd.f32 %v4801_v51, %v4472_v46  ;;  %v4482_v41 = vmax.f32 %v4478_v38, 0.0 }
0x29a3   :  { %v4481_v40 = vmax.f32 %v4473_v39, 0.0 }
0x29a5   :  { %5298 = vmatprep.mubr.msk.f32.mxu1 %vm436_vm3, %v4481_v40 }
0x29a6   :  { %5299 = vmatmul.mubr.msk.f32.vlgmr.msra.gmra.mxu1 %vm436_vm3, %v4482_v41 }
0x29a7   :  { %5302 = vmatpush3.msra.mxu1 %v4577_v42 }
0x29a8   :  { %5303 = vmatprep.subr.mxu1 %v4576_v43 }
0x29a9   :  { %5304 = vmatpush3.msra.mxu1 %v4576_v43 }
0x29aa   :  { %5305 = vmatprep.subr.mxu1 %v4575_v44 }
0x29ab   :  { %5306 = vmatpush3.msra.mxu1 %v4575_v44 }
0x29ac   :  { %5307 = vmatprep.subr.mxu1 %v4574_v45 }
0x29ad   :  { %5308 = vmatpush3.msra.mxu1 %v4574_v45 }
0x2a66   :  { %v5300_v61 = vpop.f32.mrf.mxu1 }
0x2a67   :  { %v4566_v49 = vadd.f32 %v5300_v61, %v4390_v52 }
0x2a68   :  { %v4556_v4 = vpop.f32.mrf.mxu1 }
0x2a69   :  { %v4565_v54 = vadd.f32 %v4556_v4, %v4389_v35  ;;  %v4573_v56 = vadd.f32 %v4806_v50, %v4566_v49 }
0x2a6b   :  { %v4572_v55 = vadd.f32 %v4806_v50, %v4565_v54 }
0x2a6d   :  { %5309 = vmatprep.mubr.msk.f32.mxu1 %vm250_vm2, %v4572_v55 }
0x2a6e   :  { %5310 = vmatmul.mubr.msk.f32.vlgmr.msra.gmra.mxu1 %vm250_vm2, %v4573_v56 }
0x2b2e   :  { %v5311_v59 = vpop.f32.mrf.mxu1 }
0x2b2f   :  { %v4661_v60 = vadd.f32 %v5311_v59, %v4807_v57 }
0x2b30   :  { %v4655_v62 = vpop.f32.mrf.mxu1 }
0x2b31   :  { %4665 = vst [vmem:[%s6108_s4 + $0x8] sm:$0xff] %v4661_v60  ;;  %v4656_v1 = vadd.f32 %v4807_v57, %v4655_v62 }
0x2b33   :  { %4664 = vst [vmem:[%s6108_s4] sm:$0xff] %v4656_v1 }
0x2b34   :  { %4670 = vsyncpa [#allocation3], 1 }
0x2b35   :  { %4671 = vsyncpa [#allocation5], 1 }

</bundles_post_ra>
